<compile_context>
chip_gen: v5e
topology: v5e:2x2
jax: 0.10.0
libtpu: 0.0.40
codegen_flags: <defaults>
</compile_context>

<pallas_src>
import math
import functools

import jax
import jax.numpy as jnp
from jax.experimental import pallas as pl
from jax.experimental.pallas import tpu as pltpu  # noqa: F401  (TPU backend assumed)

# ---------------------------------------------------------------------------
# Problem sizes (small, consistent with the module)
# ---------------------------------------------------------------------------
OBJECT_TYPE_NUM = 2
WIDTH = 8
HEIGHT = 8
BATCH = 2
C_IN = OBJECT_TYPE_NUM + 1          # env_layer_num = 3
ECS = WIDTH - 5                     # each_channel_size = 3
N_PIX = HEIGHT * WIDTH              # 64
N_EXTRA = OBJECT_TYPE_NUM + 4       # 6
assert N_PIX == 64, "final reshape requires HEIGHT*WIDTH == 64"

HP = jax.lax.Precision.HIGHEST


# ---------------------------------------------------------------------------
# Pallas kernel: single invocation, whole batch, everything resident in VMEM.
# Feature maps keep the flattened per-batch row layout row = b*64 + h*8 + w;
# working heights shrink (128 -> 119 -> 101 -> 83) so every shifted slice stays
# in bounds.  Rows at invalid conv positions hold finite garbage that is never
# read by any valid downstream position (inputs are finite by construction).
# ---------------------------------------------------------------------------
def hdqn_kernel(x_ref, zext_ref, w1_ref, w2_ref, w34_ref, wy0_ref, wyfc_ref,
                b_ref, out_ref):
    f32 = jnp.float32
    bf16 = jnp.bfloat16
    relu = jax.nn.relu
    dot = functools.partial(jnp.dot, preferred_element_type=f32)

    R = x_ref.shape[0]                  # B * 64 rows
    B = out_ref.shape[0]

    bias = b_ref[...]                   # (9,128) f32
    b1 = bias[0:1, :]                   # conv1 (128)
    b2 = bias[1:2, 0:64]                # conv2..conv4 (64)
    b3 = bias[2:3, 0:64]
    b4 = bias[3:4, 0:64]

    # ---- conv1: 1x1 conv == per-pixel matmul over (padded) channels --------
    h1 = relu(dot(x_ref[...], w1_ref[...]) + b1).astype(bf16)      # (R,128) bf16

    # ---- conv2 (2x2), taps stacked along N: one lane-dense (R,128)x(128,256)
    #      dot, then sum the 4 row-shifted 64-lane slices on the VPU. --------
    H2 = R - (WIDTH + 1)                # 119
    y2t = dot(h1, w2_ref[...])          # (R,256) f32
    h2 = relu(y2t[0:H2, 0:64]
              + y2t[1:1 + H2, 64:128]
              + y2t[WIDTH:WIDTH + H2, 128:192]
              + y2t[WIDTH + 1:WIDTH + 1 + H2, 192:256]
              + b2).astype(bf16)        # (119,64) bf16

    # ---- conv3/conv4 (3x3), taps stacked along N: one (H_in,64)x(64,576) dot,
    #      then sum the 9 row-shifted 64-lane slices.  Result left in f32. ----
    def conv3x3(x_bf16, w, b, h_out):
        y = dot(x_bf16, w)              # (H_in,576) f32
        acc = y[0:h_out, 0:64]          # tap (0,0)
        t = 0
        for kh in range(3):
            for kw in range(3):
                if kh == 0 and kw == 0:
                    t += 1
                    continue
                s = kh * WIDTH + kw
                acc = acc + y[s:s + h_out, t * 64:(t + 1) * 64]
                t += 1
        return relu(acc + b)            # f32

    H3 = H2 - 2 * (WIDTH + 1)           # 101
    H4 = H3 - 2 * (WIDTH + 1)           # 83
    h3 = conv3x3(h2, w34_ref[0], b3, H3)                            # (101,64) f32
    h4 = conv3x3(h3.astype(bf16), w34_ref[1], b4, H4)               # (83,64)  f32

    # ---- z0 for all 5 FC layers via shifted full-height accumulating dots:
    #      Z[b*64, :] == y0[b] @ [fc1|fc2|fc3|fc4|fc5] y0-blocks; other rows are
    #      finite garbage never read.  No lane/sublane gather needed. ---------
    Bz = (B - 1) * N_PIX + 1            # 65
    Z = dot(h4[0:Bz, :].astype(bf16), wy0_ref[0])                   # (Bz,320) f32
    for p in range(1, ECS * ECS):
        rp = (p // ECS) * WIDTH + (p % ECS)
        Z = Z + dot(h4[rp:rp + Bz, :].astype(bf16), wy0_ref[p])
    z0 = jnp.concatenate([Z[b * N_PIX:b * N_PIX + 1, :] for b in range(B)],
                         axis=0)                                    # (B,320) f32

    # ---- densely-connected FC stack (f32 elementwise, bf16 MXU operands) ----
    wyfc = wyfc_ref[...]                # (64,640) bf16: [wy1|wy2|wy3|wy4]
    y1 = relu(z0[:, 0:64] + bias[4:5, 0:64])                        # fc1
    z1 = dot(y1.astype(bf16), wyfc[:, 0:256]) + zext_ref[...]       # (B,256)
    y2 = relu(z0[:, 64:128] + z1[:, 0:64] + bias[5:6, 0:64])        # fc2
    z2 = dot(y2.astype(bf16), wyfc[:, 256:448])                     # (B,192)
    y3 = relu(z0[:, 128:192] + z1[:, 64:128] + z2[:, 0:64] + bias[6:7, 0:64])
    z3 = dot(y3.astype(bf16), wyfc[:, 448:576])                     # (B,128)
    y4 = relu(z0[:, 192:256] + z1[:, 128:192] + z2[:, 64:128] + z3[:, 0:64]
              + bias[7:8, 0:64])
    z4 = dot(y4.astype(bf16), wyfc[:, 576:640])                     # (B,64)
    out_ref[...] = (z0[:, 256:320] + z1[:, 192:256] + z2[:, 128:192]
                    + z3[:, 64:128] + z4 + bias[8:9, 0:64])         # fc5, no relu


# ---------------------------------------------------------------------------
# Parameter init (deterministic, PyTorch-default-style uniform(-1/sqrt(fan_in)))
# ---------------------------------------------------------------------------
def init_params(key):
    shapes = {
        'c1w': (128, C_IN, 1, 1), 'c1b': (128,),
        'c2w': (64, 128, 2, 2),   'c2b': (64,),
        'c3w': (64, 64, 3, 3),    'c3b': (64,),
        'c4w': (64, 64, 3, 3),    'c4b': (64,),
        'f1w': (64, 64 * ECS ** 2),                                 'f1b': (64,),
        'f2w': (64, (ECS ** 2 + 1) * 64 + N_EXTRA),                 'f2b': (64,),
        'f3w': (64, (ECS ** 2 + 2) * 64 + N_EXTRA),                 'f3b': (64,),
        'f4w': (64, (ECS ** 2 + 3) * 64 + N_EXTRA),                 'f4b': (64,),
        'f5w': (64, (ECS ** 2 + 4) * 64 + N_EXTRA),                 'f5b': (64,),
    }
    params = {}
    keys = jax.random.split(key, len(shapes))
    for (name, shp), k in zip(shapes.items(), keys):
        if name.endswith('b'):
            fan = math.prod(shapes[name[:-1] + 'w'][1:])
        else:
            fan = math.prod(shp[1:])
        bound = 1.0 / math.sqrt(fan)
        params[name] = jax.random.uniform(k, shp, jnp.float32, -bound, bound)
    return params


# ---------------------------------------------------------------------------
# Pure-JAX reference (exact PyTorch semantics, NCHW, f32 HIGHEST precision)
# ---------------------------------------------------------------------------
def ref_forward(p, env_map, mental_states, states_params):
    relu = jax.nn.relu

    def conv(x, w, b):
        y = jax.lax.conv_general_dilated(
            x, w, window_strides=(1, 1), padding='VALID',
            dimension_numbers=('NCHW', 'OIHW', 'NCHW'), precision=HP)
        return y + b[None, :, None, None]

    def lin(v, w, b):
        return jnp.dot(v, w.T, precision=HP) + b

    B = env_map.shape[0]
    y = relu(conv(env_map, p['c1w'], p['c1b']))
    y = relu(conv(y, p['c2w'], p['c2b']))
    y = relu(conv(y, p['c3w'], p['c3b']))
    y = relu(conv(y, p['c4w'], p['c4b']))
    y0 = y.reshape(B, -1)
    y1 = relu(lin(y0, p['f1w'], p['f1b']))
    y1 = jnp.concatenate([y1, mental_states, states_params], axis=1)
    y2 = relu(lin(jnp.concatenate([y0, y1], 1), p['f2w'], p['f2b']))
    y3 = relu(lin(jnp.concatenate([y0, y1, y2], 1), p['f3w'], p['f3b']))
    y4 = relu(lin(jnp.concatenate([y0, y1, y2, y3], 1), p['f4w'], p['f4b']))
    y = lin(jnp.concatenate([y0, y1, y2, y3, y4], 1), p['f5w'], p['f5b'])
    return y.reshape(B, HEIGHT, WIDTH)


# ---------------------------------------------------------------------------
# Wrapper: parameter repacking (plain-JAX glue) + pallas_call
# ---------------------------------------------------------------------------
@jax.jit
def hdqn_forward(p, env_map, mental_states, states_params):
    B = env_map.shape[0]
    f32, bf16 = jnp.float32, jnp.bfloat16

    # --- activations: NCHW -> (B*H*W, C) rows ordered b*64+h*8+w, pad C to 8 ---
    # NOTE: non-finite inputs in valid rows would propagate (as in any forward);
    # the "garbage rows never read" shortcut itself only requires finiteness.
    x = env_map.transpose(0, 2, 3, 1).reshape(B * N_PIX, C_IN)
    x = jnp.pad(x, ((0, 0), (0, 8 - C_IN))).astype(bf16)

    # --- conv weights ---
    w1 = jnp.pad(p['c1w'][:, :, 0, 0].T, ((0, 8 - C_IN), (0, 0))).astype(bf16)   # (8,128)
    # taps stacked along N, column = (kh*kw_dim + kw)*64 + out
    w2s = p['c2w'].transpose(1, 2, 3, 0).reshape(128, 4 * 64).astype(bf16)       # (128,256)
    w3s = p['c3w'].transpose(1, 2, 3, 0).reshape(64, 9 * 64)
    w4s = p['c4w'].transpose(1, 2, 3, 0).reshape(64, 9 * 64)
    w34 = jnp.stack([w3s, w4s]).astype(bf16)                                     # (2,64,576)

    # --- FC weights: split by input block; y0 block reordered to per-tap
    #     (9, 64, 320) so z0 comes from 9 shifted accumulating dots. ---
    n_y0 = 64 * ECS ** 2      # 576
    o1, o2, o3 = n_y0, n_y0 + 64, n_y0 + 64 + N_EXTRA
    fT = [p['f1w'].T, p['f2w'].T, p['f3w'].T, p['f4w'].T, p['f5w'].T]

    def y0_reorder(wt):       # (576,64) rows c*9+p -> (9,64,64) [p, c, out]
        return wt.reshape(64, ECS ** 2, 64).transpose(1, 0, 2)

    wy0 = jnp.concatenate([y0_reorder(t[:n_y0]) for t in fT], axis=-1).astype(bf16)  # (9,64,320)
    wy1 = jnp.concatenate([t[o1:o2] for t in fT[1:]], axis=-1)            # (64,256)
    wex = jnp.concatenate([t[o2:o3] for t in fT[1:]], axis=-1)            # (6,256)
    wy2 = jnp.concatenate([t[o3:o3 + 64] for t in fT[2:]], axis=-1)       # (64,192)
    wy3 = jnp.concatenate([t[o3 + 64:o3 + 128] for t in fT[3:]], axis=-1) # (64,128)
    wy4 = fT[4][o3 + 128:o3 + 192]                                        # (64,64)
    wyfc = jnp.concatenate([wy1, wy2, wy3, wy4], axis=-1).astype(bf16)    # (64,640)

    # --- all biases packed into one (9,128) f32 operand ---
    def pad_row(v):
        return jnp.pad(v, (0, 128 - v.shape[0]))[None, :]
    biases = jnp.concatenate(
        [pad_row(p[k]) for k in
         ('c1b', 'c2b', 'c3b', 'c4b', 'f1b', 'f2b', 'f3b', 'f4b', 'f5b')],
        axis=0).astype(f32)                                                # (9,128)

    # --- extra-features matmul hoisted out of the kernel (tiny, K=6, M=B) ---
    extra = jnp.concatenate([mental_states, states_params], axis=1)        # (B,6)
    zext = jnp.dot(extra, wex, precision=HP).astype(f32)                   # (B,256)

    # --- rough cost hint so XLA schedules the glue around the custom call ---
    R = B * N_PIX
    H2 = R - (WIDTH + 1)
    H3 = H2 - 2 * (WIDTH + 1)
    Bz = (B - 1) * N_PIX + 1
    flops = 2 * (R * 8 * 128 + R * 128 * 256 + H2 * 64 * 576 + H3 * 64 * 576
                 + ECS * ECS * Bz * 64 * 320
                 + B * 64 * (256 + 192 + 128 + 64))
    bytes_accessed = (2 * (x.size + w1.size + w2s.size + w34.size
                           + wy0.size + wyfc.size)
                      + 4 * (biases.size + zext.size + B * 64))

    out = pl.pallas_call(
        hdqn_kernel,
        out_shape=jax.ShapeDtypeStruct((B, 64), f32),
        cost_estimate=pl.CostEstimate(flops=flops, transcendentals=0,
                                      bytes_accessed=bytes_accessed),
    )(x, zext, w1, w2s, w34, wy0, wyfc, biases)

    return out.reshape(B, HEIGHT, WIDTH)


# ---------------------------------------------------------------------------
if __name__ == "__main__":
    key = jax.random.PRNGKey(0)
    k_p, k_env, k_ms, k_sp = jax.random.split(key, 4)

    params = init_params(k_p)
    env_map = jax.random.normal(k_env, (BATCH, C_IN, HEIGHT, WIDTH), jnp.float32)
    mental_states = jax.random.normal(k_ms, (BATCH, OBJECT_TYPE_NUM), jnp.float32)
    states_params = jax.random.normal(k_sp, (BATCH, 4), jnp.float32)

    y_kernel = jax.block_until_ready(
        hdqn_forward(params, env_map, mental_states, states_params))

    y_ref = jax.block_until_ready(
        ref_forward(params, env_map, mental_states, states_params))

    assert y_kernel.shape == (BATCH, HEIGHT, WIDTH)
    assert jnp.allclose(y_kernel, y_ref, atol=5e-2, rtol=5e-2), (
        float(jnp.max(jnp.abs(y_kernel - y_ref))))

    print("KERNEL_OK")
</pallas_src>

<mosaic_0001>
module attributes {stable_mosaic.version = 11 : i64} {
  func.func @hdqn_kernel(%arg0: memref<128x8xbf16, #tpu.memory_space<vmem>>, %arg1: memref<2x256xf32, #tpu.memory_space<vmem>>, %arg2: memref<8x128xbf16, #tpu.memory_space<vmem>>, %arg3: memref<128x256xbf16, #tpu.memory_space<vmem>>, %arg4: memref<2x64x576xbf16, #tpu.memory_space<vmem>>, %arg5: memref<9x64x320xbf16, #tpu.memory_space<vmem>>, %arg6: memref<64x640xbf16, #tpu.memory_space<vmem>>, %arg7: memref<9x128xf32, #tpu.memory_space<vmem>>, %arg8: memref<2x64xf32, #tpu.memory_space<vmem>>) attributes {dimension_semantics = [], scalar_prefetch = 0 : i64, scratch_operands = 0 : i64, tpu.core_type = #tpu.core_type<tc>} {
    %c0 = arith.constant 0 : index
    %c0_0 = arith.constant 0 : index
    %0 = vector.load %arg7[%c0, %c0_0] : memref<9x128xf32, #tpu.memory_space<vmem>>, vector<9x128xf32>
    %1 = vector.extract_strided_slice %0 {offsets = [0, 0], sizes = [1, 128], strides = [1, 1]} : vector<9x128xf32> to vector<1x128xf32>
    %2 = vector.extract_strided_slice %0 {offsets = [1, 0], sizes = [1, 64], strides = [1, 1]} : vector<9x128xf32> to vector<1x64xf32>
    %3 = vector.extract_strided_slice %0 {offsets = [2, 0], sizes = [1, 64], strides = [1, 1]} : vector<9x128xf32> to vector<1x64xf32>
    %4 = vector.extract_strided_slice %0 {offsets = [3, 0], sizes = [1, 64], strides = [1, 1]} : vector<9x128xf32> to vector<1x64xf32>
    %c0_1 = arith.constant 0 : index
    %c0_2 = arith.constant 0 : index
    %5 = vector.load %arg0[%c0_1, %c0_2] : memref<128x8xbf16, #tpu.memory_space<vmem>>, vector<128x8xbf16>
    %c0_3 = arith.constant 0 : index
    %c0_4 = arith.constant 0 : index
    %6 = vector.load %arg2[%c0_3, %c0_4] : memref<8x128xbf16, #tpu.memory_space<vmem>>, vector<8x128xbf16>
    %cst = arith.constant dense<0.000000e+00> : vector<128x128xf32>
    %7 = tpu.matmul %5, %6, %cst {dimension_numbers = #tpu.dot_dimension_numbers<[1], [0], [0], [1], [0, 0, 1, 1], [], []>} : vector<128x8xbf16>, vector<8x128xbf16>, vector<128x128xf32> -> vector<128x128xf32>
    %8 = vector.broadcast %1 : vector<1x128xf32> to vector<128x128xf32>
    %9 = arith.addf %7, %8 : vector<128x128xf32>
    %cst_5 = arith.constant 0.000000e+00 : f32
    %10 = vector.broadcast %cst_5 : f32 to vector<128x128xf32>
    %11 = arith.maximumf %9, %10 : vector<128x128xf32>
    %12 = arith.truncf %11 : vector<128x128xf32> to vector<128x128xbf16>
    %c0_6 = arith.constant 0 : index
    %c0_7 = arith.constant 0 : index
    %13 = vector.load %arg3[%c0_6, %c0_7] : memref<128x256xbf16, #tpu.memory_space<vmem>>, vector<128x256xbf16>
    %cst_8 = arith.constant dense<0.000000e+00> : vector<128x256xf32>
    %14 = tpu.matmul %12, %13, %cst_8 {dimension_numbers = #tpu.dot_dimension_numbers<[1], [0], [0], [1], [0, 0, 1, 1], [], []>} : vector<128x128xbf16>, vector<128x256xbf16>, vector<128x256xf32> -> vector<128x256xf32>
    %15 = vector.extract_strided_slice %14 {offsets = [0, 0], sizes = [119, 64], strides = [1, 1]} : vector<128x256xf32> to vector<119x64xf32>
    %16 = vector.extract_strided_slice %14 {offsets = [1, 64], sizes = [119, 64], strides = [1, 1]} : vector<128x256xf32> to vector<119x64xf32>
    %17 = arith.addf %15, %16 : vector<119x64xf32>
    %18 = vector.extract_strided_slice %14 {offsets = [8, 128], sizes = [119, 64], strides = [1, 1]} : vector<128x256xf32> to vector<119x64xf32>
    %19 = arith.addf %17, %18 : vector<119x64xf32>
    %20 = vector.extract_strided_slice %14 {offsets = [9, 192], sizes = [119, 64], strides = [1, 1]} : vector<128x256xf32> to vector<119x64xf32>
    %21 = arith.addf %19, %20 : vector<119x64xf32>
    %22 = vector.broadcast %2 : vector<1x64xf32> to vector<119x64xf32>
    %23 = arith.addf %21, %22 : vector<119x64xf32>
    %cst_9 = arith.constant 0.000000e+00 : f32
    %24 = vector.broadcast %cst_9 : f32 to vector<119x64xf32>
    %25 = arith.maximumf %23, %24 : vector<119x64xf32>
    %26 = arith.truncf %25 : vector<119x64xf32> to vector<119x64xbf16>
    %c0_10 = arith.constant 0 : index
    %c0_11 = arith.constant 0 : index
    %c0_12 = arith.constant 0 : index
    %27 = vector.load %arg4[%c0_10, %c0_11, %c0_12] : memref<2x64x576xbf16, #tpu.memory_space<vmem>>, vector<1x64x576xbf16>
    %28 = vector.shape_cast %27 : vector<1x64x576xbf16> to vector<64x576xbf16>
    %cst_13 = arith.constant dense<0.000000e+00> : vector<119x576xf32>
    %29 = tpu.matmul %26, %28, %cst_13 {dimension_numbers = #tpu.dot_dimension_numbers<[1], [0], [0], [1], [0, 0, 1, 1], [], []>} : vector<119x64xbf16>, vector<64x576xbf16>, vector<119x576xf32> -> vector<119x576xf32>
    %30 = vector.extract_strided_slice %29 {offsets = [0, 0], sizes = [101, 64], strides = [1, 1]} : vector<119x576xf32> to vector<101x64xf32>
    %31 = vector.extract_strided_slice %29 {offsets = [1, 64], sizes = [101, 64], strides = [1, 1]} : vector<119x576xf32> to vector<101x64xf32>
    %32 = arith.addf %30, %31 : vector<101x64xf32>
    %33 = vector.extract_strided_slice %29 {offsets = [2, 128], sizes = [101, 64], strides = [1, 1]} : vector<119x576xf32> to vector<101x64xf32>
    %34 = arith.addf %32, %33 : vector<101x64xf32>
    %35 = vector.extract_strided_slice %29 {offsets = [8, 192], sizes = [101, 64], strides = [1, 1]} : vector<119x576xf32> to vector<101x64xf32>
    %36 = arith.addf %34, %35 : vector<101x64xf32>
    %37 = vector.extract_strided_slice %29 {offsets = [9, 256], sizes = [101, 64], strides = [1, 1]} : vector<119x576xf32> to vector<101x64xf32>
    %38 = arith.addf %36, %37 : vector<101x64xf32>
    %39 = vector.extract_strided_slice %29 {offsets = [10, 320], sizes = [101, 64], strides = [1, 1]} : vector<119x576xf32> to vector<101x64xf32>
    %40 = arith.addf %38, %39 : vector<101x64xf32>
    %41 = vector.extract_strided_slice %29 {offsets = [16, 384], sizes = [101, 64], strides = [1, 1]} : vector<119x576xf32> to vector<101x64xf32>
    %42 = arith.addf %40, %41 : vector<101x64xf32>
    %43 = vector.extract_strided_slice %29 {offsets = [17, 448], sizes = [101, 64], strides = [1, 1]} : vector<119x576xf32> to vector<101x64xf32>
    %44 = arith.addf %42, %43 : vector<101x64xf32>
    %45 = vector.extract_strided_slice %29 {offsets = [18, 512], sizes = [101, 64], strides = [1, 1]} : vector<119x576xf32> to vector<101x64xf32>
    %46 = arith.addf %44, %45 : vector<101x64xf32>
    %47 = vector.broadcast %3 : vector<1x64xf32> to vector<101x64xf32>
    %48 = arith.addf %46, %47 : vector<101x64xf32>
    %cst_14 = arith.constant 0.000000e+00 : f32
    %49 = vector.broadcast %cst_14 : f32 to vector<101x64xf32>
    %50 = arith.maximumf %48, %49 : vector<101x64xf32>
    %51 = arith.truncf %50 : vector<101x64xf32> to vector<101x64xbf16>
    %c1 = arith.constant 1 : index
    %c0_15 = arith.constant 0 : index
    %c0_16 = arith.constant 0 : index
    %52 = vector.load %arg4[%c1, %c0_15, %c0_16] : memref<2x64x576xbf16, #tpu.memory_space<vmem>>, vector<1x64x576xbf16>
    %53 = vector.shape_cast %52 : vector<1x64x576xbf16> to vector<64x576xbf16>
    %cst_17 = arith.constant dense<0.000000e+00> : vector<101x576xf32>
    %54 = tpu.matmul %51, %53, %cst_17 {dimension_numbers = #tpu.dot_dimension_numbers<[1], [0], [0], [1], [0, 0, 1, 1], [], []>} : vector<101x64xbf16>, vector<64x576xbf16>, vector<101x576xf32> -> vector<101x576xf32>
    %55 = vector.extract_strided_slice %54 {offsets = [0, 0], sizes = [83, 64], strides = [1, 1]} : vector<101x576xf32> to vector<83x64xf32>
    %56 = vector.extract_strided_slice %54 {offsets = [1, 64], sizes = [83, 64], strides = [1, 1]} : vector<101x576xf32> to vector<83x64xf32>
    %57 = arith.addf %55, %56 : vector<83x64xf32>
    %58 = vector.extract_strided_slice %54 {offsets = [2, 128], sizes = [83, 64], strides = [1, 1]} : vector<101x576xf32> to vector<83x64xf32>
    %59 = arith.addf %57, %58 : vector<83x64xf32>
    %60 = vector.extract_strided_slice %54 {offsets = [8, 192], sizes = [83, 64], strides = [1, 1]} : vector<101x576xf32> to vector<83x64xf32>
    %61 = arith.addf %59, %60 : vector<83x64xf32>
    %62 = vector.extract_strided_slice %54 {offsets = [9, 256], sizes = [83, 64], strides = [1, 1]} : vector<101x576xf32> to vector<83x64xf32>
    %63 = arith.addf %61, %62 : vector<83x64xf32>
    %64 = vector.extract_strided_slice %54 {offsets = [10, 320], sizes = [83, 64], strides = [1, 1]} : vector<101x576xf32> to vector<83x64xf32>
    %65 = arith.addf %63, %64 : vector<83x64xf32>
    %66 = vector.extract_strided_slice %54 {offsets = [16, 384], sizes = [83, 64], strides = [1, 1]} : vector<101x576xf32> to vector<83x64xf32>
    %67 = arith.addf %65, %66 : vector<83x64xf32>
    %68 = vector.extract_strided_slice %54 {offsets = [17, 448], sizes = [83, 64], strides = [1, 1]} : vector<101x576xf32> to vector<83x64xf32>
    %69 = arith.addf %67, %68 : vector<83x64xf32>
    %70 = vector.extract_strided_slice %54 {offsets = [18, 512], sizes = [83, 64], strides = [1, 1]} : vector<101x576xf32> to vector<83x64xf32>
    %71 = arith.addf %69, %70 : vector<83x64xf32>
    %72 = vector.broadcast %4 : vector<1x64xf32> to vector<83x64xf32>
    %73 = arith.addf %71, %72 : vector<83x64xf32>
    %cst_18 = arith.constant 0.000000e+00 : f32
    %74 = vector.broadcast %cst_18 : f32 to vector<83x64xf32>
    %75 = arith.maximumf %73, %74 : vector<83x64xf32>
    %76 = vector.extract_strided_slice %75 {offsets = [0, 0], sizes = [65, 64], strides = [1, 1]} : vector<83x64xf32> to vector<65x64xf32>
    %77 = arith.truncf %76 : vector<65x64xf32> to vector<65x64xbf16>
    %c0_19 = arith.constant 0 : index
    %c0_20 = arith.constant 0 : index
    %c0_21 = arith.constant 0 : index
    %78 = vector.load %arg5[%c0_19, %c0_20, %c0_21] : memref<9x64x320xbf16, #tpu.memory_space<vmem>>, vector<1x64x320xbf16>
    %79 = vector.shape_cast %78 : vector<1x64x320xbf16> to vector<64x320xbf16>
    %cst_22 = arith.constant dense<0.000000e+00> : vector<65x320xf32>
    %80 = tpu.matmul %77, %79, %cst_22 {dimension_numbers = #tpu.dot_dimension_numbers<[1], [0], [0], [1], [0, 0, 1, 1], [], []>} : vector<65x64xbf16>, vector<64x320xbf16>, vector<65x320xf32> -> vector<65x320xf32>
    %81 = vector.extract_strided_slice %75 {offsets = [1, 0], sizes = [65, 64], strides = [1, 1]} : vector<83x64xf32> to vector<65x64xf32>
    %82 = arith.truncf %81 : vector<65x64xf32> to vector<65x64xbf16>
    %c1_23 = arith.constant 1 : index
    %c0_24 = arith.constant 0 : index
    %c0_25 = arith.constant 0 : index
    %83 = vector.load %arg5[%c1_23, %c0_24, %c0_25] : memref<9x64x320xbf16, #tpu.memory_space<vmem>>, vector<1x64x320xbf16>
    %84 = vector.shape_cast %83 : vector<1x64x320xbf16> to vector<64x320xbf16>
    %cst_26 = arith.constant dense<0.000000e+00> : vector<65x320xf32>
    %85 = tpu.matmul %82, %84, %cst_26 {dimension_numbers = #tpu.dot_dimension_numbers<[1], [0], [0], [1], [0, 0, 1, 1], [], []>} : vector<65x64xbf16>, vector<64x320xbf16>, vector<65x320xf32> -> vector<65x320xf32>
    %86 = arith.addf %80, %85 : vector<65x320xf32>
    %87 = vector.extract_strided_slice %75 {offsets = [2, 0], sizes = [65, 64], strides = [1, 1]} : vector<83x64xf32> to vector<65x64xf32>
    %88 = arith.truncf %87 : vector<65x64xf32> to vector<65x64xbf16>
    %c2 = arith.constant 2 : index
    %c0_27 = arith.constant 0 : index
    %c0_28 = arith.constant 0 : index
    %89 = vector.load %arg5[%c2, %c0_27, %c0_28] : memref<9x64x320xbf16, #tpu.memory_space<vmem>>, vector<1x64x320xbf16>
    %90 = vector.shape_cast %89 : vector<1x64x320xbf16> to vector<64x320xbf16>
    %cst_29 = arith.constant dense<0.000000e+00> : vector<65x320xf32>
    %91 = tpu.matmul %88, %90, %cst_29 {dimension_numbers = #tpu.dot_dimension_numbers<[1], [0], [0], [1], [0, 0, 1, 1], [], []>} : vector<65x64xbf16>, vector<64x320xbf16>, vector<65x320xf32> -> vector<65x320xf32>
    %92 = arith.addf %86, %91 : vector<65x320xf32>
    %93 = vector.extract_strided_slice %75 {offsets = [8, 0], sizes = [65, 64], strides = [1, 1]} : vector<83x64xf32> to vector<65x64xf32>
    %94 = arith.truncf %93 : vector<65x64xf32> to vector<65x64xbf16>
    %c3 = arith.constant 3 : index
    %c0_30 = arith.constant 0 : index
    %c0_31 = arith.constant 0 : index
    %95 = vector.load %arg5[%c3, %c0_30, %c0_31] : memref<9x64x320xbf16, #tpu.memory_space<vmem>>, vector<1x64x320xbf16>
    %96 = vector.shape_cast %95 : vector<1x64x320xbf16> to vector<64x320xbf16>
    %cst_32 = arith.constant dense<0.000000e+00> : vector<65x320xf32>
    %97 = tpu.matmul %94, %96, %cst_32 {dimension_numbers = #tpu.dot_dimension_numbers<[1], [0], [0], [1], [0, 0, 1, 1], [], []>} : vector<65x64xbf16>, vector<64x320xbf16>, vector<65x320xf32> -> vector<65x320xf32>
    %98 = arith.addf %92, %97 : vector<65x320xf32>
    %99 = vector.extract_strided_slice %75 {offsets = [9, 0], sizes = [65, 64], strides = [1, 1]} : vector<83x64xf32> to vector<65x64xf32>
    %100 = arith.truncf %99 : vector<65x64xf32> to vector<65x64xbf16>
    %c4 = arith.constant 4 : index
    %c0_33 = arith.constant 0 : index
    %c0_34 = arith.constant 0 : index
    %101 = vector.load %arg5[%c4, %c0_33, %c0_34] : memref<9x64x320xbf16, #tpu.memory_space<vmem>>, vector<1x64x320xbf16>
    %102 = vector.shape_cast %101 : vector<1x64x320xbf16> to vector<64x320xbf16>
    %cst_35 = arith.constant dense<0.000000e+00> : vector<65x320xf32>
    %103 = tpu.matmul %100, %102, %cst_35 {dimension_numbers = #tpu.dot_dimension_numbers<[1], [0], [0], [1], [0, 0, 1, 1], [], []>} : vector<65x64xbf16>, vector<64x320xbf16>, vector<65x320xf32> -> vector<65x320xf32>
    %104 = arith.addf %98, %103 : vector<65x320xf32>
    %105 = vector.extract_strided_slice %75 {offsets = [10, 0], sizes = [65, 64], strides = [1, 1]} : vector<83x64xf32> to vector<65x64xf32>
    %106 = arith.truncf %105 : vector<65x64xf32> to vector<65x64xbf16>
    %c5 = arith.constant 5 : index
    %c0_36 = arith.constant 0 : index
    %c0_37 = arith.constant 0 : index
    %107 = vector.load %arg5[%c5, %c0_36, %c0_37] : memref<9x64x320xbf16, #tpu.memory_space<vmem>>, vector<1x64x320xbf16>
    %108 = vector.shape_cast %107 : vector<1x64x320xbf16> to vector<64x320xbf16>
    %cst_38 = arith.constant dense<0.000000e+00> : vector<65x320xf32>
    %109 = tpu.matmul %106, %108, %cst_38 {dimension_numbers = #tpu.dot_dimension_numbers<[1], [0], [0], [1], [0, 0, 1, 1], [], []>} : vector<65x64xbf16>, vector<64x320xbf16>, vector<65x320xf32> -> vector<65x320xf32>
    %110 = arith.addf %104, %109 : vector<65x320xf32>
    %111 = vector.extract_strided_slice %75 {offsets = [16, 0], sizes = [65, 64], strides = [1, 1]} : vector<83x64xf32> to vector<65x64xf32>
    %112 = arith.truncf %111 : vector<65x64xf32> to vector<65x64xbf16>
    %c6 = arith.constant 6 : index
    %c0_39 = arith.constant 0 : index
    %c0_40 = arith.constant 0 : index
    %113 = vector.load %arg5[%c6, %c0_39, %c0_40] : memref<9x64x320xbf16, #tpu.memory_space<vmem>>, vector<1x64x320xbf16>
    %114 = vector.shape_cast %113 : vector<1x64x320xbf16> to vector<64x320xbf16>
    %cst_41 = arith.constant dense<0.000000e+00> : vector<65x320xf32>
    %115 = tpu.matmul %112, %114, %cst_41 {dimension_numbers = #tpu.dot_dimension_numbers<[1], [0], [0], [1], [0, 0, 1, 1], [], []>} : vector<65x64xbf16>, vector<64x320xbf16>, vector<65x320xf32> -> vector<65x320xf32>
    %116 = arith.addf %110, %115 : vector<65x320xf32>
    %117 = vector.extract_strided_slice %75 {offsets = [17, 0], sizes = [65, 64], strides = [1, 1]} : vector<83x64xf32> to vector<65x64xf32>
    %118 = arith.truncf %117 : vector<65x64xf32> to vector<65x64xbf16>
    %c7 = arith.constant 7 : index
    %c0_42 = arith.constant 0 : index
    %c0_43 = arith.constant 0 : index
    %119 = vector.load %arg5[%c7, %c0_42, %c0_43] : memref<9x64x320xbf16, #tpu.memory_space<vmem>>, vector<1x64x320xbf16>
    %120 = vector.shape_cast %119 : vector<1x64x320xbf16> to vector<64x320xbf16>
    %cst_44 = arith.constant dense<0.000000e+00> : vector<65x320xf32>
    %121 = tpu.matmul %118, %120, %cst_44 {dimension_numbers = #tpu.dot_dimension_numbers<[1], [0], [0], [1], [0, 0, 1, 1], [], []>} : vector<65x64xbf16>, vector<64x320xbf16>, vector<65x320xf32> -> vector<65x320xf32>
    %122 = arith.addf %116, %121 : vector<65x320xf32>
    %123 = vector.extract_strided_slice %75 {offsets = [18, 0], sizes = [65, 64], strides = [1, 1]} : vector<83x64xf32> to vector<65x64xf32>
    %124 = arith.truncf %123 : vector<65x64xf32> to vector<65x64xbf16>
    %c8 = arith.constant 8 : index
    %c0_45 = arith.constant 0 : index
    %c0_46 = arith.constant 0 : index
    %125 = vector.load %arg5[%c8, %c0_45, %c0_46] : memref<9x64x320xbf16, #tpu.memory_space<vmem>>, vector<1x64x320xbf16>
    %126 = vector.shape_cast %125 : vector<1x64x320xbf16> to vector<64x320xbf16>
    %cst_47 = arith.constant dense<0.000000e+00> : vector<65x320xf32>
    %127 = tpu.matmul %124, %126, %cst_47 {dimension_numbers = #tpu.dot_dimension_numbers<[1], [0], [0], [1], [0, 0, 1, 1], [], []>} : vector<65x64xbf16>, vector<64x320xbf16>, vector<65x320xf32> -> vector<65x320xf32>
    %128 = arith.addf %122, %127 : vector<65x320xf32>
    %129 = vector.extract_strided_slice %128 {offsets = [0, 0], sizes = [1, 320], strides = [1, 1]} : vector<65x320xf32> to vector<1x320xf32>
    %130 = vector.extract_strided_slice %128 {offsets = [64, 0], sizes = [1, 320], strides = [1, 1]} : vector<65x320xf32> to vector<1x320xf32>
    %131 = tpu.concatenate %129, %130 in 0 : vector<1x320xf32>, vector<1x320xf32> -> vector<2x320xf32>
    %c0_48 = arith.constant 0 : index
    %c0_49 = arith.constant 0 : index
    %132 = vector.load %arg6[%c0_48, %c0_49] : memref<64x640xbf16, #tpu.memory_space<vmem>>, vector<64x640xbf16>
    %133 = vector.extract_strided_slice %131 {offsets = [0, 0], sizes = [2, 64], strides = [1, 1]} : vector<2x320xf32> to vector<2x64xf32>
    %134 = vector.extract_strided_slice %0 {offsets = [4, 0], sizes = [1, 64], strides = [1, 1]} : vector<9x128xf32> to vector<1x64xf32>
    %135 = vector.broadcast %134 : vector<1x64xf32> to vector<2x64xf32>
    %136 = arith.addf %133, %135 : vector<2x64xf32>
    %cst_50 = arith.constant 0.000000e+00 : f32
    %137 = vector.broadcast %cst_50 : f32 to vector<2x64xf32>
    %138 = arith.maximumf %136, %137 : vector<2x64xf32>
    %139 = arith.truncf %138 : vector<2x64xf32> to vector<2x64xbf16>
    %140 = vector.extract_strided_slice %132 {offsets = [0, 0], sizes = [64, 256], strides = [1, 1]} : vector<64x640xbf16> to vector<64x256xbf16>
    %cst_51 = arith.constant dense<0.000000e+00> : vector<2x256xf32>
    %141 = tpu.matmul %139, %140, %cst_51 {dimension_numbers = #tpu.dot_dimension_numbers<[1], [0], [0], [1], [0, 0, 1, 1], [], []>} : vector<2x64xbf16>, vector<64x256xbf16>, vector<2x256xf32> -> vector<2x256xf32>
    %c0_52 = arith.constant 0 : index
    %c0_53 = arith.constant 0 : index
    %142 = vector.load %arg1[%c0_52, %c0_53] : memref<2x256xf32, #tpu.memory_space<vmem>>, vector<2x256xf32>
    %143 = arith.addf %141, %142 : vector<2x256xf32>
    %144 = vector.extract_strided_slice %131 {offsets = [0, 64], sizes = [2, 64], strides = [1, 1]} : vector<2x320xf32> to vector<2x64xf32>
    %145 = vector.extract_strided_slice %143 {offsets = [0, 0], sizes = [2, 64], strides = [1, 1]} : vector<2x256xf32> to vector<2x64xf32>
    %146 = arith.addf %144, %145 : vector<2x64xf32>
    %147 = vector.extract_strided_slice %0 {offsets = [5, 0], sizes = [1, 64], strides = [1, 1]} : vector<9x128xf32> to vector<1x64xf32>
    %148 = vector.broadcast %147 : vector<1x64xf32> to vector<2x64xf32>
    %149 = arith.addf %146, %148 : vector<2x64xf32>
    %cst_54 = arith.constant 0.000000e+00 : f32
    %150 = vector.broadcast %cst_54 : f32 to vector<2x64xf32>
    %151 = arith.maximumf %149, %150 : vector<2x64xf32>
    %152 = arith.truncf %151 : vector<2x64xf32> to vector<2x64xbf16>
    %153 = vector.extract_strided_slice %132 {offsets = [0, 256], sizes = [64, 192], strides = [1, 1]} : vector<64x640xbf16> to vector<64x192xbf16>
    %cst_55 = arith.constant dense<0.000000e+00> : vector<2x192xf32>
    %154 = tpu.matmul %152, %153, %cst_55 {dimension_numbers = #tpu.dot_dimension_numbers<[1], [0], [0], [1], [0, 0, 1, 1], [], []>} : vector<2x64xbf16>, vector<64x192xbf16>, vector<2x192xf32> -> vector<2x192xf32>
    %155 = vector.extract_strided_slice %131 {offsets = [0, 128], sizes = [2, 64], strides = [1, 1]} : vector<2x320xf32> to vector<2x64xf32>
    %156 = vector.extract_strided_slice %143 {offsets = [0, 64], sizes = [2, 64], strides = [1, 1]} : vector<2x256xf32> to vector<2x64xf32>
    %157 = arith.addf %155, %156 : vector<2x64xf32>
    %158 = vector.extract_strided_slice %154 {offsets = [0, 0], sizes = [2, 64], strides = [1, 1]} : vector<2x192xf32> to vector<2x64xf32>
    %159 = arith.addf %157, %158 : vector<2x64xf32>
    %160 = vector.extract_strided_slice %0 {offsets = [6, 0], sizes = [1, 64], strides = [1, 1]} : vector<9x128xf32> to vector<1x64xf32>
    %161 = vector.broadcast %160 : vector<1x64xf32> to vector<2x64xf32>
    %162 = arith.addf %159, %161 : vector<2x64xf32>
    %cst_56 = arith.constant 0.000000e+00 : f32
    %163 = vector.broadcast %cst_56 : f32 to vector<2x64xf32>
    %164 = arith.maximumf %162, %163 : vector<2x64xf32>
    %165 = arith.truncf %164 : vector<2x64xf32> to vector<2x64xbf16>
    %166 = vector.extract_strided_slice %132 {offsets = [0, 448], sizes = [64, 128], strides = [1, 1]} : vector<64x640xbf16> to vector<64x128xbf16>
    %cst_57 = arith.constant dense<0.000000e+00> : vector<2x128xf32>
    %167 = tpu.matmul %165, %166, %cst_57 {dimension_numbers = #tpu.dot_dimension_numbers<[1], [0], [0], [1], [0, 0, 1, 1], [], []>} : vector<2x64xbf16>, vector<64x128xbf16>, vector<2x128xf32> -> vector<2x128xf32>
    %168 = vector.extract_strided_slice %131 {offsets = [0, 192], sizes = [2, 64], strides = [1, 1]} : vector<2x320xf32> to vector<2x64xf32>
    %169 = vector.extract_strided_slice %143 {offsets = [0, 128], sizes = [2, 64], strides = [1, 1]} : vector<2x256xf32> to vector<2x64xf32>
    %170 = arith.addf %168, %169 : vector<2x64xf32>
    %171 = vector.extract_strided_slice %154 {offsets = [0, 64], sizes = [2, 64], strides = [1, 1]} : vector<2x192xf32> to vector<2x64xf32>
    %172 = arith.addf %170, %171 : vector<2x64xf32>
    %173 = vector.extract_strided_slice %167 {offsets = [0, 0], sizes = [2, 64], strides = [1, 1]} : vector<2x128xf32> to vector<2x64xf32>
    %174 = arith.addf %172, %173 : vector<2x64xf32>
    %175 = vector.extract_strided_slice %0 {offsets = [7, 0], sizes = [1, 64], strides = [1, 1]} : vector<9x128xf32> to vector<1x64xf32>
    %176 = vector.broadcast %175 : vector<1x64xf32> to vector<2x64xf32>
    %177 = arith.addf %174, %176 : vector<2x64xf32>
    %cst_58 = arith.constant 0.000000e+00 : f32
    %178 = vector.broadcast %cst_58 : f32 to vector<2x64xf32>
    %179 = arith.maximumf %177, %178 : vector<2x64xf32>
    %180 = arith.truncf %179 : vector<2x64xf32> to vector<2x64xbf16>
    %181 = vector.extract_strided_slice %132 {offsets = [0, 576], sizes = [64, 64], strides = [1, 1]} : vector<64x640xbf16> to vector<64x64xbf16>
    %cst_59 = arith.constant dense<0.000000e+00> : vector<2x64xf32>
    %182 = tpu.matmul %180, %181, %cst_59 {dimension_numbers = #tpu.dot_dimension_numbers<[1], [0], [0], [1], [0, 0, 1, 1], [], []>} : vector<2x64xbf16>, vector<64x64xbf16>, vector<2x64xf32> -> vector<2x64xf32>
    %183 = vector.extract_strided_slice %131 {offsets = [0, 256], sizes = [2, 64], strides = [1, 1]} : vector<2x320xf32> to vector<2x64xf32>
    %184 = vector.extract_strided_slice %143 {offsets = [0, 192], sizes = [2, 64], strides = [1, 1]} : vector<2x256xf32> to vector<2x64xf32>
    %185 = arith.addf %183, %184 : vector<2x64xf32>
    %186 = vector.extract_strided_slice %154 {offsets = [0, 128], sizes = [2, 64], strides = [1, 1]} : vector<2x192xf32> to vector<2x64xf32>
    %187 = arith.addf %185, %186 : vector<2x64xf32>
    %188 = vector.extract_strided_slice %167 {offsets = [0, 64], sizes = [2, 64], strides = [1, 1]} : vector<2x128xf32> to vector<2x64xf32>
    %189 = arith.addf %187, %188 : vector<2x64xf32>
    %190 = arith.addf %189, %182 : vector<2x64xf32>
    %191 = vector.extract_strided_slice %0 {offsets = [8, 0], sizes = [1, 64], strides = [1, 1]} : vector<9x128xf32> to vector<1x64xf32>
    %192 = vector.broadcast %191 : vector<1x64xf32> to vector<2x64xf32>
    %193 = arith.addf %190, %192 : vector<2x64xf32>
    %c0_60 = arith.constant 0 : index
    %c0_61 = arith.constant 0 : index
    %194 = vector.load %arg8[%c0_60, %c0_61] : memref<2x64xf32, #tpu.memory_space<vmem>>, vector<2x64xf32>
    tpu.vector_store %arg8[%c0_60, %c0_61], %193 {strides = array<i32>} : memref<2x64xf32, #tpu.memory_space<vmem>>, vector<2x64xf32>,
    return
  }
}

</mosaic_0001>

<bundles_post_ra>
// kernel: hdqn_forward.1
= control target key start
LH: loop header
LB: loop body
LE: loop exit
PB: predicated region body
PF: predicated region fallthrough
CT: control target
= control target key end

     0   :  { %vm115_vm0 = vcmask 1043456   ;;  %vm90_vm1 = vcmask 64512   ;;  %vm399_vm2 = vcmask 1046528   ;;  %vm775_vm3 = vcmask 523264   ;;  %s8769_s2 = inlined_call_operand.vmem [shape: bf16[8,128], index: 2, kind: input, shape index: {}]   ;;  %s8770_s0 = inlined_call_operand.vmem [shape: bf16[128,8], index: 0, kind: input, shape index: {}]   ;;  %s8771_s7 = inlined_call_operand.vmem [shape: f32[9,128], index: 7, kind: input, shape index: {}]   ;;  %s8772_s3 = inlined_call_operand.vmem [shape: bf16[128,256], index: 3, kind: input, shape index: {}]   ;;  %s8773_s4 = inlined_call_operand.vmem [shape: bf16[2,64,576], index: 4, kind: input, shape index: {}]   ;;  %s8774_s5 = inlined_call_operand.vmem [shape: bf16[9,64,320], index: 5, kind: input, shape index: {}]   ;;  %s8775_s6 = inlined_call_operand.vmem [shape: bf16[64,640], index: 6, kind: input, shape index: {}]   ;;  %s8776_s1 = inlined_call_operand.vmem [shape: f32[2,256], index: 1, kind: input, shape index: {}]   ;;  %s8777_s8 = inlined_call_operand.vmem [shape: f32[2,64], index: 8, kind: output, shape index: {}]  }
   0x1   :  { %v48_v0 = vld [vmem:[%s8769_s2] sm:$0xf]  ;;  %v5576_v3 = vld [vmem:[%s8770_s0 + $0x8] sm:$0xff]  ;;  %v5577_v4 = vld [vmem:[%s8770_s0 + $0x10] sm:$0xff]  ;;  %vm1134_vm4 = vcmask 1045504   ;;  %vm4117_vm6 = vcmask 1040384  }
   0x2   :  { %v117_v1 = vsel %vm115_vm0, %v48_v0, 0  ;;  %v5575_v2 = vld [vmem:[%s8770_s0] sm:$0xff]  ;;  %v5578_v5 = vld [vmem:[%s8770_s0 + $0x18] sm:$0xff]  ;;  %v4529_v7 = vld [vmem:[%s8772_s3 + $0x70] sm:$0xf]  ;;  %vm4425_vm7 = vcmask 517120  }
   0x3   :  { %126 = vmatpush.bf16.msra.mxu0 %v117_v1  ;;  %v5579_v6 = vld [vmem:[%s8770_s0 + $0x20] sm:$0xff]  ;;  %v5598_v8 = vld [vmem:[%s8772_s3 + $0x74] sm:$0xf0]  ;;  %v5597_v9 = vld [vmem:[%s8772_s3 + $0x74] sm:$0xf] }
   0x4   :  { %v4530_v10 = vor.u32 %v5598_v8, %v4529_v7  ;;  %v4531_v11 = vld [vmem:[%s8772_s3 + $0x78] sm:$0xf0]  ;;  %v5580_v13 = vld [vmem:[%s8770_s0 + $0x28] sm:$0xff]  ;;  %v4521_v14 = vld [vmem:[%s8772_s3 + $0x60] sm:$0xf] }
   0x5   :  { %v4534_v12 = vor.u32 %v5597_v9, %v4531_v11  ;;  %v5596_v15 = vld [vmem:[%s8772_s3 + $0x64] sm:$0xf0]  ;;  %v5595_v16 = vld [vmem:[%s8772_s3 + $0x64] sm:$0xf]  ;;  %v4523_v18 = vld [vmem:[%s8772_s3 + $0x68] sm:$0xf0] }
   0x6   :  { %4463 = vmatmul.msk.bf16.vlgmr.msra.gmra.mxu0 %vm90_vm1, %v5575_v2  ;;  %288 = vmatpush.bf16.msra.mxu1 %v4530_v10  ;;  %v4522_v17 = vor.u32 %v5596_v15, %v4521_v14  ;;  %v4526_v19 = vor.u32 %v5595_v16, %v4523_v18  ;;  %v4513_v20 = vld [vmem:[%s8772_s3 + $0x50] sm:$0xf]  ;;  %v5594_v21 = vld [vmem:[%s8772_s3 + $0x54] sm:$0xf0]  ;;  %v5593_v22 = vld [vmem:[%s8772_s3 + $0x54] sm:$0xf] }
   0x7   :  { %336 = vmatpush.bf16.msra.mxu2 %v4534_v12  ;;  %v4514_v23 = vor.u32 %v5594_v21, %v4513_v20  ;;  %v4515_v24 = vld [vmem:[%s8772_s3 + $0x58] sm:$0xf0]  ;;  %v4505_v26 = vld [vmem:[%s8772_s3 + $0x40] sm:$0xf]  ;;  %v5592_v27 = vld [vmem:[%s8772_s3 + $0x44] sm:$0xf0] }
   0x8   :  { %v4518_v25 = vor.u32 %v5593_v22, %v4515_v24  ;;  %v5591_v28 = vld [vmem:[%s8772_s3 + $0x44] sm:$0xf]  ;;  %v4507_v29 = vld [vmem:[%s8772_s3 + $0x48] sm:$0xf0]  ;;  %v4506_v30 = vor.u32 %v5592_v27, %v4505_v26  ;;  %v4497_v32 = vld [vmem:[%s8772_s3 + $0x30] sm:$0xf] }
   0x9   :  { %v4510_v31 = vor.u32 %v5591_v28, %v4507_v29  ;;  %v5590_v33 = vld [vmem:[%s8772_s3 + $0x34] sm:$0xf0]  ;;  %v5589_v34 = vld [vmem:[%s8772_s3 + $0x34] sm:$0xf]  ;;  %v4499_v36 = vld [vmem:[%s8772_s3 + $0x38] sm:$0xf0] }
   0xa   :  { %289 = vmatpush.bf16.msra.mxu1 %v4522_v17  ;;  %v4498_v35 = vor.u32 %v5590_v33, %v4497_v32  ;;  %v5581_v37 = vld [vmem:[%s8770_s0 + $0x30] sm:$0xff]  ;;  %v4502_v38 = vor.u32 %v5589_v34, %v4499_v36  ;;  %v4489_v39 = vld [vmem:[%s8772_s3 + $0x20] sm:$0xf]  ;;  %v5588_v40 = vld [vmem:[%s8772_s3 + $0x24] sm:$0xf0] }
   0xb   :  { %337 = vmatpush.bf16.msra.mxu2 %v4526_v19  ;;  %v5587_v41 = vld [vmem:[%s8772_s3 + $0x24] sm:$0xf]  ;;  %v4490_v42 = vor.u32 %v5588_v40, %v4489_v39  ;;  %v4491_v43 = vld [vmem:[%s8772_s3 + $0x28] sm:$0xf0]  ;;  %v4481_v45 = vld [vmem:[%s8772_s3 + $0x10] sm:$0xf] }
   0xc   :  { %v4494_v44 = vor.u32 %v5587_v41, %v4491_v43  ;;  %v5586_v46 = vld [vmem:[%s8772_s3 + $0x14] sm:$0xf0]  ;;  %v5585_v47 = vld [vmem:[%s8772_s3 + $0x14] sm:$0xf]  ;;  %v4483_v49 = vld [vmem:[%s8772_s3 + $0x18] sm:$0xf0] }
   0xd   :  { %v4482_v48 = vor.u32 %v5586_v46, %v4481_v45  ;;  %v4486_v50 = vor.u32 %v5585_v47, %v4483_v49  ;;  %v4473_v51 = vld [vmem:[%s8772_s3] sm:$0xf]  ;;  %v5584_v52 = vld [vmem:[%s8772_s3 + $0x4] sm:$0xf0]  ;;  %v5583_v53 = vld [vmem:[%s8772_s3 + $0x4] sm:$0xf] }
   0xe   :  { %290 = vmatpush.bf16.msra.mxu1 %v4514_v23  ;;  %v4474_v54 = vor.u32 %v5584_v52, %v4473_v51  ;;  %v4475_v55 = vld [vmem:[%s8772_s3 + $0x8] sm:$0xf0]  ;;  %v5582_v57 = vld [vmem:[%s8770_s0 + $0x38] sm:$0xff]  ;;  %v5951_v58 = vld [vmem:[%s8771_s7] sm:$0xff]  ;;  %s5771_s0 = smov 64  }
   0xf   :  { %338 = vmatpush.bf16.msra.mxu2 %v4518_v25  ;;  %v4478_v56 = vor.u32 %v5583_v53, %v4475_v55  ;;  %v5954_v60 = vperm.slane %v5951_v58, 0  ;;  %vm2433_vm5 = vsmask.f32 7424 }
  0x12   :  { %291 = vmatpush.bf16.msra.mxu1 %v4506_v30 }
  0x13   :  { %339 = vmatpush.bf16.msra.mxu2 %v4510_v31 }
  0x16   :  { %4464 = vmatmul.msk.bf16.gmra.mxu0 %vm90_vm1, %v5576_v3  ;;  %292 = vmatpush.bf16.msra.mxu1 %v4498_v35 }
  0x17   :  { %340 = vmatpush.bf16.msra.mxu2 %v4502_v38 }
  0x1a   :  { %293 = vmatpush.bf16.msra.mxu1 %v4490_v42 }
  0x1b   :  { %341 = vmatpush.bf16.msra.mxu2 %v4494_v44 }
  0x1e   :  { %294 = vmatpush.bf16.msra.mxu1 %v4482_v48 }
  0x1f   :  { %342 = vmatpush.bf16.msra.mxu2 %v4486_v50 }
  0x22   :  { %295 = vmatpush.bf16.msra.mxu1 %v4474_v54 }
  0x23   :  { %343 = vmatpush.bf16.msra.mxu2 %v4478_v56 }
  0x26   :  { %4465 = vmatmul.msk.bf16.gmra.mxu0 %vm90_vm1, %v5577_v4 }
  0x36   :  { %4466 = vmatmul.msk.bf16.gmra.mxu0 %vm90_vm1, %v5578_v5 }
  0x46   :  { %4467 = vmatmul.msk.bf16.gmra.mxu0 %vm90_vm1, %v5579_v6 }
  0x56   :  { %4468 = vmatmul.msk.bf16.gmra.mxu0 %vm90_vm1, %v5580_v13 }
  0x66   :  { %4469 = vmatmul.msk.bf16.gmra.mxu0 %vm90_vm1, %v5581_v37 }
  0x76   :  { %4470 = vmatmul.msk.bf16.gmra.mxu0 %vm90_vm1, %v5582_v57 }
  0x83   :  { %v128_v59 = vpop.f32.mrf.mxu0 }
  0x84   :  { %v129_v61 = vadd.f32 %v128_v59, %v5954_v60 }
  0x86   :  { %v168_v0 = vmax.f32 %v129_v61, 0.0 }
  0x8b   :  { %v130_v62 = vpop.f32.mrf.mxu0 }
  0x8c   :  { %v131_v63 = vadd.f32 %v130_v62, %v5954_v60 }
  0x8e   :  { %v169_v1 = vmax.f32 %v131_v63, 0.0 }
  0x90   :  { %v184_v2 = vpack.c.bf16 %v169_v1, %v168_v0 }
  0x92   :  { %296 = vmatmul.bf16.vlgmr.msra.gmra.mxu1 %v184_v2  ;;  %344 = vmatmul.bf16.vlgmr.msra.gmra.mxu2 %v184_v2 }
  0x93   :  { %v133_v3 = vpop.f32.mrf.mxu0 }
  0x94   :  { %v134_v4 = vadd.f32 %v133_v3, %v5954_v60 }
  0x96   :  { %v170_v7 = vmax.f32 %v134_v4, 0.0 }
  0x9b   :  { %v135_v5 = vpop.f32.mrf.mxu0 }
  0x9c   :  { %v136_v6 = vadd.f32 %v135_v5, %v5954_v60 }
  0x9e   :  { %v171_v8 = vmax.f32 %v136_v6, 0.0 }
  0xa0   :  { %v185_v9 = vpack.c.bf16 %v171_v8, %v170_v7 }
  0xa2   :  { %301 = vmatmul.bf16.gmra.mxu1 %v185_v9  ;;  %348 = vmatmul.bf16.gmra.mxu2 %v185_v9 }
  0xa3   :  { %v138_v10 = vpop.f32.mrf.mxu0 }
  0xa4   :  { %v139_v11 = vadd.f32 %v138_v10, %v5954_v60 }
  0xa6   :  { %v172_v14 = vmax.f32 %v139_v11, 0.0 }
  0xab   :  { %v140_v12 = vpop.f32.mrf.mxu0 }
  0xac   :  { %v141_v13 = vadd.f32 %v140_v12, %v5954_v60 }
  0xae   :  { %v173_v15 = vmax.f32 %v141_v13, 0.0 }
  0xb0   :  { %v186_v16 = vpack.c.bf16 %v173_v15, %v172_v14 }
  0xb2   :  { %306 = vmatmul.bf16.gmra.mxu1 %v186_v16  ;;  %353 = vmatmul.bf16.gmra.mxu2 %v186_v16 }
  0xb3   :  { %v143_v17 = vpop.f32.mrf.mxu0 }
  0xb4   :  { %v144_v18 = vadd.f32 %v143_v17, %v5954_v60 }
  0xb6   :  { %v174_v21 = vmax.f32 %v144_v18, 0.0 }
  0xbb   :  { %v145_v19 = vpop.f32.mrf.mxu0 }
  0xbc   :  { %v146_v20 = vadd.f32 %v145_v19, %v5954_v60 }
  0xbe   :  { %v175_v22 = vmax.f32 %v146_v20, 0.0 }
  0xc0   :  { %v187_v23 = vpack.c.bf16 %v175_v22, %v174_v21 }
  0xc2   :  { %311 = vmatmul.bf16.gmra.mxu1 %v187_v23  ;;  %358 = vmatmul.bf16.gmra.mxu2 %v187_v23 }
  0xc3   :  { %v148_v24 = vpop.f32.mrf.mxu0 }
  0xc4   :  { %v149_v25 = vadd.f32 %v148_v24, %v5954_v60 }
  0xc6   :  { %v176_v28 = vmax.f32 %v149_v25, 0.0 }
  0xcb   :  { %v150_v26 = vpop.f32.mrf.mxu0 }
  0xcc   :  { %v151_v27 = vadd.f32 %v150_v26, %v5954_v60 }
  0xce   :  { %v177_v29 = vmax.f32 %v151_v27, 0.0 }
  0xd0   :  { %v188_v30 = vpack.c.bf16 %v177_v29, %v176_v28 }
  0xd2   :  { %316 = vmatmul.bf16.gmra.mxu1 %v188_v30  ;;  %363 = vmatmul.bf16.gmra.mxu2 %v188_v30 }
  0xd3   :  { %v153_v31 = vpop.f32.mrf.mxu0 }
  0xd4   :  { %v154_v32 = vadd.f32 %v153_v31, %v5954_v60 }
  0xd6   :  { %v178_v35 = vmax.f32 %v154_v32, 0.0 }
  0xdb   :  { %v155_v33 = vpop.f32.mrf.mxu0 }
  0xdc   :  { %v156_v34 = vadd.f32 %v155_v33, %v5954_v60 }
  0xde   :  { %v179_v36 = vmax.f32 %v156_v34, 0.0 }
  0xe0   :  { %v189_v37 = vpack.c.bf16 %v179_v36, %v178_v35 }
  0xe2   :  { %321 = vmatmul.bf16.gmra.mxu1 %v189_v37  ;;  %368 = vmatmul.bf16.gmra.mxu2 %v189_v37 }
  0xe3   :  { %v158_v38 = vpop.f32.mrf.mxu0 }
  0xe4   :  { %v159_v39 = vadd.f32 %v158_v38, %v5954_v60 }
  0xe6   :  { %v180_v42 = vmax.f32 %v159_v39, 0.0 }
  0xeb   :  { %v160_v40 = vpop.f32.mrf.mxu0 }
  0xec   :  { %v161_v41 = vadd.f32 %v160_v40, %v5954_v60 }
  0xee   :  { %v181_v43 = vmax.f32 %v161_v41, 0.0 }
  0xf0   :  { %v190_v44 = vpack.c.bf16 %v181_v43, %v180_v42 }
  0xf2   :  { %326 = vmatmul.bf16.gmra.mxu1 %v190_v44  ;;  %373 = vmatmul.bf16.gmra.mxu2 %v190_v44 }
  0xf3   :  { %v163_v45 = vpop.f32.mrf.mxu0 }
  0xf4   :  { %v164_v46 = vadd.f32 %v163_v45, %v5954_v60 }
  0xf6   :  { %v182_v49 = vmax.f32 %v164_v46, 0.0 }
  0xfb   :  { %v165_v47 = vpop.f32.mrf.mxu0 }
  0xfc   :  { %v166_v48 = vadd.f32 %v165_v47, %v5954_v60 }
  0xfe   :  { %v183_v50 = vmax.f32 %v166_v48, 0.0 }
 0x100   :  { %v191_v51 = vpack.c.bf16 %v183_v50, %v182_v49 }
 0x102   :  { %331 = vmatmul.bf16.gmra.mxu1 %v191_v51  ;;  %378 = vmatmul.bf16.gmra.mxu2 %v191_v51 }
 0x10f   :  { %v5972_v52 = vpop.f32.mrf.mxu1 }
 0x110   :  { %v400_v55 = vrot.slane %v5972_v52, 1 }
 0x115   :  { %v345_v53 = vpop.f32.mrf.mxu2 }
 0x117   :  { %v5974_v54 = vpop.f32.mrf.mxu1 }
 0x118   :  { %v401_v56 = vrot.slane %v5974_v54, 1 }
 0x11a   :  { %v402_v57 = vsel %vm399_vm2, %v400_v55, %v401_v56 }
 0x11b   :  { %429 = vrot.lane.b32.xlu0 %v402_v57, %s5771_s0 }
 0x11d   :  { %v5980_v59 = vpop.f32.mrf.mxu2 }
 0x11e   :  { %v519_v0 = vrot.slane %v5980_v59, 1 }
 0x11f   :  { %v5982_v60 = vpop.f32.mrf.mxu1 }
 0x120   :  { %v403_v61 = vrot.slane %v5982_v60, 1 }
 0x122   :  { %v404_v62 = vsel %vm399_vm2, %v401_v56, %v403_v61 }
 0x123   :  { %431 = vrot.lane.b32.xlu0 %v404_v62, %s5771_s0 }
 0x125   :  { %v5987_v63 = vpop.f32.mrf.mxu2 }
 0x126   :  { %v520_v1 = vrot.slane %v5987_v63, 1 }
 0x127   :  { %v5991_v2 = vpop.f32.mrf.mxu1 }
 0x128   :  { %v405_v3 = vrot.slane %v5991_v2, 1  ;;  %v521_v4 = vsel %vm399_vm2, %v519_v0, %v520_v1 }
 0x129   :  { %548 = vrot.lane.b32.xlu1 %v521_v4, %s5771_s0 }
 0x12a   :  { %v406_v5 = vsel %vm399_vm2, %v403_v61, %v405_v3 }
 0x12b   :  { %433 = vrot.lane.b32.xlu2 %v406_v5, %s5771_s0 }
 0x12d   :  { %v5998_v6 = vpop.f32.mrf.mxu2 }
 0x12e   :  { %v522_v7 = vrot.slane %v5998_v6, 1 }
 0x12f   :  { %v6001_v8 = vpop.f32.mrf.mxu1 }
 0x130   :  { %v407_v9 = vrot.slane %v6001_v8, 1  ;;  %v523_v10 = vsel %vm399_vm2, %v520_v1, %v522_v7  ;;  %v5614_v1 = vld [vmem:[%s8773_s4 + $0x7c] sm:$0xf] }
 0x131   :  { %550 = vrot.lane.b32.xlu1 %v523_v10, %s5771_s0 }
 0x132   :  { %v408_v11 = vsel %vm399_vm2, %v405_v3, %v407_v9  ;;  %v4599_v3 = vld [vmem:[%s8773_s4 + $0x8c] sm:$0xf0] }
 0x133   :  { %435 = vrot.lane.b32.xlu2 %v408_v11, %s5771_s0  ;;  %v4602_v5 = vor.u32 %v5614_v1, %v4599_v3  ;;  %v5615_v11 = vld [vmem:[%s8773_s4 + $0x84] sm:$0xf]  ;;  %v5604_v1 = vld [vmem:[%s8773_s4 + $0x2c] sm:$0xf] }
 0x135   :  { %v6008_v12 = vpop.f32.mrf.mxu2  ;;  %850 = vmatpush.bf16.msrb.mxu0 %v4602_v5  ;;  %v5605_v5 = vld [vmem:[%s8773_s4 + $0x34] sm:$0xf] }
 0x136   :  { %v524_v13 = vrot.slane %v6008_v12, 1 }
 0x137   :  { %v6011_v14 = vpop.f32.mrf.mxu1 }
 0x138   :  { %v409_v15 = vrot.slane %v6011_v14, 1  ;;  %v525_v16 = vsel %vm399_vm2, %v522_v7, %v524_v13 }
 0x139   :  { %552 = vrot.lane.b32.xlu0 %v525_v16, %s5771_s0 }
 0x13a   :  { %v410_v17 = vsel %vm399_vm2, %v407_v9, %v409_v15 }
 0x13b   :  { %437 = vrot.lane.b32.xlu2 %v410_v17, %s5771_s0 }
 0x13d   :  { %v6018_v18 = vpop.f32.mrf.mxu2 }
 0x13e   :  { %v526_v19 = vrot.slane %v6018_v18, 1 }
 0x13f   :  { %v6021_v20 = vpop.f32.mrf.mxu1 }
 0x140   :  { %v411_v21 = vrot.slane %v6021_v20, 1  ;;  %v527_v22 = vsel %vm399_vm2, %v524_v13, %v526_v19  ;;  %v4607_v13 = vld [vmem:[%s8773_s4 + $0x94] sm:$0xf0] }
 0x141   :  { %554 = vrot.lane.b32.xlu1 %v527_v22, %s5771_s0  ;;  %v4610_v17 = vor.u32 %v5615_v11, %v4607_v13  ;;  %v5616_v22 = vld [vmem:[%s8773_s4 + $0x88] sm:$0xf0] }
 0x142   :  { %v412_v23 = vsel %vm399_vm2, %v409_v15, %v411_v21 }
 0x143   :  { %439 = vrot.lane.b32.xlu0 %v412_v23, %s5771_s0  ;;  %943 = vmatpush.bf16.msrb.mxu1 %v4610_v17  ;;  %v4613_v23 = vld [vmem:[%s8773_s4 + $0x88] sm:$0xf]  ;;  %v5608_v17 = vld [vmem:[%s8773_s4 + $0x48] sm:$0xf0] }
 0x145   :  { %v6028_v24 = vpop.f32.mrf.mxu2 }
 0x146   :  { %v528_v25 = vrot.slane %v6028_v24, 1 }
 0x147   :  { %v6031_v26 = vpop.f32.mrf.mxu1 }
 0x148   :  { %v413_v27 = vrot.slane %v6031_v26, 1  ;;  %v529_v28 = vsel %vm399_vm2, %v526_v19, %v528_v25 }
 0x149   :  { %556 = vrot.lane.b32.xlu1 %v529_v28, %s5771_s0 }
 0x14a   :  { %v414_v29 = vsel %vm399_vm2, %v411_v21, %v413_v27  ;;  %v4597_v21 = vld [vmem:[%s8773_s4 + $0x78] sm:$0xf] }
 0x14b   :  { %441 = vrot.lane.b32.xlu0 %v414_v29, %s5771_s0 }
 0x14d   :  { %v6038_v30 = vpop.f32.mrf.mxu2 }
 0x14e   :  { %v530_v31 = vrot.slane %v6038_v30, 1 }
 0x14f   :  { %v6041_v32 = vpop.f32.mrf.mxu1 }
 0x150   :  { %v415_v33 = vrot.slane %v6041_v32, 1  ;;  %v531_v34 = vsel %vm399_vm2, %v528_v25, %v530_v31  ;;  %v4598_v25 = vor.u32 %v5616_v22, %v4597_v21 }
 0x151   :  { %558 = vrot.lane.b32.xlu2 %v531_v34, %s5771_s0  ;;  %v4577_v34 = vld [vmem:[%s8773_s4 + $0x50] sm:$0xf] }
 0x152   :  { %v416_v35 = vsel %vm399_vm2, %v413_v27, %v415_v33  ;;  %v5618_v27 = vld [vmem:[%s8773_s4 + $0x98] sm:$0xf0]  ;;  %804 = vmatpush.bf16.msra.mxu3 %v4598_v25  ;;  %v5601_v25 = vld [vmem:[%s8773_s4 + $0x10] sm:$0xf0] }
 0x153   :  { %443 = vrot.lane.b32.xlu1 %v416_v35, %s5771_s0  ;;  %v4614_v29 = vor.u32 %v5618_v27, %v4613_v23  ;;  %v5611_v35 = vld [vmem:[%s8773_s4 + $0x60] sm:$0xf0]  ;;  %v4537_v23 = vld [vmem:[%s8773_s4] sm:$0xf] }
 0x154   :  { %v5599_v27 = vld [vmem:[%s8773_s4 + $0x4] sm:$0xf] }
 0x155   :  { %v6048_v36 = vpop.f32.mrf.mxu2  ;;  %989 = vmatpush.bf16.msrb.mxu2 %v4614_v29 }
 0x156   :  { %v532_v37 = vrot.slane %v6048_v36, 1 }
 0x157   :  { %v6051_v38 = vpop.f32.mrf.mxu1 }
 0x158   :  { %v417_v39 = vrot.slane %v6051_v38, 1  ;;  %v533_v40 = vsel %vm399_vm2, %v530_v31, %v532_v37 }
 0x159   :  { %560 = vrot.lane.b32.xlu2 %v533_v40, %s5771_s0 }
 0x15a   :  { %v418_v41 = vsel %vm399_vm2, %v415_v33, %v417_v39 }
 0x15b   :  { %445 = vrot.lane.b32.xlu1 %v418_v41, %s5771_s0  ;;  %v4578_v41 = vor.u32 %v5611_v35, %v4577_v34  ;;  %v4538_v34 = vor.u32 %v5601_v25, %v4537_v23  ;;  %v4539_v35 = vld [vmem:[%s8773_s4 + $0x14] sm:$0xf0] }
 0x15d   :  { %v6058_v42 = vpop.f32.mrf.mxu2  ;;  %805 = vmatpush.bf16.msra.mxu3 %v4578_v41  ;;  %v4542_v41 = vor.u32 %v5599_v27, %v4539_v35 }
 0x15e   :  { %v534_v43 = vrot.slane %v6058_v42, 1 }
 0x15f   :  { %v6061_v44 = vpop.f32.mrf.mxu1 }
 0x160   :  { %v419_v45 = vrot.slane %v6061_v44, 1  ;;  %v535_v46 = vsel %vm399_vm2, %v532_v37, %v534_v43  ;;  %v5609_v37 = vld [vmem:[%s8773_s4 + $0x54] sm:$0xf] }
 0x161   :  { %562 = vrot.lane.b32.xlu0 %v535_v46, %s5771_s0 }
 0x162   :  { %v420_v47 = vsel %vm399_vm2, %v417_v39, %v419_v45 }
 0x163   :  { %447 = vrot.lane.b32.xlu2 %v420_v47, %s5771_s0  ;;  %v4587_v47 = vld [vmem:[%s8773_s4 + $0x6c] sm:$0xf0] }
 0x165   :  { %v6068_v48 = vpop.f32.mrf.mxu2 }
 0x166   :  { %v536_v49 = vrot.slane %v6068_v48, 1 }
 0x167   :  { %v6071_v50 = vpop.f32.mrf.mxu1 }
 0x168   :  { %v421_v51 = vrot.slane %v6071_v50, 1  ;;  %v537_v53 = vsel %vm399_vm2, %v534_v43, %v536_v49  ;;  %v4579_v43 = vld [vmem:[%s8773_s4 + $0x64] sm:$0xf0] }
 0x169   :  { %564 = vrot.lane.b32.xlu0 %v537_v53, %s5771_s0  ;;  %v4582_v46 = vor.u32 %v5609_v37, %v4579_v43  ;;  %v5600_v37 = vld [vmem:[%s8773_s4 + $0xc] sm:$0xf] }
 0x16a   :  { %v422_v55 = vsel %vm399_vm2, %v419_v45, %v421_v51  ;;  %v5610_v45 = vld [vmem:[%s8773_s4 + $0x5c] sm:$0xf] }
 0x16b   :  { %449 = vrot.lane.b32.xlu2 %v422_v55, %s5771_s0  ;;  %v4590_v55 = vor.u32 %v5610_v45, %v4587_v47  ;;  %851 = vmatpush.bf16.msrb.mxu0 %v4582_v46  ;;  %v5603_v45 = vld [vmem:[%s8773_s4 + $0x20] sm:$0xf0] }
 0x16d   :  { %v6078_v56 = vpop.f32.mrf.mxu2  ;;  %944 = vmatpush.bf16.msrb.mxu1 %v4590_v55  ;;  %v5617_v55 = vld [vmem:[%s8773_s4 + $0x90] sm:$0xf0] }
 0x16e   :  { %v538_v57 = vrot.slane %v6078_v56, 1 }
 0x16f   :  { %v6081_v61 = vpop.f32.mrf.mxu1 }
 0x170   :  { %v423_v62 = vrot.slane %v6081_v61, 1  ;;  %v539_v0 = vsel %vm399_vm2, %v536_v49, %v538_v57  ;;  %v4593_v49 = vld [vmem:[%s8773_s4 + $0x60] sm:$0xf] }
 0x171   :  { %566 = vrot.lane.b32.xlu1 %v539_v0, %s5771_s0  ;;  %v5606_v0 = vld [vmem:[%s8773_s4 + $0x38] sm:$0xf0] }
 0x172   :  { %v424_v4 = vsel %vm399_vm2, %v421_v51, %v423_v62  ;;  %v5613_v51 = vld [vmem:[%s8773_s4 + $0x70] sm:$0xf0] }
 0x173   :  { %451 = vrot.lane.b32.xlu0 %v424_v4, %s5771_s0  ;;  %v4559_v4 = vld [vmem:[%s8773_s4 + $0x3c] sm:$0xf0] }
 0x174   :  { %v4562_v13 = vor.u32 %v5604_v1, %v4559_v4 }
 0x175   :  { %v6094_v7 = vpop.f32.mrf.mxu2 }
 0x176   :  { %v540_v9 = vrot.slane %v6094_v7, 1  ;;  %852 = vmatpush.bf16.msrb.mxu0 %v4562_v13 }
 0x177   :  { %v6097_v10 = vpop.f32.mrf.mxu1 }
 0x178   :  { %v425_v15 = vrot.slane %v6097_v10, 1  ;;  %v541_v16 = vsel %vm399_vm2, %v538_v57, %v540_v9  ;;  %v4594_v57 = vor.u32 %v5613_v51, %v4593_v49 }
 0x179   :  { %568 = vrot.lane.b32.xlu1 %v541_v16, %s5771_s0  ;;  %v4573_v16 = vld [vmem:[%s8773_s4 + $0x38] sm:$0xf] }
 0x17a   :  { %v426_v19 = vsel %vm399_vm2, %v423_v62, %v425_v15  ;;  %v4557_v62 = vld [vmem:[%s8773_s4 + $0x28] sm:$0xf]  ;;  %990 = vmatpush.bf16.msrb.mxu2 %v4594_v57  ;;  %v4574_v21 = vor.u32 %v5608_v17, %v4573_v16  ;;  %853 = vmatpush.bf16.msrb.mxu0 %v4542_v41 }
 0x17b   :  { %453 = vrot.lane.b32.xlu0 %v426_v19, %s5771_s0  ;;  %v4558_v3 = vor.u32 %v5606_v0, %v4557_v62 }
 0x17d   :  { %v6122_v28 = vpop.f32.mrf.mxu2  ;;  %806 = vmatpush.bf16.msra.mxu3 %v4558_v3 }
 0x17e   :  { %v542_v31 = vrot.slane %v6122_v28, 1  ;;  %991 = vmatpush.bf16.msrb.mxu2 %v4574_v21 }
 0x17f   :  { %v6125_v33 = vpop.f32.mrf.mxu1 }
 0x180   :  { %v427_v39 = vrot.slane %v6125_v33, 1  ;;  %v543_v40 = vsel %vm399_vm2, %v540_v9, %v542_v31  ;;  %v4567_v9 = vld [vmem:[%s8773_s4 + $0x44] sm:$0xf0] }
 0x181   :  { %570 = vrot.lane.b32.xlu2 %v543_v40, %s5771_s0  ;;  %v4547_v40 = vld [vmem:[%s8773_s4 + $0x1c] sm:$0xf0]  ;;  %807 = vmatpush.bf16.msra.mxu3 %v4538_v34 }
 0x182   :  { %v428_v53 = vsel %vm399_vm2, %v425_v15, %v427_v39  ;;  %v4570_v15 = vor.u32 %v5605_v5, %v4567_v9  ;;  %v4550_v43 = vor.u32 %v5600_v37, %v4547_v40  ;;  %v6226_v5 = vperm.slane %v5951_v58, 1  ;;  %v4585_v58 = vld [vmem:[%s8773_s4 + $0x58] sm:$0xf] }
 0x183   :  { %455 = vrot.lane.b32.xlu1 %v428_v53, %s5771_s0  ;;  %v4605_v53 = vld [vmem:[%s8773_s4 + $0x80] sm:$0xf] }
 0x184   :  { %945 = vmatpush.bf16.msrb.mxu1 %v4570_v15 }
 0x185   :  { %v6174_v11 = vpop.f32.mrf.mxu2  ;;  %v434_v13 = vpop.permute.xlu2 %433 }
 0x186   :  { %v544_v19 = vrot.slane %v6174_v11, 1 }
 0x187   :  { %v334_v22 = vpop.f32.mrf.mxu1 }
 0x188   :  { %v545_v29 = vsel %vm399_vm2, %v542_v31, %v544_v19  ;;  %v4553_v31 = vld [vmem:[%s8773_s4 + $0x10] sm:$0xf]  ;;  %946 = vmatpush.bf16.msrb.mxu1 %v4550_v43 }
 0x189   :  { %572 = vrot.lane.b32.xlu2 %v545_v29, %s5771_s0  ;;  %v4554_v46 = vor.u32 %v5603_v45, %v4553_v31 }
 0x18b   :  { %457 = vrot.lane.b32.xlu1 %v427_v39, %s5771_s0  ;;  %992 = vmatpush.bf16.msrb.mxu2 %v4554_v46  ;;  %v4606_v39 = vor.u32 %v5617_v55, %v4605_v53 }
 0x18d   :  { %v6210_v47 = vpop.f32.mrf.mxu2  ;;  %v430_v57 = vpop.permute.xlu0 %429  ;;  %897 = vmatpush.bf16.msrb.mxu3 %v4606_v39 }
 0x18e   :  { %v546_v49 = vrot.slane %v6210_v47, 1  ;;  %v474_v62 = vadd.f32 %v430_v57, %v5972_v52 }
 0x190   :  { %v547_v51 = vsel %vm399_vm2, %v544_v19, %v546_v49  ;;  %v489_v4 = vadd.f32 %v474_v62, %v5980_v59  ;;  %v436_v59 = vpop.permute.xlu2 %435 }
 0x191   :  { %576 = vrot.lane.b32.xlu2 %v546_v49, %s5771_s0  ;;  %574 = vrot.lane.b32.xlu0 %v547_v51, %s5771_s0  ;;  %v477_v27 = vadd.f32 %v436_v59, %v5991_v2 }
 0x193   :  { %v492_v35 = vadd.f32 %v477_v27, %v6008_v12 }
 0x195   :  { %v432_v0 = vpop.permute.xlu0 %431 }
 0x196   :  { %v475_v3 = vadd.f32 %v432_v0, %v5974_v54  ;;  %v476_v54 = vadd.f32 %v434_v13, %v5982_v60 }
 0x198   :  { %v490_v15 = vadd.f32 %v475_v3, %v5987_v63  ;;  %v5612_v63 = vld [vmem:[%s8773_s4 + $0x68] sm:$0xf0]  ;;  %v491_v29 = vadd.f32 %v476_v54, %v5998_v6  ;;  %v438_v43 = vpop.permute.xlu2 %437 }
 0x199   :  { %v4586_v60 = vor.u32 %v5612_v63, %v4585_v58  ;;  %v478_v46 = vadd.f32 %v438_v43, %v6001_v8 }
 0x19b   :  { %v549_v1 = vpop.permute.xlu1 %548  ;;  %898 = vmatpush.bf16.msrb.mxu3 %v4586_v60  ;;  %v493_v12 = vadd.f32 %v478_v46, %v6018_v18 }
 0x19c   :  { %v593_v9 = vadd.f32 %v549_v1, %v489_v4 }
 0x19e   :  { %v609_v17 = vadd.f32 %v6226_v5, %v593_v9 }
 0x1a0   :  { %v624_v52 = vmax.f32 %v609_v17, 0.0  ;;  %v5607_v17 = vld [vmem:[%s8773_s4 + $0x40] sm:$0xf0] }
 0x1a3   :  { %v551_v16 = vpop.permute.xlu1 %550 }
 0x1a4   :  { %v594_v19 = vadd.f32 %v551_v16, %v490_v15 }
 0x1a6   :  { %v610_v21 = vadd.f32 %v6226_v5, %v594_v19 }
 0x1a8   :  { %v625_v22 = vmax.f32 %v610_v21, 0.0 }
 0x1aa   :  { %v6232_v23 = vpack.c.bf16 %v625_v22, %v624_v52 }
 0x1ab   :  { %v553_v25 = vpop.permute.xlu0 %552 }
 0x1ac   :  { %4615 = vmatmul.msk.bf16.vlgmr.msra.gmra.mxu3 %vm775_vm3, %v6232_v23  ;;  %4623 = vmatmul.msk.bf16.vlgmr.msrb.gmra.mxu0 %vm775_vm3, %v6232_v23  ;;  %v595_v34 = vadd.f32 %v553_v25, %v491_v29 }
 0x1ad   :  { %4639 = vmatmul.msk.bf16.vlgmr.msrb.gmra.mxu1 %vm775_vm3, %v6232_v23  ;;  %4647 = vmatmul.msk.bf16.vlgmr.msrb.gmra.mxu2 %vm775_vm3, %v6232_v23 }
 0x1ae   :  { %v611_v40 = vadd.f32 %v6226_v5, %v595_v34 }
 0x1b0   :  { %v626_v49 = vmax.f32 %v611_v40, 0.0 }
 0x1b3   :  { %v555_v37 = vpop.permute.xlu1 %554 }
 0x1b4   :  { %v596_v41 = vadd.f32 %v555_v37, %v492_v35 }
 0x1b5   :  { %v440_v31 = vpop.permute.xlu0 %439 }
 0x1b6   :  { %v612_v45 = vadd.f32 %v6226_v5, %v596_v41  ;;  %v479_v2 = vadd.f32 %v440_v31, %v6011_v14  ;;  %v559_v14 = vpop.permute.xlu2 %558 }
 0x1b8   :  { %v627_v51 = vmax.f32 %v612_v45, 0.0  ;;  %v494_v55 = vadd.f32 %v479_v2, %v6028_v24 }
 0x1ba   :  { %v6255_v53 = vpack.c.bf16 %v627_v51, %v626_v49  ;;  %v598_v57 = vadd.f32 %v559_v14, %v494_v55 }
 0x1bb   :  { %v557_v6 = vpop.permute.xlu1 %556 }
 0x1bc   :  { %4616 = vmatmul.msk.bf16.gmra.mxu3 %vm775_vm3, %v6255_v53  ;;  %4624 = vmatmul.msk.bf16.gmra.mxu0 %vm775_vm3, %v6255_v53  ;;  %v597_v8 = vadd.f32 %v557_v6, %v493_v12  ;;  %v614_v24 = vadd.f32 %v6226_v5, %v598_v57 }
 0x1bd   :  { %4640 = vmatmul.msk.bf16.gmra.mxu1 %vm775_vm3, %v6255_v53  ;;  %4648 = vmatmul.msk.bf16.gmra.mxu2 %vm775_vm3, %v6255_v53  ;;  %v442_v18 = vpop.permute.xlu0 %441 }
 0x1be   :  { %v613_v39 = vadd.f32 %v6226_v5, %v597_v8  ;;  %v629_v0 = vmax.f32 %v614_v24, 0.0  ;;  %v480_v1 = vadd.f32 %v442_v18, %v6021_v20  ;;  %v561_v20 = vpop.permute.xlu2 %560 }
 0x1c0   :  { %v628_v62 = vmax.f32 %v613_v39, 0.0  ;;  %v495_v9 = vadd.f32 %v480_v1, %v6038_v30  ;;  %v4565_v30 = vld [vmem:[%s8773_s4 + $0x30] sm:$0xf] }
 0x1c1   :  { %v4566_v21 = vor.u32 %v5607_v17, %v4565_v30 }
 0x1c2   :  { %v6270_v3 = vpack.c.bf16 %v629_v0, %v628_v62  ;;  %v599_v15 = vadd.f32 %v561_v20, %v495_v9 }
 0x1c3   :  { %899 = vmatpush.bf16.msrb.mxu3 %v4566_v21 }
 0x1c4   :  { %v615_v52 = vadd.f32 %v6226_v5, %v599_v15 }
 0x1c5   :  { %v444_v4 = vpop.permute.xlu1 %443 }
 0x1c6   :  { %v481_v13 = vadd.f32 %v444_v4, %v6031_v26  ;;  %v630_v59 = vmax.f32 %v615_v52, 0.0  ;;  %v448_v25 = vpop.permute.xlu2 %447 }
 0x1c7   :  { %v483_v27 = vadd.f32 %v448_v25, %v6051_v38 }
 0x1c8   :  { %v496_v16 = vadd.f32 %v481_v13, %v6048_v36 }
 0x1c9   :  { %v498_v34 = vadd.f32 %v483_v27, %v6068_v48 }
 0x1cc   :  { %4617 = vmatmul.msk.bf16.gmra.mxu3 %vm775_vm3, %v6270_v3  ;;  %4625 = vmatmul.msk.bf16.gmra.mxu0 %vm775_vm3, %v6270_v3 }
 0x1cd   :  { %4641 = vmatmul.msk.bf16.gmra.mxu1 %vm775_vm3, %v6270_v3  ;;  %4649 = vmatmul.msk.bf16.gmra.mxu2 %vm775_vm3, %v6270_v3  ;;  %v446_v54 = vpop.permute.xlu1 %445 }
 0x1ce   :  { %v482_v36 = vadd.f32 %v446_v54, %v6041_v32  ;;  %v450_v41 = vpop.permute.xlu2 %449 }
 0x1cf   :  { %v484_v45 = vadd.f32 %v450_v41, %v6061_v44  ;;  %v4545_v44 = vld [vmem:[%s8773_s4 + $0x8] sm:$0xf] }
 0x1d0   :  { %v497_v32 = vadd.f32 %v482_v36, %v6058_v42 }
 0x1d1   :  { %v499_v48 = vadd.f32 %v484_v45, %v6078_v56 }
 0x1d3   :  { %v563_v19 = vpop.permute.xlu0 %562 }
 0x1d4   :  { %v600_v22 = vadd.f32 %v563_v19, %v496_v16 }
 0x1d6   :  { %v616_v26 = vadd.f32 %v6226_v5, %v600_v22 }
 0x1d8   :  { %v631_v58 = vmax.f32 %v616_v26, 0.0 }
 0x1da   :  { %v6292_v63 = vpack.c.bf16 %v631_v58, %v630_v59 }
 0x1db   :  { %v565_v60 = vpop.permute.xlu0 %564  ;;  %v571_v6 = vpop.permute.xlu2 %570 }
 0x1dc   :  { %4618 = vmatmul.msk.bf16.gmra.mxu3 %vm775_vm3, %v6292_v63  ;;  %4626 = vmatmul.msk.bf16.gmra.mxu0 %vm775_vm3, %v6292_v63  ;;  %v601_v29 = vadd.f32 %v565_v60, %v497_v32 }
 0x1dd   :  { %4642 = vmatmul.msk.bf16.gmra.mxu1 %vm775_vm3, %v6292_v63  ;;  %4650 = vmatmul.msk.bf16.gmra.mxu2 %vm775_vm3, %v6292_v63 }
 0x1de   :  { %v617_v37 = vadd.f32 %v6226_v5, %v601_v29 }
 0x1e0   :  { %v632_v46 = vmax.f32 %v617_v37, 0.0 }
 0x1e3   :  { %v567_v35 = vpop.permute.xlu1 %566 }
 0x1e4   :  { %v602_v40 = vadd.f32 %v567_v35, %v498_v34 }
 0x1e5   :  { %v452_v43 = vpop.permute.xlu0 %451 }
 0x1e6   :  { %v618_v31 = vadd.f32 %v6226_v5, %v602_v40  ;;  %v485_v51 = vadd.f32 %v452_v43, %v6071_v50  ;;  %v5602_v50 = vld [vmem:[%s8773_s4 + $0x18] sm:$0xf0] }
 0x1e7   :  { %v4546_v56 = vor.u32 %v5602_v50, %v4545_v44 }
 0x1e8   :  { %v633_v49 = vmax.f32 %v618_v31, 0.0  ;;  %v500_v2 = vadd.f32 %v485_v51, %v6094_v7 }
 0x1e9   :  { %900 = vmatpush.bf16.msrb.mxu3 %v4546_v56 }
 0x1ea   :  { %v6309_v38 = vpack.c.bf16 %v633_v49, %v632_v46  ;;  %v604_v55 = vadd.f32 %v571_v6, %v500_v2 }
 0x1eb   :  { %v569_v42 = vpop.permute.xlu1 %568 }
 0x1ec   :  { %4619 = vmatmul.msk.bf16.gmra.mxu3 %vm775_vm3, %v6309_v38  ;;  %4627 = vmatmul.msk.bf16.gmra.mxu0 %vm775_vm3, %v6309_v38  ;;  %v603_v7 = vadd.f32 %v569_v42, %v499_v48  ;;  %v620_v8 = vadd.f32 %v6226_v5, %v604_v55 }
 0x1ed   :  { %4643 = vmatmul.msk.bf16.gmra.mxu1 %vm775_vm3, %v6309_v38  ;;  %4651 = vmatmul.msk.bf16.gmra.mxu2 %vm775_vm3, %v6309_v38  ;;  %v454_v14 = vpop.permute.xlu0 %453 }
 0x1ee   :  { %v619_v12 = vadd.f32 %v6226_v5, %v603_v7  ;;  %v635_v39 = vmax.f32 %v620_v8, 0.0  ;;  %v486_v24 = vadd.f32 %v454_v14, %v6081_v61  ;;  %v573_v61 = vpop.permute.xlu2 %572 }
 0x1f0   :  { %v634_v57 = vmax.f32 %v619_v12, 0.0  ;;  %v501_v0 = vadd.f32 %v486_v24, %v6122_v28 }
 0x1f2   :  { %v6330_v62 = vpack.c.bf16 %v635_v39, %v634_v57  ;;  %v605_v4 = vadd.f32 %v573_v61, %v501_v0 }
 0x1f4   :  { %v621_v20 = vadd.f32 %v6226_v5, %v605_v4 }
 0x1f5   :  { %v456_v18 = vpop.permute.xlu1 %455 }
 0x1f6   :  { %v487_v1 = vadd.f32 %v456_v18, %v6097_v10  ;;  %v636_v17 = vmax.f32 %v621_v20, 0.0  ;;  %v577_v10 = vpop.permute.xlu2 %576 }
 0x1f8   :  { %v502_v9 = vadd.f32 %v487_v1, %v6174_v11 }
 0x1fc   :  { %4620 = vmatmul.msk.bf16.gmra.mxu3 %vm775_vm3, %v6330_v62  ;;  %4628 = vmatmul.msk.bf16.gmra.mxu0 %vm775_vm3, %v6330_v62 }
 0x1fd   :  { %4644 = vmatmul.msk.bf16.gmra.mxu1 %vm775_vm3, %v6330_v62  ;;  %4652 = vmatmul.msk.bf16.gmra.mxu2 %vm775_vm3, %v6330_v62  ;;  %v458_v13 = vpop.permute.xlu1 %457 }
 0x1fe   :  { %v488_v16 = vadd.f32 %v458_v13, %v6125_v33 }
 0x200   :  { %v503_v21 = vadd.f32 %v488_v16, %v6210_v47 }
 0x202   :  { %v607_v33 = vadd.f32 %v577_v10, %v503_v21 }
 0x203   :  { %v575_v28 = vpop.permute.xlu0 %574 }
 0x204   :  { %v606_v15 = vadd.f32 %v575_v28, %v502_v9  ;;  %v623_v11 = vadd.f32 %v6226_v5, %v607_v33 }
 0x206   :  { %v622_v30 = vadd.f32 %v6226_v5, %v606_v15  ;;  %v638_v22 = vmax.f32 %v623_v11, 0.0 }
 0x208   :  { %v637_v19 = vmax.f32 %v622_v30, 0.0  ;;  %v6358_v47 = vpack.c.bf16 %v638_v22, %v638_v22 }
 0x20a   :  { %v6347_v52 = vpack.c.bf16 %v637_v19, %v636_v17 }
 0x20c   :  { %4621 = vmatmul.msk.bf16.gmra.mxu3 %vm775_vm3, %v6347_v52  ;;  %4629 = vmatmul.msk.bf16.gmra.mxu0 %vm775_vm3, %v6347_v52 }
 0x20d   :  { %4645 = vmatmul.msk.bf16.gmra.mxu1 %vm775_vm3, %v6347_v52  ;;  %4653 = vmatmul.msk.bf16.gmra.mxu2 %vm775_vm3, %v6347_v52 }
 0x21c   :  { %4622 = vmatmul.msk.bf16.gmra.mxu3 %vm775_vm3, %v6358_v47  ;;  %4630 = vmatmul.msk.bf16.gmra.mxu0 %vm775_vm3, %v6358_v47 }
 0x21d   :  { %4646 = vmatmul.msk.bf16.gmra.mxu1 %vm775_vm3, %v6358_v47  ;;  %4654 = vmatmul.msk.bf16.gmra.mxu2 %vm775_vm3, %v6358_v47 }
 0x229   :  { %v6368_v26 = vpop.f32.mrf.mxu0 }
 0x22a   :  { %v948_v54 = vpop.f32.mrf.mxu1 }
 0x22c   :  { %4631 = vmatmul.msk.bf16.vlgmr.msrb.gmra.mxu3 %vm775_vm3, %v6232_v23 }
 0x22f   :  { %v6372_v5 = vpop.f32.mrf.mxu3 }
 0x230   :  { %v994_v59 = vpop.f32.mrf.mxu2  ;;  %v1044_v29 = vrot.slane %v6372_v5, 1 }
 0x231   :  { %v6374_v58 = vpop.f32.mrf.mxu0 }
 0x232   :  { %v949_v36 = vpop.f32.mrf.mxu1  ;;  %1187 = vrot.lane.b32.xlu2 %v6374_v58, %s5771_s0 }
 0x237   :  { %v6378_v25 = vpop.f32.mrf.mxu3 }
 0x238   :  { %v995_v60 = vpop.f32.mrf.mxu2  ;;  %v1045_v23 = vrot.slane %v6378_v25, 1 }
 0x239   :  { %v6380_v27 = vpop.f32.mrf.mxu0 }
 0x23a   :  { %v6382_v32 = vpop.f32.mrf.mxu1  ;;  %1189 = vrot.lane.b32.xlu0 %v6380_v27, %s5771_s0  ;;  %v1046_v40 = vsel %vm399_vm2, %v1044_v29, %v1045_v23 }
 0x23b   :  { %v1406_v45 = vrot.slane %v6382_v32, 1 }
 0x23c   :  { %4632 = vmatmul.msk.bf16.gmra.mxu3 %vm775_vm3, %v6255_v53 }
 0x23f   :  { %v6390_v34 = vpop.f32.mrf.mxu3 }
 0x240   :  { %v6392_v35 = vpop.f32.mrf.mxu2  ;;  %v1047_v53 = vrot.slane %v6390_v34, 1 }
 0x241   :  { %v6394_v37 = vpop.f32.mrf.mxu0 }
 0x242   :  { %v6397_v41 = vpop.f32.mrf.mxu1  ;;  %1069 = vrot.lane.b32.xlu0 %v1046_v40, %s5771_s0  ;;  %1191 = vrot.lane.b32.xlu1 %v6394_v37, %s5771_s0  ;;  %v1048_v51 = vsel %vm399_vm2, %v1045_v23, %v1047_v53 }
 0x243   :  { %v1407_v43 = vrot.slane %v6397_v41, 1 }
 0x245   :  { %v1408_v2 = vsel %vm399_vm2, %v1406_v45, %v1407_v43 }
 0x247   :  { %v6404_v31 = vpop.f32.mrf.mxu3 }
 0x248   :  { %v6407_v46 = vpop.f32.mrf.mxu2  ;;  %v1049_v48 = vrot.slane %v6404_v31, 1 }
 0x249   :  { %v6409_v49 = vpop.f32.mrf.mxu0 }
 0x24a   :  { %v6412_v42 = vpop.f32.mrf.mxu1  ;;  %1193 = vrot.lane.b32.xlu2 %v6409_v49, %s5771_s0  ;;  %1071 = vrot.lane.b32.xlu1 %v1048_v51, %s5771_s0  ;;  %v1050_v55 = vsel %vm399_vm2, %v1047_v53, %v1049_v48 }
 0x24b   :  { %1431 = vrot.lane.b32.xlu0 %v1408_v2, %s5771_s0  ;;  %v1409_v44 = vrot.slane %v6412_v42, 1 }
 0x24c   :  { %4633 = vmatmul.msk.bf16.gmra.mxu3 %vm775_vm3, %v6270_v3 }
 0x24d   :  { %v1410_v12 = vsel %vm399_vm2, %v1407_v43, %v1409_v44 }
 0x24f   :  { %v6423_v50 = vpop.f32.mrf.mxu3 }
 0x250   :  { %v1051_v56 = vrot.slane %v6423_v50, 1  ;;  %v6426_v7 = vpop.f32.mrf.mxu2 }
 0x251   :  { %v6428_v6 = vpop.f32.mrf.mxu0 }
 0x252   :  { %v6432_v8 = vpop.f32.mrf.mxu1  ;;  %1073 = vrot.lane.b32.xlu2 %v1050_v55, %s5771_s0  ;;  %1433 = vrot.lane.b32.xlu1 %v1410_v12, %s5771_s0  ;;  %v1052_v3 = vsel %vm399_vm2, %v1049_v48, %v1051_v56 }
 0x253   :  { %8785 = vst [vmem:[#allocation2_spill] sm:$0xff] %v6432_v8  ;;  %1075 = vrot.lane.b32.xlu0 %v1052_v3, %s5771_s0  ;;  %v1411_v14 = vrot.slane %v6432_v8, 1 }
 0x255   :  { %v1412_v0 = vsel %vm399_vm2, %v1409_v44, %v1411_v14 }
 0x257   :  { %v6439_v57 = vpop.f32.mrf.mxu3 }
 0x258   :  { %v8779_v39 = vrot.slane %v6439_v57, 1  ;;  %v6442_v24 = vpop.f32.mrf.mxu2 }
 0x259   :  { %v6444_v18 = vpop.f32.mrf.mxu0 }
 0x25a   :  { %v6447_v1 = vpop.f32.mrf.mxu1  ;;  %1435 = vrot.lane.b32.xlu2 %v1412_v0, %s5771_s0  ;;  %v1054_v61 = vsel %vm399_vm2, %v1051_v56, %v8779_v39 }
 0x25b   :  { %v8778_v4 = vrot.slane %v6447_v1, 1  ;;  %1077 = vrot.lane.b32.xlu1 %v1054_v61, %s5771_s0 }
 0x25c   :  { %4634 = vmatmul.msk.bf16.gmra.mxu3 %vm775_vm3, %v6292_v63 }
 0x25d   :  { %v1414_v9 = vsel %vm399_vm2, %v1411_v14, %v8778_v4 }
 0x25e   :  { %1437 = vrot.lane.b32.xlu0 %v1414_v9, %s5771_s0  ;;  %v4749_v9 = vld [vmem:[%s8773_s4 + $0x120] sm:$0xf] }
 0x25f   :  { %v6461_v13 = vpop.f32.mrf.mxu3 }
 0x260   :  { %v6463_v28 = vpop.f32.mrf.mxu2 }
 0x261   :  { %8786 = vst [vmem:[#allocation3_spill] sm:$0xff] %v6463_v28  ;;  %v6465_v20 = vpop.f32.mrf.mxu0 }
 0x262   :  { %v6467_v15 = vpop.f32.mrf.mxu1 }
 0x266   :  { %1195 = vrot.lane.b32.xlu0 %v6428_v6, %s5771_s0 }
 0x267   :  { %v6471_v16 = vpop.f32.mrf.mxu3 }
 0x268   :  { %v6473_v63 = vpop.f32.mrf.mxu2 }
 0x269   :  { %8787 = vst [vmem:[#allocation4_spill] sm:$0xff] %v6473_v63  ;;  %v6475_v30 = vpop.f32.mrf.mxu0 }
 0x26a   :  { %v6477_v17 = vpop.f32.mrf.mxu1 }
 0x26c   :  { %4635 = vmatmul.msk.bf16.gmra.mxu3 %vm775_vm3, %v6309_v38 }
 0x26f   :  { %v6481_v19 = vpop.f32.mrf.mxu3 }
 0x270   :  { %v6483_v21 = vpop.f32.mrf.mxu2 }
 0x271   :  { %8788 = vst [vmem:[#allocation5_spill] sm:$0xff] %v6483_v21  ;;  %v6485_v10 = vpop.f32.mrf.mxu0 }
 0x272   :  { %v6487_v33 = vpop.f32.mrf.mxu1 }
 0x277   :  { %v6489_v11 = vpop.f32.mrf.mxu3 }
 0x278   :  { %v6491_v22 = vpop.f32.mrf.mxu2 }
 0x279   :  { %8789 = vst [vmem:[#allocation6_spill] sm:$0xff] %v6491_v22  ;;  %v6493_v54 = vpop.f32.mrf.mxu0 }
 0x27a   :  { %v6495_v59 = vpop.f32.mrf.mxu1 }
 0x27c   :  { %4636 = vmatmul.msk.bf16.gmra.mxu3 %vm775_vm3, %v6330_v62 }
 0x27f   :  { %v6499_v38 = vpop.f32.mrf.mxu3 }
 0x280   :  { %v6501_v36 = vpop.f32.mrf.mxu2 }
 0x281   :  { %8790 = vst [vmem:[#allocation7_spill] sm:$0xff] %v6501_v36  ;;  %v6503_v60 = vpop.f32.mrf.mxu0 }
 0x282   :  { %v6505_v23 = vpop.f32.mrf.mxu1 }
 0x287   :  { %v6507_v29 = vpop.f32.mrf.mxu3 }
 0x288   :  { %v6509_v40 = vpop.f32.mrf.mxu2 }
 0x289   :  { %8791 = vst [vmem:[#allocation8_spill] sm:$0xff] %v6509_v40  ;;  %v6511_v53 = vpop.f32.mrf.mxu0 }
 0x28a   :  { %v6513_v43 = vpop.f32.mrf.mxu1 }
 0x28c   :  { %4637 = vmatmul.msk.bf16.gmra.mxu3 %vm775_vm3, %v6347_v52 }
 0x28f   :  { %v6517_v62 = vpop.f32.mrf.mxu3 }
 0x290   :  { %8792 = vst [vmem:[#allocation9_spill] sm:$0xff] %v6517_v62  ;;  %v6519_v45 = vpop.f32.mrf.mxu2 }
 0x291   :  { %8793 = vst [vmem:[#allocation10_spill] sm:$0xff] %v6519_v45  ;;  %v6521_v51 = vpop.f32.mrf.mxu0 }
 0x292   :  { %v6523_v2 = vpop.f32.mrf.mxu1 }
 0x297   :  { %v841_v48 = vpop.f32.mrf.mxu3 }
 0x298   :  { %v6525_v44 = vpop.f32.mrf.mxu2  ;;  %v5637_v48 = vld [vmem:[%s8773_s4 + $0x130] sm:$0xf0] }
 0x299   :  { %8794 = vst [vmem:[#allocation11_spill] sm:$0xff] %v6525_v44  ;;  %v890_v56 = vpop.f32.mrf.mxu0  ;;  %v4750_v4 = vor.u32 %v5637_v48, %v4749_v9 }
 0x29a   :  { %v6527_v55 = vpop.f32.mrf.mxu1 }
 0x29b   :  { %1818 = vmatpush.bf16.msra.mxu1 %v4750_v4  ;;  %v5636_v4 = vld [vmem:[%s8773_s4 + $0x128] sm:$0xf0] }
 0x29c   :  { %4638 = vmatmul.msk.bf16.gmra.mxu3 %vm775_vm3, %v6358_v47  ;;  %v5634_v47 = vld [vmem:[%s8773_s4 + $0x11c] sm:$0xf] }
 0x29f   :  { %v843_v12 = vpop.f32.mrf.mxu3 }
 0x2a0   :  { %v6531_v3 = vpop.f32.mrf.mxu2  ;;  %v4743_v12 = vld [vmem:[%s8773_s4 + $0x12c] sm:$0xf0] }
 0x2a1   :  { %8795 = vst [vmem:[#allocation12_spill] sm:$0xff] %v6531_v3  ;;  %v891_v52 = vpop.f32.mrf.mxu0  ;;  %v1188_v3 = vpop.permute.xlu2 %1187 }
 0x2a2   :  { %v983_v14 = vpop.f32.mrf.mxu1  ;;  %v5635_v52 = vld [vmem:[%s8773_s4 + $0x124] sm:$0xf] }
 0x2a3   :  { %v4746_v14 = vor.u32 %v5634_v47, %v4743_v12  ;;  %v1136_v12 = vrot.slane %v6374_v58, 2 }
 0x2a5   :  { %1776 = vmatpush.bf16.msra.mxu3 %v4746_v14  ;;  %v1135_v14 = vrot.slane %v6368_v26, 2 }
 0x2a7   :  { %v844_v0 = vpop.f32.mrf.mxu3 }
 0x2a8   :  { %v1029_v61 = vpop.f32.mrf.mxu2  ;;  %v4751_v0 = vld [vmem:[%s8773_s4 + $0x134] sm:$0xf0] }
 0x2a9   :  { %v4754_v61 = vor.u32 %v5635_v52, %v4751_v0  ;;  %v1137_v0 = vsel %vm1134_vm4, %v1135_v14, %v1136_v12  ;;  %v6561_v40 = vpop.permute.xlu2 %1193 }
 0x2ab   :  { %1859 = vmatpush.bf16.msra.mxu2 %v4754_v61  ;;  %v1138_v61 = vrot.slane %v6380_v27, 2 }
 0x2ac   :  { %v1190_v56 = vpop.permute.xlu0 %1189 }
 0x2ad   :  { %v1139_v27 = vsel %vm1134_vm4, %v1136_v12, %v1138_v61  ;;  %v1055_v12 = vrot.slane %v6461_v13, 1 }
 0x2af   :  { %v902_v39 = vpop.f32.mrf.mxu3 }
 0x2b0   :  { %v4741_v39 = vld [vmem:[%s8773_s4 + $0x118] sm:$0xf] }
 0x2b1   :  { %v4742_v48 = vor.u32 %v5636_v4, %v4741_v39 }
 0x2b3   :  { %1735 = vmatpush.bf16.msra.mxu0 %v4742_v48 }
 0x2b4   :  { %v1192_v9 = vpop.permute.xlu1 %1191  ;;  %v1070_v44 = vpop.permute.xlu0 %1069 }
 0x2b5   :  { %v1108_v52 = vadd.f32 %v1070_v44, %v6372_v5 }
 0x2b7   :  { %v903_v47 = vpop.f32.mrf.mxu3  ;;  %v1173_v45 = vadd.f32 %v1137_v0, %v1108_v52 }
 0x2b8   :  { %v1252_v4 = vrot.slane %v903_v47, 1  ;;  %v1303_v36 = vrot.slane %v903_v47, 2  ;;  %v1074_v47 = vpop.permute.xlu2 %1073 }
 0x2b9   :  { %v1226_v63 = vadd.f32 %v1188_v3, %v1173_v45  ;;  %v1110_v45 = vadd.f32 %v1074_v47, %v6390_v34 }
 0x2bc   :  { %v1072_v22 = vpop.permute.xlu1 %1071 }
 0x2bd   :  { %v1109_v58 = vadd.f32 %v1072_v22, %v6378_v25  ;;  %v6565_v8 = vpop.permute.xlu0 %1431  ;;  %v1140_v25 = vrot.slane %v6394_v37, 2  ;;  %v5632_v37 = vld [vmem:[%s8773_s4 + $0x108] sm:$0xf0] }
 0x2bf   :  { %v906_v39 = vpop.f32.mrf.mxu3  ;;  %v1174_v52 = vadd.f32 %v1139_v27, %v1109_v58  ;;  %v1141_v34 = vsel %vm1134_vm4, %v1138_v61, %v1140_v25  ;;  %v5629_v27 = vld [vmem:[%s8773_s4 + $0xf4] sm:$0xf] }
 0x2c0   :  { %v1253_v48 = vrot.slane %v906_v39, 1  ;;  %v1304_v21 = vrot.slane %v906_v39, 2 }
 0x2c1   :  { %v1227_v28 = vadd.f32 %v1190_v56, %v1174_v52  ;;  %v4729_v56 = vld [vmem:[%s8773_s4 + $0xf8] sm:$0xf]  ;;  %v4723_v52 = vld [vmem:[%s8773_s4 + $0x104] sm:$0xf0] }
 0x2c2   :  { %v1305_v26 = vsel %vm1134_vm4, %v1303_v36, %v1304_v21  ;;  %v1254_v5 = vsel %vm399_vm2, %v1252_v4, %v1253_v48  ;;  %v4726_v47 = vor.u32 %v5629_v27, %v4723_v52  ;;  %v1417_v27 = vrot.slane %v6477_v17, 1 }
 0x2c3   :  { %1328 = vrot.lane.b32.xlu1 %v1305_v26, %s5771_s0  ;;  %v6570_v44 = vadd.f32 %v1254_v5, %v1226_v63 }
 0x2c4   :  { %v6590_v4 = vpop.permute.xlu1 %1433  ;;  %1777 = vmatpush.bf16.msra.mxu3 %v4726_v47 }
 0x2c5   :  { %v1076_v3 = vpop.permute.xlu0 %1075 }
 0x2c6   :  { %v1111_v61 = vadd.f32 %v1076_v3, %v6404_v31 }
 0x2c7   :  { %v908_v14 = vpop.f32.mrf.mxu3 }
 0x2c8   :  { %v1255_v0 = vrot.slane %v908_v14, 1  ;;  %v1306_v39 = vrot.slane %v908_v14, 2 }
 0x2ca   :  { %v1307_v22 = vsel %vm1134_vm4, %v1304_v21, %v1306_v39  ;;  %v1256_v36 = vsel %vm399_vm2, %v1253_v48, %v1255_v0  ;;  %v4730_v21 = vor.u32 %v5632_v37, %v4729_v56  ;;  %v1142_v48 = vrot.slane %v6409_v49, 2  ;;  %v5630_v49 = vld [vmem:[%s8773_s4 + $0xfc] sm:$0xf] }
 0x2cb   :  { %1197 = vrot.lane.b32.xlu1 %v6444_v18, %s5771_s0  ;;  %1330 = vrot.lane.b32.xlu2 %v1307_v22, %s5771_s0  ;;  %v6580_v63 = vadd.f32 %v1256_v36, %v1227_v28  ;;  %v1175_v28 = vadd.f32 %v1141_v34, %v1110_v45  ;;  %v4731_v22 = vld [vmem:[%s8773_s4 + $0x10c] sm:$0xf0]  ;;  %v8796_v36 = vrot.slane %v6439_v57, 1 }
 0x2cc   :  { %1819 = vmatpush.bf16.msra.mxu1 %v4730_v21  ;;  %v4734_v37 = vor.u32 %v5630_v49, %v4731_v22  ;;  %v1143_v3 = vsel %vm1134_vm4, %v1140_v25, %v1142_v48  ;;  %v4721_v34 = vld [vmem:[%s8773_s4 + $0xf0] sm:$0xf]  ;;  %v1415_v49 = vrot.slane %v6467_v15, 1 }
 0x2cd   :  { %v1228_v14 = vadd.f32 %v1192_v9, %v1175_v28  ;;  %v1056_v45 = vsel %vm399_vm2, %v8796_v36, %v1055_v12  ;;  %v1078_v25 = vpop.permute.xlu1 %1077  ;;  %v8783_v36 = vrot.slane %v6428_v6, 2 }
 0x2ce   :  { %1860 = vmatpush.bf16.msra.mxu2 %v4734_v37  ;;  %v1112_v37 = vadd.f32 %v1078_v25, %v6423_v50 }
 0x2cf   :  { %v911_v58 = vpop.f32.mrf.mxu3 }
 0x2d0   :  { %v1257_v26 = vrot.slane %v911_v58, 1  ;;  %v1308_v5 = vrot.slane %v911_v58, 2  ;;  %v6616_v21 = vpop.permute.xlu0 %1437  ;;  %v1057_v58 = vrot.slane %v6471_v16, 1 }
 0x2d2   :  { %v1309_v56 = vsel %vm1134_vm4, %v1306_v39, %v1308_v5  ;;  %v1258_v9 = vsel %vm399_vm2, %v1255_v0, %v1257_v26  ;;  %v5631_v0 = vld [vmem:[%s8773_s4 + $0x100] sm:$0xf0]  ;;  %v1176_v39 = vadd.f32 %v1143_v3, %v1111_v61  ;;  %v1058_v61 = vsel %vm399_vm2, %v1055_v12, %v1057_v58 }
 0x2d3   :  { %1079 = vrot.lane.b32.xlu2 %v1056_v45, %s5771_s0  ;;  %1332 = vrot.lane.b32.xlu0 %v1309_v56, %s5771_s0  ;;  %v6613_v31 = vadd.f32 %v1258_v9, %v1228_v14  ;;  %v4722_v28 = vor.u32 %v5631_v0, %v4721_v34  ;;  %v1418_v9 = vsel %vm399_vm2, %v1415_v49, %v1417_v27  ;;  %v8797_v0 = vrot.slane %v6447_v1, 1 }
 0x2d4   :  { %v1229_v22 = vadd.f32 %v6561_v40, %v1176_v39  ;;  %v1145_v40 = vsel %vm1134_vm4, %v1142_v48, %v8783_v36 }
 0x2d5   :  { %1736 = vmatpush.bf16.msra.mxu0 %v4722_v28  ;;  %v1177_v12 = vadd.f32 %v1145_v40, %v1112_v37  ;;  %v1416_v39 = vsel %vm399_vm2, %v8797_v0, %v1415_v49  ;;  %v5627_v37 = vld [vmem:[%s8773_s4 + $0xe0] sm:$0xf0]  ;;  %v1419_v40 = vrot.slane %v6487_v33, 1 }
 0x2d7   :  { %v913_v52 = vpop.f32.mrf.mxu3 }
 0x2d8   :  { %v1259_v14 = vrot.slane %v913_v52, 1  ;;  %v1310_v47 = vrot.slane %v913_v52, 2  ;;  %v1059_v52 = vrot.slane %v6481_v19, 1 }
 0x2da   :  { %v1311_v45 = vsel %vm1134_vm4, %v1308_v5, %v1310_v47  ;;  %v1260_v56 = vsel %vm399_vm2, %v1257_v26, %v1259_v14  ;;  %v1196_v5 = vpop.permute.xlu0 %1195 }
 0x2db   :  { %1334 = vrot.lane.b32.xlu1 %v1311_v45, %s5771_s0  ;;  %1081 = vrot.lane.b32.xlu0 %v1058_v61, %s5771_s0  ;;  %v6636_v3 = vadd.f32 %v1260_v56, %v1229_v22  ;;  %v1230_v26 = vadd.f32 %v1196_v5, %v1177_v12  ;;  %v1060_v45 = vsel %vm399_vm2, %v1057_v58, %v1059_v52  ;;  %v4709_v56 = vld [vmem:[%s8773_s4 + $0xd0] sm:$0xf]  ;;  %v1421_v58 = vrot.slane %v6495_v59, 1 }
 0x2dc   :  { %1441 = vrot.lane.b32.xlu2 %v1418_v9, %s5771_s0  ;;  %v4710_v9 = vor.u32 %v5627_v37, %v4709_v56  ;;  %v1061_v5 = vrot.slane %v6489_v11, 1  ;;  %v4701_v56 = vld [vmem:[%s8773_s4 + $0xc8] sm:$0xf] }
 0x2de   :  { %1820 = vmatpush.bf16.msra.mxu1 %v4710_v9  ;;  %v1063_v9 = vrot.slane %v6499_v38, 1 }
 0x2df   :  { %v6642_v34 = vpop.f32.mrf.mxu3 }
 0x2e0   :  { %v8782_v50 = vrot.slane %v6642_v34, 1  ;;  %v1312_v25 = vrot.slane %v6642_v34, 2 }
 0x2e2   :  { %v1262_v28 = vsel %vm399_vm2, %v1259_v14, %v8782_v50  ;;  %v1313_v61 = vsel %vm1134_vm4, %v1310_v47, %v1312_v25  ;;  %v5624_v47 = vld [vmem:[%s8773_s4 + $0xcc] sm:$0xf] }
 0x2e3   :  { %1201 = vrot.lane.b32.xlu0 %v6475_v30, %s5771_s0  ;;  %1439 = vrot.lane.b32.xlu1 %v1416_v39, %s5771_s0  ;;  %v6654_v48 = vadd.f32 %v1262_v28, %v1230_v26  ;;  %v4703_v26 = vld [vmem:[%s8773_s4 + $0xdc] sm:$0xf0]  ;;  %v5625_v39 = vld [vmem:[%s8773_s4 + $0xd4] sm:$0xf] }
 0x2e4   :  { %1199 = vrot.lane.b32.xlu2 %v6465_v20, %s5771_s0  ;;  %v4706_v0 = vor.u32 %v5624_v47, %v4703_v26  ;;  %v4711_v28 = vld [vmem:[%s8773_s4 + $0xe4] sm:$0xf0] }
 0x2e6   :  { %1778 = vmatpush.bf16.msra.mxu3 %v4706_v0  ;;  %v1064_v0 = vsel %vm399_vm2, %v1061_v5, %v1063_v9 }
 0x2e7   :  { %v6660_v22 = vpop.f32.mrf.mxu3 }
 0x2e8   :  { %v1314_v49 = vrot.slane %v6660_v22, 2 }
 0x2ea   :  { %v1315_v14 = vsel %vm1134_vm4, %v1312_v25, %v1314_v49  ;;  %v1420_v25 = vsel %vm399_vm2, %v1417_v27, %v1419_v40  ;;  %v5626_v27 = vld [vmem:[%s8773_s4 + $0xd8] sm:$0xf0] }
 0x2eb   :  { %1338 = vrot.lane.b32.xlu0 %v1315_v14, %s5771_s0  ;;  %1083 = vrot.lane.b32.xlu1 %v1060_v45, %s5771_s0  ;;  %v1422_v14 = vsel %vm399_vm2, %v1419_v40, %v1421_v58  ;;  %v4714_v45 = vor.u32 %v5625_v39, %v4711_v28  ;;  %v4702_v37 = vor.u32 %v5626_v27, %v4701_v56  ;;  %v1425_v28 = vrot.slane %v6513_v43, 1 }
 0x2ec   :  { %1336 = vrot.lane.b32.xlu2 %v1313_v61, %s5771_s0  ;;  %v1062_v61 = vsel %vm399_vm2, %v1059_v52, %v1061_v5 }
 0x2ed   :  { %1861 = vmatpush.bf16.msra.mxu2 %v4714_v45  ;;  %1737 = vmatpush.bf16.msra.mxu0 %v4702_v37 }
 0x2ef   :  { %v6678_v12 = vpop.f32.mrf.mxu3 }
 0x2f0   :  { %v1316_v52 = vrot.slane %v6678_v12, 2 }
 0x2f2   :  { %v1317_v39 = vsel %vm1134_vm4, %v1314_v49, %v1316_v52 }
 0x2f3   :  { %1443 = vrot.lane.b32.xlu0 %v1420_v25, %s5771_s0  ;;  %1445 = vrot.lane.b32.xlu1 %v1422_v14, %s5771_s0  ;;  %v1423_v14 = vrot.slane %v6505_v23, 1 }
 0x2f4   :  { %1085 = vrot.lane.b32.xlu2 %v1062_v61, %s5771_s0 }
 0x2f5   :  { %v1426_v45 = vsel %vm399_vm2, %v1423_v14, %v1425_v28  ;;  %v1424_v37 = vsel %vm399_vm2, %v1421_v58, %v1423_v14  ;;  %v5619_v58 = vld [vmem:[%s8773_s4 + $0xa4] sm:$0xf]  ;;  %v4683_v14 = vld [vmem:[%s8773_s4 + $0xb4] sm:$0xf0] }
 0x2f7   :  { %v6706_v40 = vpop.f32.mrf.mxu3 }
 0x2f8   :  { %v1318_v47 = vrot.slane %v6706_v40, 2 }
 0x2fa   :  { %v1319_v26 = vsel %vm1134_vm4, %v1316_v52, %v1318_v47  ;;  %v1065_v52 = vrot.slane %v6507_v29, 1 }
 0x2fb   :  { %1087 = vrot.lane.b32.xlu0 %v1064_v0, %s5771_s0  ;;  %1340 = vrot.lane.b32.xlu1 %v1317_v39, %s5771_s0  ;;  %v4689_v39 = vld [vmem:[%s8773_s4 + $0xa8] sm:$0xf] }
 0x2fc   :  { %1342 = vrot.lane.b32.xlu2 %v1319_v26, %s5771_s0  ;;  %v1067_v26 = vrot.slane %v6517_v62, 1 }
 0x2fe   :  { %v1068_v50 = vsel %vm399_vm2, %v1065_v52, %v1067_v26 }
 0x2ff   :  { %v6716_v25 = vpop.f32.mrf.mxu3 }
 0x300   :  { %v1320_v49 = vrot.slane %v6716_v25, 2 }
 0x302   :  { %v1321_v27 = vsel %vm1134_vm4, %v1318_v47, %v1320_v49  ;;  %v5622_v47 = vld [vmem:[%s8773_s4 + $0xb8] sm:$0xf0] }
 0x303   :  { %1203 = vrot.lane.b32.xlu1 %v6485_v10, %s5771_s0  ;;  %1449 = vrot.lane.b32.xlu0 %v1426_v45, %s5771_s0  ;;  %v4690_v45 = vor.u32 %v5622_v47, %v4689_v39  ;;  %v4681_v39 = vld [vmem:[%s8773_s4 + $0xa0] sm:$0xf]  ;;  %v5621_v47 = vld [vmem:[%s8773_s4 + $0xb0] sm:$0xf0] }
 0x304   :  { %1205 = vrot.lane.b32.xlu2 %v6493_v54, %s5771_s0 }
 0x305   :  { %1821 = vmatpush.bf16.msra.mxu1 %v4690_v45  ;;  %v1427_v45 = vrot.slane %v6523_v2, 1 }
 0x307   :  { %v6726_v5 = vpop.f32.mrf.mxu3 }
 0x308   :  { %v1322_v61 = vrot.slane %v6726_v5, 2 }
 0x30a   :  { %v1323_v56 = vsel %vm1134_vm4, %v1320_v49, %v1322_v61  ;;  %v5620_v49 = vld [vmem:[%s8773_s4 + $0xac] sm:$0xf] }
 0x30b   :  { %1346 = vrot.lane.b32.xlu1 %v1323_v56, %s5771_s0  ;;  %1344 = vrot.lane.b32.xlu0 %v1321_v27, %s5771_s0  ;;  %v1066_v56 = vsel %vm399_vm2, %v1063_v9, %v1065_v52  ;;  %v4686_v27 = vor.u32 %v5619_v58, %v4683_v14  ;;  %v4682_v58 = vor.u32 %v5621_v47, %v4681_v39 }
 0x30c   :  { %1447 = vrot.lane.b32.xlu2 %v1424_v37, %s5771_s0  ;;  %v4691_v37 = vld [vmem:[%s8773_s4 + $0xbc] sm:$0xf0] }
 0x30d   :  { %v4694_v9 = vor.u32 %v5620_v49, %v4691_v37  ;;  %1779 = vmatpush.bf16.msra.mxu3 %v4686_v27  ;;  %1738 = vmatpush.bf16.msra.mxu0 %v4682_v58  ;;  %v1429_v49 = vrot.slane %v6527_v55, 1  ;;  %v1428_v37 = vsel %vm399_vm2, %v1425_v28, %v1427_v45 }
 0x30f   :  { %v6737_v0 = vpop.f32.mrf.mxu3  ;;  %1862 = vmatpush.bf16.msra.mxu2 %v4694_v9  ;;  %v1430_v39 = vsel %vm399_vm2, %v1427_v45, %v1429_v49  ;;  %v1499_v9 = vrot.slane %v6426_v7, 2 }
 0x310   :  { %v1324_v14 = vrot.slane %v6737_v0, 2 }
 0x312   :  { %v1325_v52 = vsel %vm1134_vm4, %v1322_v61, %v1324_v14 }
 0x313   :  { %1089 = vrot.lane.b32.xlu1 %v1066_v56, %s5771_s0  ;;  %1207 = vrot.lane.b32.xlu0 %v6503_v60, %s5771_s0 }
 0x314   :  { %1091 = vrot.lane.b32.xlu2 %v1068_v50, %s5771_s0  ;;  %v1436_v50 = vpop.permute.xlu2 %1435 }
 0x317   :  { %v6770_v36 = vpop.f32.mrf.mxu3 }
 0x318   :  { %v1326_v62 = vrot.slane %v6770_v36, 2 }
 0x31a   :  { %v1327_v56 = vsel %vm1134_vm4, %v1324_v14, %v1326_v62 }
 0x31b   :  { %1209 = vrot.lane.b32.xlu1 %v6511_v53, %s5771_s0  ;;  %1350 = vrot.lane.b32.xlu0 %v1327_v56, %s5771_s0  ;;  %v1497_v56 = vrot.slane %v6407_v46, 2 }
 0x31c   :  { %1348 = vrot.lane.b32.xlu2 %v1325_v52, %s5771_s0 }
 0x31f   :  { %v936_v27 = vpop.f32.mrf.mxu3 }
 0x323   :  { %1093 = vrot.lane.b32.xlu0 %v1067_v26, %s5771_s0  ;;  %1451 = vrot.lane.b32.xlu1 %v1428_v37, %s5771_s0  ;;  %v1500_v26 = vsel %vm1134_vm4, %v1497_v56, %v1499_v9 }
 0x324   :  { %1453 = vrot.lane.b32.xlu2 %v1430_v39, %s5771_s0 }
 0x325   :  { %v1331_v61 = vpop.permute.xlu2 %1330 }
 0x326   :  { %v1368_v47 = vadd.f32 %v1331_v61, %v6580_v63 }
 0x327   :  { %v937_v58 = vpop.f32.mrf.mxu3 }
 0x328   :  { %v1381_v14 = vadd.f32 %v1368_v47, %v6397_v41  ;;  %v6800_v41 = vld [vmem:[%s8771_s7] sm:$0xff] }
 0x329   :  { %v6803_v46 = vperm.slane %v6800_v41, 2 }
 0x32a   :  { %v1471_v28 = vadd.f32 %v6590_v4, %v1381_v14 }
 0x32b   :  { %1211 = vrot.lane.b32.xlu1 %v6521_v51, %s5771_s0  ;;  %1455 = vrot.lane.b32.xlu0 %v1429_v49, %s5771_s0  ;;  %v1496_v49 = vrot.slane %v6392_v35, 2 }
 0x32c   :  { %v1535_v52 = vadd.f32 %v1500_v26, %v1471_v28  ;;  %1352 = vrot.lane.b32.xlu2 %v1326_v62, %s5771_s0 }
 0x32d   :  { %v1080_v63 = vpop.permute.xlu2 %1079  ;;  %v1498_v27 = vsel %vm1134_vm4, %v1496_v49, %v1497_v56  ;;  %v1501_v56 = vrot.slane %v6442_v24, 2 }
 0x335   :  { %v1329_v45 = vpop.permute.xlu1 %1328 }
 0x336   :  { %v1367_v7 = vadd.f32 %v1329_v45, %v6570_v44  ;;  %v6806_v51 = vpop.permute.xlu2 %1441  ;;  %v1549_v44 = vadd.f32 %v6803_v46, %v1535_v52  ;;  %v4757_v52 = vld [vmem:[%s8773_s4 + $0x128] sm:$0xf]  ;;  %v5638_v45 = vld [vmem:[%s8773_s4 + $0x138] sm:$0xf0] }
 0x338   :  { %v1380_v4 = vadd.f32 %v1367_v7, %v6382_v32  ;;  %v1562_v61 = vmax.f32 %v1549_v44, 0.0  ;;  %v1502_v7 = vsel %vm1134_vm4, %v1499_v9, %v1501_v56 }
 0x33a   :  { %v1470_v62 = vadd.f32 %v6565_v8, %v1380_v4  ;;  %v4758_v4 = vor.u32 %v5638_v45, %v4757_v52  ;;  %v8801_v45 = vrot.slane %v6428_v6, 2  ;;  %v1150_v6 = vrot.slane %v6475_v30, 2 }
 0x33c   :  { %v1534_v37 = vadd.f32 %v1498_v27, %v1470_v62  ;;  %1900 = vmatpush.bf16.msrb.mxu0 %v4758_v4 }
 0x33d   :  { %v1198_v32 = vpop.permute.xlu1 %1197 }
 0x33e   :  { %v1548_v39 = vadd.f32 %v6803_v46, %v1534_v37  ;;  %v6815_v14 = vpop.permute.xlu2 %1199  ;;  %v8799_v37 = vld [vmem:[#allocation2_spill] sm:$0xff] }
 0x340   :  { %v1561_v47 = vmax.f32 %v1548_v39, 0.0 }
 0x342   :  { %v6813_v58 = vpack.c.bf16 %v1562_v61, %v1561_v47  ;;  %v1146_v61 = vrot.slane %v6444_v18, 2  ;;  %v1113_v47 = vadd.f32 %v1080_v63, %v6439_v57 }
 0x344   :  { %4759 = vmatmul.msk.bf16.vlgmr.msra.gmra.mxu0 %vm775_vm3, %v6813_v58  ;;  %4766 = vmatmul.msk.bf16.vlgmr.msra.gmra.mxu3 %vm775_vm3, %v6813_v58 }
 0x345   :  { %4773 = vmatmul.msk.bf16.vlgmr.msra.gmra.mxu1 %vm775_vm3, %v6813_v58  ;;  %4780 = vmatmul.msk.bf16.vlgmr.msra.gmra.mxu2 %vm775_vm3, %v6813_v58  ;;  %v1333_v35 = vpop.permute.xlu0 %1332 }
 0x346   :  { %v1369_v8 = vadd.f32 %v1333_v35, %v6613_v31  ;;  %v1337_v62 = vpop.permute.xlu2 %1336 }
 0x347   :  { %v1371_v44 = vadd.f32 %v1337_v62, %v6654_v48  ;;  %v1147_v48 = vsel %vm1134_vm4, %v8801_v45, %v1146_v61 }
 0x348   :  { %v1382_v28 = vadd.f32 %v1369_v8, %v6412_v42  ;;  %v8798_v42 = vld [vmem:[#allocation3_spill] sm:$0xff]  ;;  %v8800_v8 = vld [vmem:[#allocation4_spill] sm:$0xff]  ;;  %v1178_v18 = vadd.f32 %v1147_v48, %v1113_v47 }
 0x349   :  { %v5633_v47 = vld [vmem:[%s8773_s4 + $0x110] sm:$0xf0] }
 0x34a   :  { %v1472_v26 = vadd.f32 %v1436_v50, %v1382_v28  ;;  %v1503_v50 = vrot.slane %v8798_v42, 2  ;;  %v1505_v28 = vrot.slane %v8800_v8, 2  ;;  %v1231_v62 = vadd.f32 %v1198_v32, %v1178_v18  ;;  %v8803_v8 = vld [vmem:[#allocation5_spill] sm:$0xff] }
 0x34b   :  { %v1148_v32 = vrot.slane %v6465_v20, 2  ;;  %v1265_v18 = vrot.slane %v6678_v12, 1 }
 0x34c   :  { %v1536_v49 = vadd.f32 %v1502_v7, %v1472_v26  ;;  %v1504_v35 = vsel %vm1134_vm4, %v1501_v56, %v1503_v50  ;;  %v1506_v56 = vsel %vm1134_vm4, %v1503_v50, %v1505_v28 }
 0x34d   :  { %v1335_v27 = vpop.permute.xlu1 %1334  ;;  %v1082_v31 = vpop.permute.xlu0 %1081 }
 0x34e   :  { %v1370_v24 = vadd.f32 %v1335_v27, %v6636_v3  ;;  %v1550_v26 = vadd.f32 %v6803_v46, %v1536_v49  ;;  %v1384_v3 = vadd.f32 %v1371_v44, %v6447_v1  ;;  %v8802_v44 = vrot.slane %v6642_v34, 1  ;;  %v4737_v34 = vld [vmem:[%s8773_s4 + $0x100] sm:$0xf] }
 0x34f   :  { %v4738_v20 = vor.u32 %v5633_v47, %v4737_v34  ;;  %v1114_v45 = vadd.f32 %v1082_v31, %v6461_v13 }
 0x350   :  { %v1383_v39 = vadd.f32 %v1370_v24, %v8799_v37  ;;  %v1563_v27 = vmax.f32 %v1550_v26, 0.0  ;;  %v6852_v24 = vpop.permute.xlu2 %1085  ;;  %v1507_v26 = vrot.slane %v8803_v8, 2 }
 0x351   :  { %1901 = vmatpush.bf16.msrb.mxu0 %v4738_v20 }
 0x352   :  { %v1473_v9 = vadd.f32 %v6616_v21, %v1383_v39  ;;  %v1263_v21 = vrot.slane %v6660_v22, 1 }
 0x354   :  { %v1537_v52 = vadd.f32 %v1504_v35, %v1473_v9  ;;  %v1264_v37 = vsel %vm399_vm2, %v8802_v44, %v1263_v21 }
 0x355   :  { %v1202_v7 = vpop.permute.xlu0 %1201  ;;  %v1440_v4 = vpop.permute.xlu1 %1439  ;;  %v1295_v22 = vadd.f32 %v1264_v37, %v1231_v62  ;;  %v1149_v62 = vsel %vm1134_vm4, %v1146_v61, %v1148_v32 }
 0x356   :  { %v1551_v57 = vadd.f32 %v6803_v46, %v1537_v52  ;;  %v1474_v63 = vadd.f32 %v1440_v4, %v1384_v3  ;;  %v1267_v52 = vrot.slane %v6706_v40, 1  ;;  %v1151_v3 = vsel %vm1134_vm4, %v1148_v32, %v1150_v6 }
 0x358   :  { %v1564_v49 = vmax.f32 %v1551_v57, 0.0  ;;  %v1538_v1 = vadd.f32 %v1506_v56, %v1474_v63  ;;  %v1343_v57 = vpop.permute.xlu2 %1342  ;;  %v1508_v56 = vsel %vm1134_vm4, %v1505_v28, %v1507_v26 }
 0x35a   :  { %v6854_v42 = vpack.c.bf16 %v1564_v49, %v1563_v27  ;;  %v1268_v27 = vsel %vm399_vm2, %v1265_v18, %v1267_v52  ;;  %v1179_v49 = vadd.f32 %v1149_v62, %v1114_v45  ;;  %v1552_v13 = vadd.f32 %v6803_v46, %v1538_v1 }
 0x35c   :  { %4760 = vmatmul.msk.bf16.gmra.mxu0 %vm775_vm3, %v6854_v42  ;;  %4767 = vmatmul.msk.bf16.gmra.mxu3 %vm775_vm3, %v6854_v42  ;;  %v1232_v32 = vadd.f32 %v6815_v14, %v1179_v49 }
 0x35d   :  { %4774 = vmatmul.msk.bf16.gmra.mxu1 %vm775_vm3, %v6854_v42  ;;  %4781 = vmatmul.msk.bf16.gmra.mxu2 %vm775_vm3, %v6854_v42  ;;  %v1339_v50 = vpop.permute.xlu0 %1338  ;;  %v1084_v39 = vpop.permute.xlu1 %1083 }
 0x35e   :  { %v1372_v9 = vadd.f32 %v1339_v50, %v1295_v22  ;;  %v1115_v35 = vadd.f32 %v1084_v39, %v6471_v16  ;;  %v1565_v50 = vmax.f32 %v1552_v13, 0.0  ;;  %v8805_v39 = vld [vmem:[#allocation6_spill] sm:$0xff] }
 0x35f   :  { %v1509_v34 = vrot.slane %v8805_v39, 2 }
 0x360   :  { %v1385_v48 = vadd.f32 %v1372_v9, %v6467_v15  ;;  %v1180_v4 = vadd.f32 %v1151_v3, %v1115_v35  ;;  %v1266_v35 = vsel %vm399_vm2, %v1263_v21, %v1265_v18  ;;  %v1206_v20 = vpop.permute.xlu2 %1205  ;;  %v1154_v21 = vrot.slane %v6493_v54, 2 }
 0x361   :  { %v1152_v18 = vrot.slane %v6485_v10, 2 }
 0x362   :  { %v1475_v16 = vadd.f32 %v6806_v51, %v1385_v48  ;;  %v1233_v63 = vadd.f32 %v1202_v7, %v1180_v4  ;;  %v8804_v51 = vld [vmem:[#allocation7_spill] sm:$0xff] }
 0x363   :  { %v1511_v7 = vrot.slane %v8804_v51, 2 }
 0x364   :  { %v1539_v15 = vadd.f32 %v1508_v56, %v1475_v16  ;;  %v1297_v31 = vadd.f32 %v1268_v27, %v1233_v63  ;;  %v1510_v63 = vsel %vm1134_vm4, %v1507_v26, %v1509_v34  ;;  %v1155_v56 = vsel %vm1134_vm4, %v1152_v18, %v1154_v21 }
 0x365   :  { %v1444_v44 = vpop.permute.xlu0 %1443  ;;  %v1446_v37 = vpop.permute.xlu1 %1445  ;;  %v1512_v9 = vsel %vm1134_vm4, %v1509_v34, %v1511_v7  ;;  %v8807_v34 = vld [vmem:[#allocation10_spill] sm:$0xff] }
 0x366   :  { %v1553_v12 = vadd.f32 %v6803_v46, %v1539_v15  ;;  %v1374_v22 = vadd.f32 %v1343_v57, %v1297_v31  ;;  %v1116_v57 = vadd.f32 %v6852_v24, %v6481_v19  ;;  %v1269_v19 = vrot.slane %v6716_v25, 1 }
 0x367   :  { %v1271_v24 = vrot.slane %v6726_v5, 1 }
 0x368   :  { %v1566_v28 = vmax.f32 %v1553_v12, 0.0  ;;  %v1387_v61 = vadd.f32 %v1374_v22, %v6487_v33  ;;  %v1296_v33 = vadd.f32 %v1266_v35, %v1232_v32  ;;  %v1448_v13 = vpop.permute.xlu2 %1447  ;;  %v8806_v32 = vld [vmem:[#allocation8_spill] sm:$0xff] }
 0x369   :  { %v1272_v30 = vsel %vm399_vm2, %v1269_v19, %v1271_v24  ;;  %v1513_v39 = vrot.slane %v8806_v32, 2 }
 0x36a   :  { %v6896_v47 = vpack.c.bf16 %v1566_v28, %v1565_v50  ;;  %v1477_v1 = vadd.f32 %v1446_v37, %v1387_v61  ;;  %v5628_v61 = vld [vmem:[%s8773_s4 + $0xe8] sm:$0xf0] }
 0x36c   :  { %v1541_v8 = vadd.f32 %v1512_v9, %v1477_v1  ;;  %4761 = vmatmul.msk.bf16.gmra.mxu0 %vm775_vm3, %v6896_v47  ;;  %4768 = vmatmul.msk.bf16.gmra.mxu3 %vm775_vm3, %v6896_v47  ;;  %v1515_v1 = vrot.slane %v8807_v34, 2 }
 0x36d   :  { %4775 = vmatmul.msk.bf16.gmra.mxu1 %vm775_vm3, %v6896_v47  ;;  %4782 = vmatmul.msk.bf16.gmra.mxu2 %vm775_vm3, %v6896_v47  ;;  %v1088_v14 = vpop.permute.xlu0 %1087  ;;  %v1341_v3 = vpop.permute.xlu1 %1340 }
 0x36e   :  { %v1373_v45 = vadd.f32 %v1341_v3, %v1296_v33  ;;  %v1117_v48 = vadd.f32 %v1088_v14, %v6489_v11  ;;  %v1555_v62 = vadd.f32 %v6803_v46, %v1541_v8  ;;  %v1153_v11 = vsel %vm1134_vm4, %v1150_v6, %v1152_v18 }
 0x36f   :  { %v1181_v15 = vadd.f32 %v1153_v11, %v1116_v57  ;;  %v1270_v6 = vsel %vm399_vm2, %v1267_v52, %v1269_v19  ;;  %v4717_v52 = vld [vmem:[%s8773_s4 + $0xd8] sm:$0xf]  ;;  %v1156_v3 = vrot.slane %v6503_v60, 2  ;;  %v1273_v60 = vrot.slane %v6737_v0, 1 }
 0x370   :  { %v1386_v4 = vadd.f32 %v1373_v45, %v6477_v17  ;;  %v1182_v27 = vadd.f32 %v1155_v56, %v1117_v48  ;;  %v1568_v26 = vmax.f32 %v1555_v62, 0.0  ;;  %v4718_v9 = vor.u32 %v5628_v61, %v4717_v52  ;;  %v1092_v35 = vpop.permute.xlu2 %1091 }
 0x371   :  { %v1514_v45 = vsel %vm1134_vm4, %v1511_v7, %v1513_v39  ;;  %v1516_v48 = vsel %vm1134_vm4, %v1513_v39, %v1515_v1  ;;  %v1158_v56 = vrot.slane %v6511_v53, 2  ;;  %v1157_v51 = vsel %vm1134_vm4, %v1154_v21, %v1156_v3 }
 0x372   :  { %v1476_v16 = vadd.f32 %v1444_v44, %v1386_v4  ;;  %v1235_v37 = vadd.f32 %v1206_v20, %v1182_v27  ;;  %1902 = vmatpush.bf16.msrb.mxu0 %v4718_v9  ;;  %v1119_v7 = vadd.f32 %v1092_v35, %v6507_v29  ;;  %v8810_v35 = vld [vmem:[#allocation9_spill] sm:$0xff] }
 0x374   :  { %v1540_v49 = vadd.f32 %v1510_v63, %v1476_v16  ;;  %v1299_v25 = vadd.f32 %v1272_v30, %v1235_v37  ;;  %v8808_v30 = vld [vmem:[#allocation11_spill] sm:$0xff] }
 0x375   :  { %v1204_v54 = vpop.permute.xlu1 %1203  ;;  %v1450_v17 = vpop.permute.xlu0 %1449 }
 0x376   :  { %v1554_v10 = vadd.f32 %v6803_v46, %v1540_v49  ;;  %v1234_v44 = vadd.f32 %v1204_v54, %v1181_v15 }
 0x378   :  { %v1567_v31 = vmax.f32 %v1554_v10, 0.0  ;;  %v1298_v5 = vadd.f32 %v1270_v6, %v1234_v44  ;;  %v1349_v11 = vpop.permute.xlu2 %1348  ;;  %v1274_v10 = vsel %vm399_vm2, %v1271_v24, %v1273_v60  ;;  %v1517_v6 = vrot.slane %v8808_v30, 2 }
 0x37a   :  { %v6925_v12 = vpack.c.bf16 %v1568_v26, %v1567_v31  ;;  %v4697_v26 = vld [vmem:[%s8773_s4 + $0xb0] sm:$0xf]  ;;  %v5623_v31 = vld [vmem:[%s8773_s4 + $0xc0] sm:$0xf0]  ;;  %v1518_v34 = vsel %vm1134_vm4, %v1515_v1, %v1517_v6 }
 0x37b   :  { %v4698_v37 = vor.u32 %v5623_v31, %v4697_v26 }
 0x37c   :  { %4762 = vmatmul.msk.bf16.gmra.mxu0 %vm775_vm3, %v6925_v12  ;;  %4769 = vmatmul.msk.bf16.gmra.mxu3 %vm775_vm3, %v6925_v12 }
 0x37d   :  { %4776 = vmatmul.msk.bf16.gmra.mxu1 %vm775_vm3, %v6925_v12  ;;  %4783 = vmatmul.msk.bf16.gmra.mxu2 %vm775_vm3, %v6925_v12  ;;  %v1347_v22 = vpop.permute.xlu1 %1346  ;;  %v1345_v50 = vpop.permute.xlu0 %1344 }
 0x37e   :  { %v1376_v28 = vadd.f32 %v1347_v22, %v1299_v25  ;;  %v1375_v40 = vadd.f32 %v1345_v50, %v1298_v5  ;;  %v8809_v25 = vld [vmem:[#allocation12_spill] sm:$0xff]  ;;  %1903 = vmatpush.bf16.msrb.mxu0 %v4698_v37 }
 0x37f   :  { %v1519_v5 = vrot.slane %v8809_v25, 2 }
 0x380   :  { %v1389_v20 = vadd.f32 %v1376_v28, %v6505_v23  ;;  %v1388_v8 = vadd.f32 %v1375_v40, %v6495_v59  ;;  %v1454_v22 = vpop.permute.xlu2 %1453 }
 0x381   :  { %v1520_v39 = vsel %vm1134_vm4, %v1517_v6, %v1519_v5 }
 0x382   :  { %v1479_v33 = vadd.f32 %v1450_v17, %v1389_v20  ;;  %v1478_v14 = vadd.f32 %v1448_v13, %v1388_v8  ;;  %v1275_v13 = vrot.slane %v6770_v36, 1 }
 0x384   :  { %v1543_v4 = vadd.f32 %v1516_v48, %v1479_v33  ;;  %v1542_v18 = vadd.f32 %v1514_v45, %v1478_v14  ;;  %v1276_v15 = vsel %vm399_vm2, %v1273_v60, %v1275_v13 }
 0x385   :  { %v1090_v57 = vpop.permute.xlu1 %1089  ;;  %v1208_v16 = vpop.permute.xlu0 %1207 }
 0x386   :  { %v1557_v63 = vadd.f32 %v6803_v46, %v1543_v4  ;;  %v1556_v23 = vadd.f32 %v6803_v46, %v1542_v18  ;;  %v1118_v59 = vadd.f32 %v1090_v57, %v6499_v38  ;;  %v1159_v38 = vsel %vm1134_vm4, %v1156_v3, %v1158_v56 }
 0x387   :  { %v1184_v29 = vadd.f32 %v1159_v38, %v1119_v7 }
 0x388   :  { %v1570_v62 = vmax.f32 %v1557_v63, 0.0  ;;  %v1569_v27 = vmax.f32 %v1556_v23, 0.0  ;;  %v1183_v49 = vadd.f32 %v1157_v51, %v1118_v59  ;;  %v1353_v1 = vpop.permute.xlu2 %1352 }
 0x38a   :  { %v6961_v54 = vpack.c.bf16 %v1570_v62, %v1569_v27  ;;  %v1236_v17 = vadd.f32 %v1208_v16, %v1183_v49 }
 0x38c   :  { %v1300_v53 = vadd.f32 %v1274_v10, %v1236_v17  ;;  %4763 = vmatmul.msk.bf16.gmra.mxu0 %vm775_vm3, %v6961_v54  ;;  %4770 = vmatmul.msk.bf16.gmra.mxu3 %vm775_vm3, %v6961_v54 }
 0x38d   :  { %4777 = vmatmul.msk.bf16.gmra.mxu1 %vm775_vm3, %v6961_v54  ;;  %4784 = vmatmul.msk.bf16.gmra.mxu2 %vm775_vm3, %v6961_v54  ;;  %v1210_v0 = vpop.permute.xlu1 %1209  ;;  %v1351_v36 = vpop.permute.xlu0 %1350 }
 0x38e   :  { %v1237_v21 = vadd.f32 %v1210_v0, %v1184_v29  ;;  %v1377_v24 = vadd.f32 %v1349_v11, %v1300_v53 }
 0x390   :  { %v1301_v19 = vadd.f32 %v1276_v15, %v1237_v21  ;;  %v1390_v28 = vadd.f32 %v1377_v24, %v6513_v43 }
 0x392   :  { %v1378_v44 = vadd.f32 %v1351_v36, %v1301_v19 }
 0x394   :  { %v1391_v50 = vadd.f32 %v1378_v44, %v6523_v2 }
 0x395   :  { %v1094_v40 = vpop.permute.xlu0 %1093  ;;  %v1452_v52 = vpop.permute.xlu1 %1451 }
 0x396   :  { %v1481_v61 = vadd.f32 %v1454_v22, %v1391_v50  ;;  %v1480_v32 = vadd.f32 %v1452_v52, %v1390_v28  ;;  %v1120_v20 = vadd.f32 %v1094_v40, %v8810_v35 }
 0x398   :  { %v1545_v9 = vadd.f32 %v1520_v39, %v1481_v61  ;;  %v1544_v8 = vadd.f32 %v1518_v34, %v1480_v32  ;;  %v1185_v43 = vadd.f32 %v1158_v56, %v1120_v20 }
 0x39a   :  { %v1559_v33 = vadd.f32 %v6803_v46, %v1545_v9  ;;  %v1558_v14 = vadd.f32 %v6803_v46, %v1544_v8 }
 0x39c   :  { %v1571_v2 = vmax.f32 %v1558_v14, 0.0  ;;  %v1572_v3 = vmax.f32 %v1559_v33, 0.0 }
 0x39d   :  { %v1212_v45 = vpop.permute.xlu1 %1211  ;;  %v1456_v63 = vpop.permute.xlu0 %1455 }
 0x39e   :  { %v6990_v48 = vpack.c.bf16 %v1572_v3, %v1571_v2  ;;  %v1238_v4 = vadd.f32 %v1212_v45, %v1185_v43 }
 0x3a0   :  { %v1302_v18 = vadd.f32 %v1275_v13, %v1238_v4  ;;  %4764 = vmatmul.msk.bf16.gmra.mxu0 %vm775_vm3, %v6990_v48  ;;  %4771 = vmatmul.msk.bf16.gmra.mxu3 %vm775_vm3, %v6990_v48 }
 0x3a1   :  { %4778 = vmatmul.msk.bf16.gmra.mxu1 %vm775_vm3, %v6990_v48  ;;  %4785 = vmatmul.msk.bf16.gmra.mxu2 %vm775_vm3, %v6990_v48 }
 0x3a2   :  { %v1379_v57 = vadd.f32 %v1353_v1, %v1302_v18  ;;  %v5660_v1 = vld [vmem:[%s8774_s5 + $0xac] sm:$0xf] }
 0x3a4   :  { %v1392_v16 = vadd.f32 %v1379_v57, %v6527_v55  ;;  %v4850_v57 = vld [vmem:[%s8774_s5 + $0xb4] sm:$0xf0] }
 0x3a6   :  { %v1482_v23 = vadd.f32 %v1456_v63, %v1392_v16  ;;  %v4853_v63 = vor.u32 %v5660_v1, %v4850_v57 }
 0x3a8   :  { %v1546_v59 = vadd.f32 %v1519_v5, %v1482_v23  ;;  %2581 = vmatpush.bf16.msrb.mxu1 %v4853_v63 }
 0x3aa   :  { %v1560_v56 = vadd.f32 %v6803_v46, %v1546_v59 }
 0x3ac   :  { %v1573_v60 = vmax.f32 %v1560_v56, 0.0 }
 0x3ae   :  { %v7002_v51 = vpack.c.bf16 %v1573_v60, %v1573_v60 }
 0x3b0   :  { %4765 = vmatmul.msk.bf16.gmra.mxu0 %vm775_vm3, %v7002_v51  ;;  %4772 = vmatmul.msk.bf16.gmra.mxu3 %vm775_vm3, %v7002_v51 }
 0x3b1   :  { %4779 = vmatmul.msk.bf16.gmra.mxu1 %vm775_vm3, %v7002_v51  ;;  %4786 = vmatmul.msk.bf16.gmra.mxu2 %vm775_vm3, %v7002_v51 }
 0x3c0   :  { %4787 = vmatmul.msk.bf16.vlgmr.msrb.gmra.mxu0 %vm775_vm3, %v6813_v58 }
 0x3c1   :  { %v7014_v55 = vpop.f32.mrf.mxu0 }
 0x3c2   :  { %v1823_v46 = vpop.f32.mrf.mxu1  ;;  %v1948_v49 = vrot.slane %v7014_v55, 1 }
 0x3c7   :  { %v7016_v7 = vpop.f32.mrf.mxu3 }
 0x3c8   :  { %v1864_v62 = vpop.f32.mrf.mxu2 }
 0x3c9   :  { %v7018_v27 = vpop.f32.mrf.mxu0 }
 0x3ca   :  { %v1949_v11 = vrot.slane %v7018_v27, 1  ;;  %v7030_v58 = vpop.f32.mrf.mxu1 }
 0x3cb   :  { %v2166_v0 = vrot.slane %v7030_v58, 2 }
 0x3cc   :  { %v1950_v17 = vsel %vm399_vm2, %v1948_v49, %v1949_v11 }
 0x3cd   :  { %1969 = vrot.lane.b32.xlu1 %v1950_v17, %s5771_s0 }
 0x3cf   :  { %v7024_v13 = vpop.f32.mrf.mxu3 }
 0x3d0   :  { %v1865_v10 = vpop.f32.mrf.mxu2  ;;  %2068 = vrot.lane.b32.xlu2 %v7024_v13, %s5771_s0  ;;  %4788 = vmatmul.msk.bf16.gmra.mxu0 %vm775_vm3, %v6854_v42 }
 0x3d9   :  { %v7032_v38 = vpop.f32.mrf.mxu0 }
 0x3da   :  { %v1951_v53 = vrot.slane %v7032_v38, 1  ;;  %v7035_v29 = vpop.f32.mrf.mxu1 }
 0x3db   :  { %v2167_v36 = vrot.slane %v7035_v29, 2 }
 0x3dc   :  { %v1952_v21 = vsel %vm399_vm2, %v1949_v11, %v1951_v53 }
 0x3dd   :  { %1971 = vrot.lane.b32.xlu2 %v1952_v21, %s5771_s0  ;;  %v2168_v15 = vsel %vm1134_vm4, %v2166_v0, %v2167_v36 }
 0x3de   :  { %2187 = vrot.lane.b32.xlu0 %v2168_v15, %s5771_s0 }
 0x3df   :  { %v7043_v42 = vpop.f32.mrf.mxu3 }
 0x3e0   :  { %v7045_v19 = vpop.f32.mrf.mxu2  ;;  %4789 = vmatmul.msk.bf16.gmra.mxu0 %vm775_vm3, %v6896_v47 }
 0x3e1   :  { %v7049_v24 = vpop.f32.mrf.mxu0  ;;  %v2253_v39 = vrot.slane %v7045_v19, 1 }
 0x3e2   :  { %v7051_v26 = vpop.f32.mrf.mxu1  ;;  %v1953_v6 = vrot.slane %v7049_v24, 1 }
 0x3e3   :  { %v2169_v31 = vrot.slane %v7051_v26, 2 }
 0x3e4   :  { %v1954_v22 = vsel %vm399_vm2, %v1951_v53, %v1953_v6 }
 0x3e5   :  { %v2170_v44 = vsel %vm1134_vm4, %v2167_v36, %v2169_v31 }
 0x3e6   :  { %2070 = vrot.lane.b32.xlu0 %v7043_v42, %s5771_s0  ;;  %2189 = vrot.lane.b32.xlu1 %v2170_v44, %s5771_s0 }
 0x3e7   :  { %v7058_v37 = vpop.f32.mrf.mxu3 }
 0x3e8   :  { %v7060_v30 = vpop.f32.mrf.mxu2 }
 0x3e9   :  { %v7063_v47 = vpop.f32.mrf.mxu0  ;;  %v2254_v52 = vrot.slane %v7060_v30, 1 }
 0x3ea   :  { %v7065_v25 = vpop.f32.mrf.mxu1  ;;  %v1955_v8 = vrot.slane %v7063_v47, 1 }
 0x3eb   :  { %v2171_v5 = vrot.slane %v7065_v25, 2  ;;  %v2255_v9 = vsel %vm399_vm2, %v2253_v39, %v2254_v52 }
 0x3ec   :  { %v1956_v43 = vsel %vm399_vm2, %v1953_v6, %v1955_v8 }
 0x3ed   :  { %v2172_v50 = vsel %vm1134_vm4, %v2169_v31, %v2171_v5 }
 0x3ee   :  { %1973 = vrot.lane.b32.xlu0 %v1954_v22, %s5771_s0  ;;  %2072 = vrot.lane.b32.xlu1 %v7058_v37, %s5771_s0 }
 0x3ef   :  { %2191 = vrot.lane.b32.xlu2 %v2172_v50, %s5771_s0  ;;  %v7074_v28 = vpop.f32.mrf.mxu3 }
 0x3f0   :  { %v7076_v40 = vpop.f32.mrf.mxu2  ;;  %4790 = vmatmul.msk.bf16.gmra.mxu0 %vm775_vm3, %v6925_v12 }
 0x3f1   :  { %v7081_v61 = vpop.f32.mrf.mxu0  ;;  %v2256_v2 = vrot.slane %v7076_v40, 1 }
 0x3f2   :  { %v7083_v32 = vpop.f32.mrf.mxu1  ;;  %v1957_v56 = vrot.slane %v7081_v61, 1 }
 0x3f3   :  { %v2173_v34 = vrot.slane %v7083_v32, 2  ;;  %v2257_v4 = vsel %vm399_vm2, %v2254_v52, %v2256_v2 }
 0x3f4   :  { %v1958_v62 = vsel %vm399_vm2, %v1955_v8, %v1957_v56  ;;  %v5657_v8 = vld [vmem:[%s8774_s5 + $0x94] sm:$0xf] }
 0x3f5   :  { %v2174_v35 = vsel %vm1134_vm4, %v2171_v5, %v2173_v34 }
 0x3f6   :  { %2274 = vrot.lane.b32.xlu1 %v2255_v9, %s5771_s0  ;;  %2193 = vrot.lane.b32.xlu0 %v2174_v35, %s5771_s0 }
 0x3f7   :  { %2074 = vrot.lane.b32.xlu2 %v7074_v28, %s5771_s0  ;;  %v7093_v12 = vpop.f32.mrf.mxu3 }
 0x3f8   :  { %v7095_v20 = vpop.f32.mrf.mxu2 }
 0x3f9   :  { %v2258_v33 = vrot.slane %v7095_v20, 1  ;;  %v7099_v14 = vpop.f32.mrf.mxu0 }
 0x3fa   :  { %v7102_v3 = vpop.f32.mrf.mxu1  ;;  %v1959_v23 = vrot.slane %v7099_v14, 1 }
 0x3fb   :  { %v2259_v45 = vsel %vm399_vm2, %v2256_v2, %v2258_v33  ;;  %v2175_v11 = vrot.slane %v7102_v3, 2 }
 0x3fc   :  { %v1960_v46 = vsel %vm399_vm2, %v1957_v56, %v1959_v23 }
 0x3fd   :  { %v2176_v36 = vsel %vm1134_vm4, %v2173_v34, %v2175_v11 }
 0x3fe   :  { %1975 = vrot.lane.b32.xlu1 %v1956_v43, %s5771_s0  ;;  %2278 = vrot.lane.b32.xlu0 %v2259_v45, %s5771_s0 }
 0x3ff   :  { %2276 = vrot.lane.b32.xlu2 %v2257_v4, %s5771_s0  ;;  %v7110_v18 = vpop.f32.mrf.mxu3 }
 0x400   :  { %v7118_v16 = vpop.f32.mrf.mxu2  ;;  %4791 = vmatmul.msk.bf16.gmra.mxu0 %vm775_vm3, %v6961_v54 }
 0x401   :  { %v7123_v59 = vpop.f32.mrf.mxu0  ;;  %v2260_v17 = vrot.slane %v7118_v16, 1 }
 0x402   :  { %v7126_v60 = vpop.f32.mrf.mxu1 }
 0x403   :  { %v2261_v0 = vsel %vm399_vm2, %v2258_v33, %v2260_v17  ;;  %v2177_v15 = vrot.slane %v7126_v60, 2  ;;  %v4838_v33 = vld [vmem:[%s8774_s5 + $0x9c] sm:$0xf0] }
 0x404   :  { %v4841_v45 = vor.u32 %v5657_v8, %v4838_v33 }
 0x405   :  { %v2178_v50 = vsel %vm1134_vm4, %v2175_v11, %v2177_v15 }
 0x406   :  { %2076 = vrot.lane.b32.xlu1 %v7093_v12, %s5771_s0  ;;  %1979 = vrot.lane.b32.xlu0 %v1960_v46, %s5771_s0 }
 0x407   :  { %1977 = vrot.lane.b32.xlu2 %v1958_v62, %s5771_s0  ;;  %v7134_v54 = vpop.f32.mrf.mxu3  ;;  %2582 = vmatpush.bf16.msrb.mxu1 %v4841_v45 }
 0x408   :  { %v7136_v49 = vpop.f32.mrf.mxu2 }
 0x409   :  { %v7140_v10 = vpop.f32.mrf.mxu0  ;;  %v2262_v6 = vrot.slane %v7136_v49, 1 }
 0x40a   :  { %v7142_v53 = vpop.f32.mrf.mxu1  ;;  %v1963_v34 = vrot.slane %v7140_v10, 1 }
 0x40b   :  { %v2263_v39 = vsel %vm399_vm2, %v2260_v17, %v2262_v6  ;;  %v2179_v63 = vrot.slane %v7142_v53, 2 }
 0x40d   :  { %v2180_v11 = vsel %vm1134_vm4, %v2177_v15, %v2179_v63 }
 0x40e   :  { %2280 = vrot.lane.b32.xlu1 %v2261_v0, %s5771_s0  ;;  %2195 = vrot.lane.b32.xlu0 %v2176_v36, %s5771_s0 }
 0x40f   :  { %2078 = vrot.lane.b32.xlu2 %v7110_v18, %s5771_s0  ;;  %v7155_v31 = vpop.f32.mrf.mxu3 }
 0x410   :  { %v7150_v21 = vpop.f32.mrf.mxu2  ;;  %4792 = vmatmul.msk.bf16.gmra.mxu0 %vm775_vm3, %v6990_v48  ;;  %v1961_v48 = vrot.slane %v7123_v59, 1 }
 0x411   :  { %v2264_v44 = vrot.slane %v7150_v21, 1  ;;  %v7159_v5 = vpop.f32.mrf.mxu0 }
 0x412   :  { %v7163_v52 = vpop.f32.mrf.mxu1  ;;  %v1962_v43 = vsel %vm399_vm2, %v1959_v23, %v1961_v48  ;;  %v1964_v4 = vsel %vm399_vm2, %v1961_v48, %v1963_v34 }
 0x413   :  { %v2265_v22 = vsel %vm399_vm2, %v2262_v6, %v2264_v44  ;;  %v2181_v57 = vrot.slane %v7163_v52, 2 }
 0x415   :  { %v2182_v62 = vsel %vm1134_vm4, %v2179_v63, %v2181_v57 }
 0x416   :  { %2284 = vrot.lane.b32.xlu0 %v2265_v22, %s5771_s0  ;;  %2197 = vrot.lane.b32.xlu1 %v2178_v50, %s5771_s0 }
 0x417   :  { %2282 = vrot.lane.b32.xlu2 %v2263_v39, %s5771_s0  ;;  %v7171_v9 = vpop.f32.mrf.mxu3 }
 0x418   :  { %v7173_v35 = vpop.f32.mrf.mxu2 }
 0x419   :  { %v2266_v0 = vrot.slane %v7173_v35, 1 }
 0x41b   :  { %v2267_v39 = vsel %vm399_vm2, %v2264_v44, %v2266_v0 }
 0x41d   :  { %v7181_v2 = vpop.f32.mrf.mxu0 }
 0x41e   :  { %2080 = vrot.lane.b32.xlu0 %v7134_v54, %s5771_s0  ;;  %1981 = vrot.lane.b32.xlu1 %v1962_v43, %s5771_s0  ;;  %v7188_v1 = vpop.f32.mrf.mxu1 }
 0x41f   :  { %1983 = vrot.lane.b32.xlu2 %v1964_v4, %s5771_s0  ;;  %v2183_v43 = vrot.slane %v7188_v1, 2 }
 0x420   :  { %4793 = vmatmul.msk.bf16.gmra.mxu0 %vm775_vm3, %v7002_v51  ;;  %v1965_v51 = vrot.slane %v7159_v5, 1 }
 0x422   :  { %v1966_v15 = vsel %vm399_vm2, %v1963_v34, %v1965_v51  ;;  %v2184_v34 = vsel %vm1134_vm4, %v2181_v57, %v2183_v43  ;;  %v2025_v57 = vrot.slane %v7024_v13, 2  ;;  %v2124_v13 = vrot.slane %v7035_v29, 1  ;;  %v4856_v29 = vld [vmem:[%s8774_s5 + $0xb0] sm:$0xf] }
 0x423   :  { %v7195_v23 = vpop.f32.mrf.mxu3 }
 0x424   :  { %v7197_v56 = vpop.f32.mrf.mxu2 }
 0x425   :  { %v1767_v46 = vpop.f32.mrf.mxu0  ;;  %v2268_v36 = vrot.slane %v7197_v56, 1 }
 0x426   :  { %2082 = vrot.lane.b32.xlu1 %v7155_v31, %s5771_s0  ;;  %2201 = vrot.lane.b32.xlu0 %v2182_v62, %s5771_s0  ;;  %v7204_v17 = vpop.f32.mrf.mxu1  ;;  %v5654_v62 = vld [vmem:[%s8774_s5 + $0x7c] sm:$0xf] }
 0x427   :  { %2199 = vrot.lane.b32.xlu2 %v2180_v11, %s5771_s0  ;;  %v2269_v48 = vsel %vm399_vm2, %v2266_v0, %v2268_v36  ;;  %v4826_v11 = vld [vmem:[%s8774_s5 + $0x84] sm:$0xf0] }
 0x428   :  { %v4829_v0 = vor.u32 %v5654_v62, %v4826_v11 }
 0x42a   :  { %2583 = vmatpush.bf16.msrb.mxu1 %v4829_v0 }
 0x42b   :  { %v1808_v6 = vpop.f32.mrf.mxu3 }
 0x42c   :  { %v7210_v22 = vpop.f32.mrf.mxu2 }
 0x42d   :  { %v1769_v50 = vpop.f32.mrf.mxu0  ;;  %v2270_v33 = vrot.slane %v7210_v22, 1 }
 0x42e   :  { %2286 = vrot.lane.b32.xlu1 %v2267_v39, %s5771_s0  ;;  %1985 = vrot.lane.b32.xlu0 %v1966_v15, %s5771_s0  ;;  %v1852_v8 = vpop.f32.mrf.mxu1  ;;  %v2185_v50 = vrot.slane %v7204_v17, 2 }
 0x42f   :  { %2288 = vrot.lane.b32.xlu2 %v2269_v48, %s5771_s0  ;;  %v2271_v44 = vsel %vm399_vm2, %v2268_v36, %v2270_v33  ;;  %v1967_v36 = vrot.slane %v7181_v2, 1  ;;  %v2069_v48 = vpop.permute.xlu2 %2068 }
 0x433   :  { %v1811_v45 = vpop.f32.mrf.mxu3 }
 0x434   :  { %v7220_v4 = vpop.f32.mrf.mxu2  ;;  %v1968_v45 = vsel %vm399_vm2, %v1965_v51, %v1967_v36 }
 0x435   :  { %v1770_v63 = vpop.f32.mrf.mxu0  ;;  %v2272_v62 = vrot.slane %v7220_v4, 1 }
 0x436   :  { %2084 = vrot.lane.b32.xlu1 %v7171_v9, %s5771_s0  ;;  %2290 = vrot.lane.b32.xlu0 %v2271_v44, %s5771_s0  ;;  %v1853_v46 = vpop.f32.mrf.mxu1  ;;  %v2186_v63 = vsel %vm1134_vm4, %v2183_v43, %v2185_v50  ;;  %v2024_v44 = vrot.slane %v7016_v7, 2  ;;  %v2123_v43 = vrot.slane %v7030_v58, 1  ;;  %v5662_v58 = vld [vmem:[%s8774_s5 + $0xb8] sm:$0xf0] }
 0x437   :  { %2203 = vrot.lane.b32.xlu2 %v2184_v34, %s5771_s0  ;;  %v2273_v7 = vsel %vm399_vm2, %v2270_v33, %v2272_v62 }
 0x438   :  { %v2026_v51 = vsel %vm1134_vm4, %v2024_v44, %v2025_v57 }
 0x43b   :  { %v1812_v39 = vpop.f32.mrf.mxu3 }
 0x43c   :  { %v1894_v15 = vpop.f32.mrf.mxu2  ;;  %v1972_v39 = vpop.permute.xlu2 %1971 }
 0x43d   :  { %v1905_v8 = vpop.f32.mrf.mxu0 }
 0x43e   :  { %1987 = vrot.lane.b32.xlu1 %v1968_v45, %s5771_s0  ;;  %2205 = vrot.lane.b32.xlu0 %v2186_v63, %s5771_s0  ;;  %v2125_v8 = vsel %vm399_vm2, %v2123_v43, %v2124_v13  ;;  %v2003_v63 = vadd.f32 %v1972_v39, %v7018_v27  ;;  %v4814_v27 = vld [vmem:[%s8774_s5 + $0x6c] sm:$0xf0] }
 0x43f   :  { %2086 = vrot.lane.b32.xlu2 %v7195_v23, %s5771_s0  ;;  %v1970_v34 = vpop.permute.xlu1 %1969 }
 0x440   :  { %v2002_v46 = vadd.f32 %v1970_v34, %v7014_v55  ;;  %v2126_v34 = vrot.slane %v7051_v26, 1 }
 0x442   :  { %v2056_v11 = vadd.f32 %v2026_v51, %v2002_v46 }
 0x444   :  { %v2101_v0 = vadd.f32 %v2069_v48, %v2056_v11  ;;  %v4857_v48 = vor.u32 %v5662_v58, %v4856_v29  ;;  %v2029_v29 = vrot.slane %v7058_v37, 2 }
 0x445   :  { %v1906_v15 = vpop.f32.mrf.mxu0 }
 0x446   :  { %2292 = vrot.lane.b32.xlu1 %v2273_v7, %s5771_s0  ;;  %2088 = vrot.lane.b32.xlu0 %v1808_v6, %s5771_s0  ;;  %v2155_v55 = vadd.f32 %v2125_v8, %v2101_v0  ;;  %v4990_v7 = vld [vmem:[%s8774_s5 + $0x108] sm:$0xf]  ;;  %v5673_v8 = vld [vmem:[%s8774_s5 + $0x110] sm:$0xf0] }
 0x447   :  { %1989 = vrot.lane.b32.xlu2 %v1967_v36, %s5771_s0  ;;  %2607 = vmatpush.bf16.msrb.mxu2 %v4857_v48  ;;  %v2027_v36 = vrot.slane %v7043_v42, 2  ;;  %v2127_v42 = vsel %vm399_vm2, %v2124_v13, %v2126_v34  ;;  %v4991_v58 = vor.u32 %v5673_v8, %v4990_v7  ;;  %v4848_v13 = vld [vmem:[%s8774_s5 + $0xa8] sm:$0xf] }
 0x449   :  { %v7260_v33 = vpop.permute.xlu2 %2191  ;;  %v2028_v46 = vsel %vm1134_vm4, %v2025_v57, %v2027_v36  ;;  %2896 = vmatpush.bf16.msra.mxu0 %v4991_v58  ;;  %v4844_v58 = vld [vmem:[%s8774_s5 + $0x98] sm:$0xf] }
 0x44a   :  { %v2057_v11 = vadd.f32 %v2028_v46, %v2003_v63  ;;  %v5661_v63 = vld [vmem:[%s8774_s5 + $0xb0] sm:$0xf0] }
 0x44d   :  { %v7262_v45 = vpop.f32.mrf.mxu0 }
 0x44e   :  { %2207 = vrot.lane.b32.xlu1 %v2185_v50, %s5771_s0  ;;  %v5651_v50 = vld [vmem:[%s8774_s5 + $0x64] sm:$0xf] }
 0x44f   :  { %2294 = vrot.lane.b32.xlu2 %v2272_v62, %s5771_s0  ;;  %v4817_v62 = vor.u32 %v5651_v50, %v4814_v27  ;;  %v5670_v50 = vld [vmem:[%s8774_s5 + $0xf8] sm:$0xf0]  ;;  %v2128_v27 = vrot.slane %v7065_v25, 1 }
 0x450   :  { %v2188_v6 = vpop.permute.xlu0 %2187 }
 0x451   :  { %v7272_v51 = vpop.permute.xlu2 %2074  ;;  %2584 = vmatpush.bf16.msrb.mxu1 %v4817_v62 }
 0x455   :  { %v7268_v44 = vpop.f32.mrf.mxu0 }
 0x458   :  { %v2071_v43 = vpop.permute.xlu0 %2070  ;;  %v2190_v0 = vpop.permute.xlu1 %2189 }
 0x459   :  { %v2102_v15 = vadd.f32 %v2071_v43, %v2057_v11  ;;  %v2277_v62 = vpop.permute.xlu2 %2276 }
 0x45b   :  { %v2156_v26 = vadd.f32 %v2127_v42, %v2102_v15  ;;  %v2330_v42 = vrot.slane %v7268_v44, 2  ;;  %v4836_v44 = vld [vmem:[%s8774_s5 + $0x90] sm:$0xf] }
 0x45d   :  { %v2221_v57 = vadd.f32 %v2190_v0, %v2156_v26  ;;  %v7281_v39 = vpop.f32.mrf.mxu0  ;;  %v4849_v0 = vor.u32 %v5661_v63, %v4848_v13  ;;  %v2030_v26 = vsel %vm1134_vm4, %v2027_v36, %v2029_v29  ;;  %v5659_v13 = vld [vmem:[%s8774_s5 + $0xa0] sm:$0xf0] }
 0x45e   :  { %v2332_v46 = vrot.slane %v7281_v39, 2  ;;  %v2132_v39 = vrot.slane %v7102_v3, 1 }
 0x45f   :  { %v2232_v48 = vadd.f32 %v2221_v57, %v7060_v30  ;;  %v4978_v30 = vld [vmem:[%s8774_s5 + $0xf0] sm:$0xf]  ;;  %2555 = vmatpush.bf16.msrb.mxu3 %v4849_v0  ;;  %v4966_v0 = vld [vmem:[%s8774_s5 + $0xd8] sm:$0xf] }
 0x460   :  { %v1974_v11 = vpop.permute.xlu0 %1973  ;;  %v2073_v43 = vpop.permute.xlu1 %2072  ;;  %v4979_v57 = vor.u32 %v5670_v50, %v4978_v30  ;;  %v2333_v36 = vsel %vm1134_vm4, %v2330_v42, %v2332_v46  ;;  %v2129_v30 = vsel %vm399_vm2, %v2126_v34, %v2128_v27  ;;  %v2329_v34 = vrot.slane %v7262_v45, 2  ;;  %v5664_v45 = vld [vmem:[%s8774_s5 + $0xc8] sm:$0xf0] }
 0x461   :  { %v2004_v15 = vadd.f32 %v1974_v11, %v7032_v38  ;;  %v2220_v38 = vadd.f32 %v2188_v6, %v2155_v55  ;;  %v2308_v7 = vadd.f32 %v2277_v62, %v2232_v48  ;;  %v4845_v55 = vor.u32 %v5659_v13, %v4844_v58  ;;  %v5658_v6 = vld [vmem:[%s8774_s5 + $0x98] sm:$0xf0]  ;;  %v5655_v58 = vld [vmem:[%s8774_s5 + $0x80] sm:$0xf0] }
 0x462   :  { %2897 = vmatpush.bf16.msra.mxu0 %v4979_v57  ;;  %v4837_v11 = vor.u32 %v5658_v6, %v4836_v44  ;;  %v2331_v6 = vsel %vm1134_vm4, %v2329_v34, %v2330_v42  ;;  %v4820_v42 = vld [vmem:[%s8774_s5 + $0x68] sm:$0xf]  ;;  %v2031_v34 = vrot.slane %v7074_v28, 2 }
 0x463   :  { %v2058_v8 = vadd.f32 %v2030_v26, %v2004_v15  ;;  %v5667_v15 = vld [vmem:[%s8774_s5 + $0xe0] sm:$0xf0]  ;;  %2608 = vmatpush.bf16.msrb.mxu2 %v4845_v55  ;;  %v2362_v62 = vadd.f32 %v2333_v36, %v2308_v7  ;;  %v2231_v57 = vadd.f32 %v2220_v38, %v7045_v19  ;;  %v4832_v19 = vld [vmem:[%s8774_s5 + $0x80] sm:$0xf]  ;;  %v5656_v38 = vld [vmem:[%s8774_s5 + $0x88] sm:$0xf0] }
 0x464   :  { %v4967_v50 = vor.u32 %v5667_v15, %v4966_v0  ;;  %2556 = vmatpush.bf16.msrb.mxu3 %v4837_v11  ;;  %v4833_v36 = vor.u32 %v5656_v38, %v4832_v19  ;;  %v4954_v55 = vld [vmem:[%s8774_s5 + $0xc0] sm:$0xf]  ;;  %v2032_v28 = vsel %vm1134_vm4, %v2029_v29, %v2031_v34 }
 0x465   :  { %v2103_v48 = vadd.f32 %v2073_v43, %v2058_v8  ;;  %v7325_v63 = vpop.f32.mrf.mxu0  ;;  %v7337_v43 = vperm.slane %v6800_v41, 3  ;;  %v4824_v8 = vld [vmem:[%s8774_s5 + $0x78] sm:$0xf] }
 0x466   :  { %2898 = vmatpush.bf16.msra.mxu0 %v4967_v50  ;;  %v4825_v41 = vor.u32 %v5655_v58, %v4824_v8  ;;  %v5652_v50 = vld [vmem:[%s8774_s5 + $0x68] sm:$0xf0] }
 0x467   :  { %v2157_v26 = vadd.f32 %v2129_v30, %v2103_v48  ;;  %v4955_v48 = vor.u32 %v5664_v45, %v4954_v55  ;;  %v2374_v11 = vadd.f32 %v7337_v43, %v2362_v62  ;;  %2609 = vmatpush.bf16.msrb.mxu2 %v4833_v36  ;;  %v4812_v30 = vld [vmem:[%s8774_s5 + $0x60] sm:$0xf]  ;;  %v1978_v62 = vpop.permute.xlu2 %1977  ;;  %v2130_v55 = vrot.slane %v7083_v32, 1 }
 0x468   :  { %v2275_v13 = vpop.permute.xlu1 %2274  ;;  %v7347_v44 = vpop.permute.xlu0 %2193  ;;  %2557 = vmatpush.bf16.msrb.mxu3 %v4825_v41 }
 0x469   :  { %v2307_v7 = vadd.f32 %v2275_v13, %v2231_v57  ;;  %v2222_v15 = vadd.f32 %v7260_v33, %v2157_v26  ;;  %v4813_v57 = vor.u32 %v5652_v50, %v4812_v30  ;;  %v5653_v33 = vld [vmem:[%s8774_s5 + $0x70] sm:$0xf0]  ;;  %v2334_v13 = vrot.slane %v7325_v63, 2 }
 0x46a   :  { %2899 = vmatpush.bf16.msra.mxu0 %v4955_v48  ;;  %v4821_v58 = vor.u32 %v5653_v33, %v4820_v42  ;;  %v2385_v41 = vmax.f32 %v2374_v11, 0.0  ;;  %v2006_v63 = vadd.f32 %v1978_v62, %v7063_v47  ;;  %v2131_v37 = vsel %vm399_vm2, %v2128_v27, %v2130_v55  ;;  %v4913_v47 = vld [vmem:[%s8774_s5 + $0x54] sm:$0xf0] }
 0x46b   :  { %v2361_v0 = vadd.f32 %v2331_v6, %v2307_v7  ;;  %v2233_v38 = vadd.f32 %v2222_v15, %v7076_v40  ;;  %v2335_v40 = vsel %vm1134_vm4, %v2332_v46, %v2334_v13 }
 0x46c   :  { %2558 = vmatpush.bf16.msrb.mxu3 %v4813_v57  ;;  %2610 = vmatpush.bf16.msrb.mxu2 %v4821_v58 }
 0x46d   :  { %v2373_v26 = vadd.f32 %v7337_v43, %v2361_v0  ;;  %v7377_v8 = vpop.f32.mrf.mxu0  ;;  %v2033_v0 = vrot.slane %v7093_v12, 2  ;;  %v5648_v12 = vld [vmem:[%s8774_s5 + $0x4c] sm:$0xf] }
 0x46e   :  { %v4916_v46 = vor.u32 %v5648_v12, %v4913_v47 }
 0x46f   :  { %v2384_v19 = vmax.f32 %v2373_v26, 0.0  ;;  %v2034_v29 = vsel %vm1134_vm4, %v2031_v34, %v2033_v0  ;;  %v2079_v50 = vpop.permute.xlu2 %2078  ;;  %v2133_v34 = vsel %vm399_vm2, %v2130_v55, %v2132_v39 }
 0x470   :  { %v1976_v7 = vpop.permute.xlu1 %1975  ;;  %v2279_v36 = vpop.permute.xlu0 %2278  ;;  %v2060_v25 = vadd.f32 %v2034_v29, %v2006_v63  ;;  %2733 = vmatpush.bf16.msra.mxu1 %v4916_v46 }
 0x471   :  { %v7383_v45 = vpack.c.bf16 %v2385_v41, %v2384_v19  ;;  %v2005_v6 = vadd.f32 %v1976_v7, %v7049_v24  ;;  %v2309_v48 = vadd.f32 %v2279_v36, %v2233_v38  ;;  %v2134_v19 = vrot.slane %v7126_v60, 1  ;;  %v4889_v60 = vld [vmem:[%s8774_s5 + $0x24] sm:$0xf0] }
 0x473   :  { %v2059_v11 = vadd.f32 %v2032_v28, %v2005_v6  ;;  %v2363_v15 = vadd.f32 %v2335_v40, %v2309_v48 }
 0x475   :  { %v2104_v32 = vadd.f32 %v7272_v51, %v2059_v11  ;;  %v2375_v30 = vadd.f32 %v7337_v43, %v2363_v15  ;;  %v7396_v24 = vpop.f32.mrf.mxu0  ;;  %v2035_v51 = vrot.slane %v7110_v18, 2 }
 0x477   :  { %v2386_v42 = vmax.f32 %v2375_v30, 0.0  ;;  %v2158_v57 = vadd.f32 %v2131_v37, %v2104_v32  ;;  %v2036_v3 = vsel %vm1134_vm4, %v2033_v0, %v2035_v51  ;;  %v2283_v11 = vpop.permute.xlu2 %2282 }
 0x478   :  { %v2077_v27 = vpop.permute.xlu1 %2076  ;;  %v1980_v33 = vpop.permute.xlu0 %1979 }
 0x479   :  { %v7410_v62 = vpack.c.bf16 %v2386_v42, %v2385_v41  ;;  %v2105_v26 = vadd.f32 %v2077_v27, %v2060_v25  ;;  %v2007_v58 = vadd.f32 %v1980_v33, %v7081_v61  ;;  %v2223_v7 = vadd.f32 %v7347_v44, %v2158_v57  ;;  %v4901_v33 = vld [vmem:[%s8774_s5 + $0x3c] sm:$0xf0] }
 0x47a   :  { %v2336_v41 = vrot.slane %v7377_v8, 2  ;;  %v2135_v61 = vsel %vm399_vm2, %v2132_v39, %v2134_v19  ;;  %v2338_v44 = vrot.slane %v7396_v24, 2  ;;  %v2437_v8 = vshll.u32 %v7383_v45, 16 }
 0x47b   :  { %v2061_v38 = vadd.f32 %v2036_v3, %v2007_v58  ;;  %v2159_v36 = vadd.f32 %v2133_v34, %v2105_v26  ;;  %v2234_v28 = vadd.f32 %v2223_v7, %v7095_v20  ;;  %v2804_v58 = vrot.slane %v7383_v45, 1 }
 0x47c   :  { %v2337_v32 = vsel %vm1134_vm4, %v2334_v13, %v2336_v41  ;;  %v2339_v20 = vsel %vm1134_vm4, %v2336_v41, %v2338_v44  ;;  %v2439_v57 = vrot.slane %v2437_v8, 1  ;;  %v2435_v3 = vshrl.u32 %v7383_v45, 16 }
 0x47d   :  { %v7419_v6 = vpop.f32.mrf.mxu0  ;;  %v2106_v48 = vadd.f32 %v2079_v50, %v2061_v38  ;;  %v2039_v8 = vrot.slane %v7155_v31, 2 }
 0x47e   :  { %v2340_v26 = vrot.slane %v7419_v6, 2  ;;  %v2440_v41 = vor.u32 %v2439_v57, %v2435_v3 }
 0x47f   :  { %v2160_v40 = vadd.f32 %v2135_v61, %v2106_v48 }
 0x480   :  { %v2281_v63 = vpop.permute.xlu1 %2280  ;;  %v2196_v0 = vpop.permute.xlu0 %2195 }
 0x481   :  { %v2310_v55 = vadd.f32 %v2281_v63, %v2234_v28  ;;  %v2224_v15 = vadd.f32 %v2196_v0, %v2159_v36 }
 0x483   :  { %v2364_v30 = vadd.f32 %v2337_v32, %v2310_v55  ;;  %v2235_v37 = vadd.f32 %v2224_v15, %v7118_v16  ;;  %v5645_v16 = vld [vmem:[%s8774_s5 + $0x34] sm:$0xf] }
 0x484   :  { %v4904_v34 = vor.u32 %v5645_v16, %v4901_v33 }
 0x485   :  { %v2376_v12 = vadd.f32 %v7337_v43, %v2364_v30  ;;  %v2311_v47 = vadd.f32 %v2283_v11, %v2235_v37  ;;  %v7431_v39 = vpop.f32.mrf.mxu0  ;;  %v2037_v11 = vrot.slane %v7134_v54, 2 }
 0x486   :  { %2734 = vmatpush.bf16.msra.mxu1 %v4904_v34 }
 0x487   :  { %v2387_v29 = vmax.f32 %v2376_v12, 0.0  ;;  %v2365_v46 = vadd.f32 %v2339_v20, %v2311_v47  ;;  %v2038_v12 = vsel %vm1134_vm4, %v2035_v51, %v2037_v11  ;;  %v2040_v18 = vsel %vm1134_vm4, %v2037_v11, %v2039_v8 }
 0x488   :  { %v2285_v50 = vpop.permute.xlu0 %2284  ;;  %v2198_v25 = vpop.permute.xlu1 %2197  ;;  %v2342_v11 = vrot.slane %v7431_v39, 2 }
 0x489   :  { %v7434_v24 = vpack.c.bf16 %v2387_v29, %v2386_v42  ;;  %v2377_v13 = vadd.f32 %v7337_v43, %v2365_v46  ;;  %v2225_v27 = vadd.f32 %v2198_v25, %v2160_v40  ;;  %v1984_v42 = vpop.permute.xlu2 %1983 }
 0x48a   :  { %v2009_v47 = vadd.f32 %v1984_v42, %v7123_v59 }
 0x48b   :  { %v2388_v38 = vmax.f32 %v2377_v13, 0.0  ;;  %v2236_v7 = vadd.f32 %v2225_v27, %v7136_v49  ;;  %v2805_v36 = vrot.slane %v7434_v24, 1  ;;  %v2442_v48 = vshll.u32 %v7434_v24, 16 }
 0x48c   :  { %v2341_v49 = vsel %vm1134_vm4, %v2338_v44, %v2340_v26  ;;  %v2136_v44 = vrot.slane %v7142_v53, 1  ;;  %v2138_v53 = vrot.slane %v7163_v52, 1  ;;  %v2063_v31 = vadd.f32 %v2040_v18, %v2009_v47 }
 0x48d   :  { %v7449_v61 = vpack.c.bf16 %v2388_v38, %v2387_v29  ;;  %v2312_v28 = vadd.f32 %v2285_v50, %v2236_v7  ;;  %v7451_v40 = vpop.f32.mrf.mxu0  ;;  %v7454_v63 = vsel %vm399_vm2, %v2804_v58, %v2805_v36  ;;  %v2444_v0 = vrot.slane %v2442_v48, 1  ;;  %v5642_v58 = vld [vmem:[%s8774_s5 + $0x1c] sm:$0xf] }
 0x48e   :  { %5000 = vmatmul.msk.bf16.vlgmr.msra.gmra.mxu0 %vm775_vm3, %v7454_v63  ;;  %v2139_v52 = vsel %vm399_vm2, %v2136_v44, %v2138_v53  ;;  %v2446_v42 = vshrl.u32 %v7434_v24, 16  ;;  %v2343_v47 = vsel %vm1134_vm4, %v2340_v26, %v2342_v11 }
 0x48f   :  { %v2366_v55 = vadd.f32 %v2341_v49, %v2312_v28  ;;  %v2445_v15 = vsel %vm2433_vm5, %v2440_v41, %v2444_v0  ;;  %v2344_v49 = vrot.slane %v7451_v40, 2  ;;  %v5647_v40 = vld [vmem:[%s8774_s5 + $0x40] sm:$0xf0] }
 0x490   :  { %4858 = vmatmul.msk.bf16.vlgmr.msrb.gmra.mxu3 %vm775_vm3, %v2445_v15  ;;  %4863 = vmatmul.msk.bf16.vlgmr.msrb.gmra.mxu1 %vm775_vm3, %v2445_v15  ;;  %v2081_v32 = vpop.permute.xlu0 %2080  ;;  %v1982_v30 = vpop.permute.xlu1 %1981  ;;  %v2448_v28 = vor.u32 %v2446_v42, %v2444_v0 }
 0x491   :  { %v7466_v37 = vadd.f32 %v7337_v43, %v2366_v55  ;;  %4868 = vmatmul.msk.bf16.vlgmr.msrb.gmra.mxu2 %vm775_vm3, %v2445_v15  ;;  %v2008_v54 = vadd.f32 %v1982_v30, %v7099_v14  ;;  %v2200_v46 = vpop.permute.xlu2 %2199  ;;  %v2137_v14 = vsel %vm399_vm2, %v2134_v19, %v2136_v44  ;;  %v4892_v19 = vor.u32 %v5642_v58, %v4889_v60 }
 0x492   :  { %v2041_v44 = vrot.slane %v7171_v9, 2  ;;  %v2140_v9 = vrot.slane %v7188_v1, 1  ;;  %v4875_v1 = vld [vmem:[%s8774_s5] sm:$0xf] }
 0x493   :  { %v2389_v20 = vmax.f32 %v7466_v37, 0.0  ;;  %v2062_v29 = vadd.f32 %v2038_v12, %v2008_v54  ;;  %2735 = vmatpush.bf16.msra.mxu1 %v4892_v19  ;;  %v2345_v12 = vsel %vm1134_vm4, %v2342_v11, %v2344_v49  ;;  %v2043_v11 = vrot.slane %v7195_v23, 2  ;;  %v5387_v23 = vld [vmem:[%s8774_s5 + $0x2f4] sm:$0xf0] }
 0x494   :  { %v2141_v60 = vsel %vm399_vm2, %v2138_v53, %v2140_v9  ;;  %v5639_v53 = vld [vmem:[%s8774_s5 + $0x4] sm:$0xf] }
 0x495   :  { %v7477_v50 = vpack.c.bf16 %v2389_v20, %v2388_v38  ;;  %v2107_v25 = vadd.f32 %v2081_v32, %v2062_v29  ;;  %v7479_v57 = vpop.f32.mrf.mxu0 }
 0x496   :  { %v2346_v55 = vrot.slane %v7479_v57, 2 }
 0x497   :  { %v2161_v51 = vadd.f32 %v2137_v14, %v2107_v25  ;;  %v2450_v59 = vshll.u32 %v7477_v50, 16  ;;  %v2807_v33 = vrot.slane %v7477_v50, 1  ;;  %v2454_v19 = vshrl.u32 %v7477_v50, 16 }
 0x498   :  { %v2083_v13 = vpop.permute.xlu1 %2082  ;;  %v2202_v27 = vpop.permute.xlu0 %2201 }
 0x499   :  { %v2108_v16 = vadd.f32 %v2083_v13, %v2063_v31  ;;  %v2226_v34 = vadd.f32 %v2200_v46, %v2161_v51  ;;  %v2452_v38 = vrot.slane %v2450_v59, 1  ;;  %v7499_v41 = vsel %vm399_vm2, %v2805_v36, %v2807_v33  ;;  %v2289_v32 = vpop.permute.xlu2 %2288 }
 0x49a   :  { %v2042_v51 = vsel %vm1134_vm4, %v2039_v8, %v2041_v44 }
 0x49b   :  { %v2162_v3 = vadd.f32 %v2139_v52, %v2108_v16  ;;  %v2237_v37 = vadd.f32 %v2226_v34, %v7150_v21  ;;  %v7510_v36 = vsel %vm2433_vm5, %v2448_v28, %v2452_v38  ;;  %v4877_v28 = vld [vmem:[%s8774_s5 + $0xc] sm:$0xf0] }
 0x49d   :  { %v2227_v7 = vadd.f32 %v2202_v27, %v2162_v3  ;;  %v7496_v48 = vpop.f32.mrf.mxu0 }
 0x49e   :  { %v2348_v15 = vrot.slane %v7496_v48, 2  ;;  %5001 = vmatmul.msk.bf16.gmra.mxu0 %vm775_vm3, %v7499_v41 }
 0x49f   :  { %v2238_v30 = vadd.f32 %v2227_v7, %v7173_v35 }
 0x4a0   :  { %v2287_v0 = vpop.permute.xlu1 %2286  ;;  %4859 = vmatmul.msk.bf16.gmra.mxu3 %vm775_vm3, %v7510_v36  ;;  %4864 = vmatmul.msk.bf16.gmra.mxu1 %vm775_vm3, %v7510_v36  ;;  %v1986_v39 = vpop.permute.xlu0 %1985  ;;  %v7521_v54 = vsel %vm1134_vm4, %v2346_v55, %v2348_v15 }
 0x4a1   :  { %v2314_v35 = vadd.f32 %v2289_v32, %v2238_v30  ;;  %v2313_v21 = vadd.f32 %v2287_v0, %v2237_v37  ;;  %4869 = vmatmul.msk.bf16.gmra.mxu2 %vm775_vm3, %v7510_v36  ;;  %v2010_v25 = vadd.f32 %v1986_v39, %v7140_v10  ;;  %v2204_v58 = vpop.permute.xlu2 %2203  ;;  %v4880_v30 = vor.u32 %v5639_v53, %v4877_v28  ;;  %v4895_v53 = vld [vmem:[%s8774_s5 + $0x20] sm:$0xf]  ;;  %v5644_v28 = vld [vmem:[%s8774_s5 + $0x28] sm:$0xf0] }
 0x4a3   :  { %v2368_v29 = vadd.f32 %v2345_v12, %v2314_v35  ;;  %v2367_v46 = vadd.f32 %v2343_v47, %v2313_v21  ;;  %v2064_v6 = vadd.f32 %v2042_v51, %v2010_v25  ;;  %v4911_v35 = vld [vmem:[%s8774_s5 + $0x48] sm:$0xf]  ;;  %v5649_v21 = vld [vmem:[%s8774_s5 + $0x50] sm:$0xf0]  ;;  %v4919_v12 = vld [vmem:[%s8774_s5 + $0x50] sm:$0xf]  ;;  %2736 = vmatpush.bf16.msra.mxu1 %v4880_v30 }
 0x4a4   :  { %v2142_v47 = vrot.slane %v7204_v17, 1  ;;  %v5681_v51 = vld [vmem:[%s8774_s5 + $0x154] sm:$0xf] }
 0x4a5   :  { %v7534_v14 = vadd.f32 %v7337_v43, %v2368_v29  ;;  %v2379_v18 = vadd.f32 %v7337_v43, %v2367_v46  ;;  %v1935_v31 = vpop.f32.mrf.mxu0  ;;  %v4912_v29 = vor.u32 %v5649_v21, %v4911_v35  ;;  %v5650_v46 = vld [vmem:[%s8774_s5 + $0x58] sm:$0xf0]  ;;  %v5035_v35 = vld [vmem:[%s8774_s5 + $0x12c] sm:$0xf0] }
 0x4a6   :  { %v4920_v31 = vor.u32 %v5650_v46, %v4919_v12  ;;  %v4883_v46 = vld [vmem:[%s8774_s5 + $0x8] sm:$0xf] }
 0x4a7   :  { %v2390_v59 = vmax.f32 %v2379_v18, 0.0  ;;  %v2391_v13 = vmax.f32 %v7534_v14, 0.0  ;;  %2707 = vmatpush.bf16.msra.mxu3 %v4912_v29 }
 0x4a8   :  { %v2085_v27 = vpop.permute.xlu1 %2084  ;;  %v2291_v32 = vpop.permute.xlu0 %2290  ;;  %2759 = vmatpush.bf16.msra.mxu2 %v4920_v31 }
 0x4a9   :  { %v7542_v26 = vpack.c.bf16 %v2391_v13, %v2390_v59  ;;  %v7544_v10 = vpack.c.bf16 %v2390_v59, %v2389_v20  ;;  %v2109_v16 = vadd.f32 %v2085_v27, %v2064_v6  ;;  %v2456_v20 = vor.u32 %v2454_v19, %v2452_v38  ;;  %v5071_v38 = vld [vmem:[%s8774_s5 + $0x174] sm:$0xf0]  ;;  %v5059_v59 = vld [vmem:[%s8774_s5 + $0x15c] sm:$0xf0]  ;;  %v4899_v6 = vld [vmem:[%s8774_s5 + $0x30] sm:$0xf] }
 0x4aa   :  { %v2044_v27 = vsel %vm1134_vm4, %v2041_v44, %v2043_v11  ;;  %v5047_v19 = vld [vmem:[%s8774_s5 + $0x144] sm:$0xf0] }
 0x4ab   :  { %v2163_v52 = vadd.f32 %v2141_v60, %v2109_v16  ;;  %v7550_v8 = vrot.slane %v7542_v26, 1  ;;  %v2458_v3 = vshll.u32 %v7542_v26, 16  ;;  %v5062_v16 = vor.u32 %v5681_v51, %v5059_v59  ;;  %v4907_v60 = vld [vmem:[%s8774_s5 + $0x38] sm:$0xf] }
 0x4ac   :  { %v4908_v44 = vor.u32 %v5647_v40, %v4907_v60  ;;  %v2462_v59 = vshrl.u32 %v7542_v26, 16 }
 0x4ad   :  { %v2228_v34 = vadd.f32 %v2204_v58, %v2163_v52  ;;  %v7556_v42 = vsel %vm399_vm2, %v2807_v33, %v7550_v8  ;;  %v7558_v7 = vrot.slane %v2458_v3, 1  ;;  %v5684_v33 = vld [vmem:[%s8774_s5 + $0x16c] sm:$0xf]  ;;  %v5646_v58 = vld [vmem:[%s8774_s5 + $0x38] sm:$0xf0] }
 0x4ae   :  { %5002 = vmatmul.msk.bf16.gmra.mxu0 %vm775_vm3, %v7556_v42  ;;  %v5074_v39 = vor.u32 %v5684_v33, %v5071_v38  ;;  %v5678_v52 = vld [vmem:[%s8774_s5 + $0x13c] sm:$0xf]  ;;  %v4887_v3 = vld [vmem:[%s8774_s5 + $0x18] sm:$0xf]  ;;  %v2143_v33 = vsel %vm399_vm2, %v2140_v9, %v2142_v47  ;;  %2760 = vmatpush.bf16.msra.mxu2 %v4908_v44  ;;  %v5640_v9 = vld [vmem:[%s8774_s5 + $0x8] sm:$0xf0] }
 0x4af   :  { %v2239_v37 = vadd.f32 %v2228_v34, %v7197_v56  ;;  %v7578_v0 = vsel %vm2433_vm5, %v2456_v20, %v7558_v7  ;;  %v2087_v34 = vpop.permute.xlu2 %2086  ;;  %v5643_v20 = vld [vmem:[%s8774_s5 + $0x20] sm:$0xf0]  ;;  %v5050_v38 = vor.u32 %v5678_v52, %v5047_v19 }
 0x4b0   :  { %v1988_v56 = vpop.permute.xlu1 %1987  ;;  %4860 = vmatmul.msk.bf16.gmra.mxu3 %vm775_vm3, %v7578_v0  ;;  %4865 = vmatmul.msk.bf16.gmra.mxu1 %vm775_vm3, %v7578_v0  ;;  %v2206_v29 = vpop.permute.xlu0 %2205 }
 0x4b1   :  { %v2315_v25 = vadd.f32 %v2291_v32, %v2239_v37  ;;  %v2011_v18 = vadd.f32 %v1988_v56, %v7159_v5  ;;  %4870 = vmatmul.msk.bf16.gmra.mxu2 %vm775_vm3, %v7578_v0  ;;  %v2347_v5 = vsel %vm1134_vm4, %v2344_v49, %v2346_v55  ;;  %3107 = vmatpush.bf16.msrb.mxu0 %v5074_v39  ;;  %v5675_v39 = vld [vmem:[%s8774_s5 + $0x124] sm:$0xf] }
 0x4b2   :  { %v4900_v55 = vor.u32 %v5646_v58, %v4899_v6  ;;  %v4888_v37 = vor.u32 %v5643_v20, %v4887_v3  ;;  %v4896_v56 = vor.u32 %v5644_v28, %v4895_v53  ;;  %v5038_v6 = vor.u32 %v5675_v39, %v5035_v35  ;;  %v4986_v20 = vld [vmem:[%s8774_s5 + $0xf8] sm:$0xf]  ;;  %v5671_v53 = vld [vmem:[%s8774_s5 + $0x100] sm:$0xf0]  ;;  %v5156_v39 = vld [vmem:[%s8774_s5 + $0x1d0] sm:$0xf] }
 0x4b3   :  { %v2369_v57 = vadd.f32 %v2347_v5, %v2315_v25  ;;  %v2065_v49 = vadd.f32 %v2044_v27, %v2011_v18  ;;  %v5641_v25 = vld [vmem:[%s8774_s5 + $0x10] sm:$0xf0]  ;;  %v4876_v5 = vor.u32 %v5640_v9, %v4875_v1  ;;  %v4987_v28 = vor.u32 %v5671_v53, %v4986_v20  ;;  %v5698_v35 = vld [vmem:[%s8774_s5 + $0x1d8] sm:$0xf0]  ;;  %v5069_v1 = vld [vmem:[%s8774_s5 + $0x168] sm:$0xf] }
 0x4b4   :  { %2708 = vmatpush.bf16.msra.mxu3 %v4900_v55  ;;  %2761 = vmatpush.bf16.msra.mxu2 %v4896_v56  ;;  %v4884_v60 = vor.u32 %v5641_v25, %v4883_v46  ;;  %v4992_v56 = vld [vmem:[%s8774_s5 + $0x114] sm:$0xf0]  ;;  %v5120_v20 = vld [vmem:[%s8774_s5 + $0x188] sm:$0xf]  ;;  %v5689_v53 = vld [vmem:[%s8774_s5 + $0x190] sm:$0xf0] }
 0x4b5   :  { %v2381_v32 = vadd.f32 %v7337_v43, %v2369_v57  ;;  %v2110_v30 = vadd.f32 %v2087_v34, %v2065_v49  ;;  %3108 = vmatpush.bf16.msrb.mxu0 %v5062_v16  ;;  %v7686_v57 = vor.u32 %v2462_v59, %v7558_v7  ;;  %v4998_v7 = vld [vmem:[%s8774_s5 + $0x110] sm:$0xf]  ;;  %v5144_v25 = vld [vmem:[%s8774_s5 + $0x1b8] sm:$0xf] }
 0x4b7   :  { %v2392_v21 = vmax.f32 %v2381_v32, 0.0  ;;  %v2164_v12 = vadd.f32 %v2143_v33, %v2110_v30  ;;  %v4974_v32 = vld [vmem:[%s8774_s5 + $0xe0] sm:$0xf]  ;;  %v5668_v30 = vld [vmem:[%s8774_s5 + $0xe8] sm:$0xf0] }
 0x4b8   :  { %2709 = vmatpush.bf16.msra.mxu3 %v4888_v37  ;;  %v2293_v40 = vpop.permute.xlu1 %2292  ;;  %2762 = vmatpush.bf16.msra.mxu2 %v4884_v60  ;;  %v4975_v33 = vor.u32 %v5668_v30, %v4974_v32  ;;  %v5682_v60 = vld [vmem:[%s8774_s5 + $0x158] sm:$0xf0]  ;;  %v5663_v30 = vld [vmem:[%s8774_s5 + $0xc4] sm:$0xf] }
 0x4b9   :  { %v7668_v18 = vpack.c.bf16 %v2392_v21, %v2392_v21  ;;  %v7672_v31 = vpack.c.bf16 %v2392_v21, %v2391_v13  ;;  %v2229_v51 = vadd.f32 %v2206_v29, %v2164_v12  ;;  %3109 = vmatpush.bf16.msrb.mxu0 %v5050_v38  ;;  %v5665_v38 = vld [vmem:[%s8774_s5 + $0xd0] sm:$0xf0]  ;;  %v5672_v12 = vld [vmem:[%s8774_s5 + $0x10c] sm:$0xf] }
 0x4ba   :  { %v4995_v9 = vor.u32 %v5672_v12, %v4992_v56  ;;  %v5685_v29 = vld [vmem:[%s8774_s5 + $0x170] sm:$0xf0] }
 0x4bb   :  { %v2240_v27 = vadd.f32 %v2229_v51, %v7210_v22  ;;  %v7677_v16 = vrot.slane %v7668_v18, 1  ;;  %v2466_v58 = vshll.u32 %v7668_v18, 16  ;;  %v2470_v34 = vshrl.u32 %v7668_v18, 16  ;;  %v5695_v51 = vld [vmem:[%s8774_s5 + $0x1c0] sm:$0xf0] }
 0x4bc   :  { %2710 = vmatpush.bf16.msra.mxu3 %v4876_v5  ;;  %v5070_v46 = vor.u32 %v5685_v29, %v5069_v1  ;;  %v5145_v59 = vor.u32 %v5695_v51, %v5144_v25  ;;  %v4980_v5 = vld [vmem:[%s8774_s5 + $0xfc] sm:$0xf0]  ;;  %v5697_v12 = vld [vmem:[%s8774_s5 + $0x1d0] sm:$0xf0] }
 0x4bd   :  { %v2316_v14 = vadd.f32 %v2293_v40, %v2240_v27  ;;  %v7683_v13 = vsel %vm399_vm2, %v7550_v8, %v7677_v16  ;;  %v2468_v49 = vrot.slane %v2466_v58, 1  ;;  %3110 = vmatpush.bf16.msrb.mxu0 %v5038_v6  ;;  %v5669_v6 = vld [vmem:[%s8774_s5 + $0xf4] sm:$0xf]  ;;  %v5057_v27 = vld [vmem:[%s8774_s5 + $0x150] sm:$0xf] }
 0x4be   :  { %5003 = vmatmul.msk.bf16.gmra.mxu0 %vm775_vm3, %v7683_v13  ;;  %3081 = vmatpush.bf16.msrb.mxu2 %v5070_v46  ;;  %v4983_v58 = vor.u32 %v5669_v6, %v4980_v5  ;;  %v5058_v40 = vor.u32 %v5682_v60, %v5057_v27  ;;  %v3180_v60 = vshll.u32 %v7410_v62, 16 }
 0x4bf   :  { %v2370_v22 = vadd.f32 %v7521_v54, %v2316_v14  ;;  %v2469_v55 = vsel %vm2433_vm5, %v7686_v57, %v2468_v49  ;;  %v5674_v54 = vld [vmem:[%s8774_s5 + $0x118] sm:$0xf0]  ;;  %v5132_v14 = vld [vmem:[%s8774_s5 + $0x1a0] sm:$0xf]  ;;  %v5692_v49 = vld [vmem:[%s8774_s5 + $0x1a8] sm:$0xf0] }
 0x4c0   :  { %4861 = vmatmul.msk.bf16.gmra.mxu3 %vm775_vm3, %v2469_v55  ;;  %4866 = vmatmul.msk.bf16.gmra.mxu1 %vm775_vm3, %v2469_v55  ;;  %v4999_v52 = vor.u32 %v5674_v54, %v4998_v7  ;;  %v5045_v7 = vld [vmem:[%s8774_s5 + $0x138] sm:$0xf]  ;;  %v5679_v54 = vld [vmem:[%s8774_s5 + $0x140] sm:$0xf0] }
 0x4c1   :  { %v2382_v44 = vadd.f32 %v7337_v43, %v2370_v22  ;;  %4871 = vmatmul.msk.bf16.gmra.mxu2 %vm775_vm3, %v2469_v55  ;;  %2922 = vmatpush.bf16.msrb.mxu3 %v4995_v9  ;;  %v5666_v22 = vld [vmem:[%s8774_s5 + $0xdc] sm:$0xf]  ;;  %v5133_v55 = vor.u32 %v5692_v49, %v5132_v14 }
 0x4c2   :  { %2948 = vmatpush.bf16.msrb.mxu1 %v4999_v52  ;;  %3082 = vmatpush.bf16.msrb.mxu2 %v5058_v40  ;;  %v5136_v40 = vld [vmem:[%s8774_s5 + $0x1b0] sm:$0xf]  ;;  %v5694_v14 = vld [vmem:[%s8774_s5 + $0x1b8] sm:$0xf0] }
 0x4c3   :  { %v7703_v19 = vmax.f32 %v2382_v44, 0.0  ;;  %v4968_v44 = vld [vmem:[%s8774_s5 + $0xe4] sm:$0xf0] }
 0x4c4   :  { %v4971_v52 = vor.u32 %v5666_v22, %v4968_v44  ;;  %v3184_v22 = vshll.u32 %v7449_v61, 16  ;;  %v3182_v44 = vrot.slane %v3180_v60, 1 }
 0x4c5   :  { %v7706_v3 = vpack.c.bf16 %v7703_v19, %v2392_v21  ;;  %v5157_v21 = vor.u32 %v5698_v35, %v5156_v39  ;;  %2923 = vmatpush.bf16.msrb.mxu3 %v4983_v58 }
 0x4c6   :  { %2949 = vmatpush.bf16.msrb.mxu1 %v4987_v28  ;;  %v5121_v28 = vor.u32 %v5689_v53, %v5120_v20 }
 0x4c7   :  { %3346 = vmatpush.bf16.msra.mxu0 %v5157_v21  ;;  %v5148_v21 = vld [vmem:[%s8774_s5 + $0x1c8] sm:$0xf] }
 0x4c8   :  { %v5149_v56 = vor.u32 %v5697_v12, %v5148_v21  ;;  %v5691_v21 = vld [vmem:[%s8774_s5 + $0x1a0] sm:$0xf0] }
 0x4c9   :  { %2924 = vmatpush.bf16.msrb.mxu3 %v4971_v52 }
 0x4ca   :  { %2950 = vmatpush.bf16.msrb.mxu1 %v4975_v33  ;;  %v4956_v33 = vld [vmem:[%s8774_s5 + $0xcc] sm:$0xf0] }
 0x4cb   :  { %3347 = vmatpush.bf16.msra.mxu0 %v5145_v59  ;;  %v7852_v59 = vpack.c.bf16 %v7703_v19, %v7703_v19 }
 0x4ce   :  { %5004 = vmatmul.msk.bf16.gmra.mxu0 %vm775_vm3, %v7677_v16 }
 0x4cf   :  { %3348 = vmatpush.bf16.msra.mxu0 %v5133_v55  ;;  %v5137_v55 = vor.u32 %v5694_v14, %v5136_v40  ;;  %v3198_v40 = vshll.u32 %v7672_v31, 16  ;;  %v3195_v14 = vshrl.u32 %v7544_v10, 16 }
 0x4d0   :  { %4862 = vmatmul.msk.bf16.gmra.mxu3 %vm775_vm3, %v2470_v34  ;;  %4867 = vmatmul.msk.bf16.gmra.mxu1 %vm775_vm3, %v2470_v34 }
 0x4d1   :  { %4872 = vmatmul.msk.bf16.gmra.mxu2 %vm775_vm3, %v2470_v34  ;;  %v5046_v34 = vor.u32 %v5679_v54, %v5045_v7  ;;  %v3186_v7 = vrot.slane %v3184_v22, 1 }
 0x4d3   :  { %3083 = vmatpush.bf16.msrb.mxu2 %v5046_v34  ;;  %3349 = vmatpush.bf16.msra.mxu0 %v5121_v28 }
 0x4de   :  { %5084 = vmatmul.msk.bf16.vlgmr.msrb.gmra.mxu0 %vm775_vm3, %v7410_v62 }
 0x4e0   :  { %4921 = vmatmul.msk.bf16.vlgmr.msra.gmra.mxu3 %vm775_vm3, %v7383_v45  ;;  %4926 = vmatmul.msk.bf16.vlgmr.msra.gmra.mxu1 %vm775_vm3, %v7383_v45 }
 0x4e1   :  { %4931 = vmatmul.msk.bf16.vlgmr.msra.gmra.mxu2 %vm775_vm3, %v7383_v45  ;;  %v4962_v45 = vld [vmem:[%s8774_s5 + $0xc8] sm:$0xf] }
 0x4e2   :  { %v4963_v37 = vor.u32 %v5665_v38, %v4962_v45  ;;  %v5033_v45 = vld [vmem:[%s8774_s5 + $0x120] sm:$0xf]  ;;  %v4959_v38 = vor.u32 %v5663_v30, %v4956_v33 }
 0x4e4   :  { %2951 = vmatpush.bf16.msrb.mxu1 %v4963_v37  ;;  %v5676_v37 = vld [vmem:[%s8774_s5 + $0x128] sm:$0xf0]  ;;  %2925 = vmatpush.bf16.msrb.mxu3 %v4959_v38 }
 0x4e5   :  { %v5034_v35 = vor.u32 %v5676_v37, %v5033_v45  ;;  %v3191_v37 = vshll.u32 %v7544_v10, 16 }
 0x4e7   :  { %3084 = vmatpush.bf16.msrb.mxu2 %v5034_v35  ;;  %v5124_v35 = vld [vmem:[%s8774_s5 + $0x198] sm:$0xf] }
 0x4e8   :  { %3294 = vmatpush.bf16.msra.mxu1 %v5149_v56  ;;  %v5125_v12 = vor.u32 %v5691_v21, %v5124_v35  ;;  %v3193_v56 = vrot.slane %v3191_v37, 1  ;;  %v5696_v37 = vld [vmem:[%s8774_s5 + $0x1cc] sm:$0xf]  ;;  %v5150_v21 = vld [vmem:[%s8774_s5 + $0x1d4] sm:$0xf0] }
 0x4ec   :  { %3295 = vmatpush.bf16.msra.mxu1 %v5137_v55 }
 0x4ee   :  { %5085 = vmatmul.msk.bf16.gmra.mxu0 %vm775_vm3, %v7449_v61 }
 0x4f0   :  { %4922 = vmatmul.msk.bf16.gmra.mxu3 %vm775_vm3, %v7434_v24  ;;  %4927 = vmatmul.msk.bf16.gmra.mxu1 %vm775_vm3, %v7434_v24 }
 0x4f1   :  { %4932 = vmatmul.msk.bf16.gmra.mxu2 %vm775_vm3, %v7434_v24  ;;  %3296 = vmatpush.bf16.msra.mxu1 %v5125_v12  ;;  %v5153_v12 = vor.u32 %v5696_v37, %v5150_v21  ;;  %v5712_v21 = vld [vmem:[%s8774_s5 + $0x248] sm:$0xf0] }
 0x4f3   :  { %3320 = vmatpush.bf16.msra.mxu2 %v5153_v12 }
 0x4fe   :  { %5086 = vmatmul.msk.bf16.gmra.mxu0 %vm775_vm3, %v7544_v10 }
 0x500   :  { %4923 = vmatmul.msk.bf16.gmra.mxu3 %vm775_vm3, %v7477_v50  ;;  %4928 = vmatmul.msk.bf16.gmra.mxu1 %vm775_vm3, %v7477_v50 }
 0x501   :  { %4933 = vmatmul.msk.bf16.gmra.mxu2 %vm775_vm3, %v7477_v50 }
 0x50b   :  { %v7816_v32 = vpop.f32.mrf.mxu0 }
 0x50d   :  { %v7830_v39 = vpop.f32.mrf.mxu1 }
 0x50e   :  { %5087 = vmatmul.msk.bf16.gmra.mxu0 %vm775_vm3, %v7672_v31 }
 0x510   :  { %4924 = vmatmul.msk.bf16.gmra.mxu3 %vm775_vm3, %v7542_v26  ;;  %4929 = vmatmul.msk.bf16.gmra.mxu1 %vm775_vm3, %v7542_v26 }
 0x511   :  { %4934 = vmatmul.msk.bf16.gmra.mxu2 %vm775_vm3, %v7542_v26 }
 0x513   :  { %v7846_v1 = vpop.f32.mrf.mxu3  ;;  %v2903_v9 = vpop.f32.mrf.mxu0 }
 0x514   :  { %v7848_v29 = vpop.f32.mrf.mxu2 }
 0x515   :  { %v2588_v46 = vpop.f32.mrf.mxu1 }
 0x51b   :  { %v2562_v25 = vpop.f32.mrf.mxu3  ;;  %v2905_v51 = vpop.f32.mrf.mxu0 }
 0x51c   :  { %v2614_v6 = vpop.f32.mrf.mxu2 }
 0x51d   :  { %v2590_v5 = vpop.f32.mrf.mxu1 }
 0x51e   :  { %5088 = vmatmul.msk.bf16.gmra.mxu0 %vm775_vm3, %v7852_v59 }
 0x520   :  { %4925 = vmatmul.msk.bf16.gmra.mxu3 %vm775_vm3, %v7668_v18  ;;  %4930 = vmatmul.msk.bf16.gmra.mxu1 %vm775_vm3, %v7668_v18 }
 0x521   :  { %4935 = vmatmul.msk.bf16.gmra.mxu2 %vm775_vm3, %v7668_v18  ;;  %v3178_v18 = vshrl.u32 %v7410_v62, 16 }
 0x523   :  { %v2564_v27 = vpop.f32.mrf.mxu3  ;;  %v2906_v58 = vpop.f32.mrf.mxu0  ;;  %v3183_v34 = vor.u32 %v3182_v44, %v3178_v18  ;;  %v3197_v44 = vor.u32 %v3195_v14, %v3193_v56 }
 0x524   :  { %v2616_v19 = vpop.f32.mrf.mxu2 }
 0x525   :  { %v2591_v49 = vpop.f32.mrf.mxu1  ;;  %v7872_v28 = vsel %vm2433_vm5, %v3183_v34, %v3186_v7 }
 0x526   :  { %v3200_v49 = vrot.slane %v3198_v40, 1  ;;  %v5138_v40 = vld [vmem:[%s8774_s5 + $0x1bc] sm:$0xf0] }
 0x528   :  { %v7914_v34 = vsel %vm2433_vm5, %v3197_v44, %v3200_v49  ;;  %v5282_v44 = vld [vmem:[%s8774_s5 + $0x258] sm:$0xf] }
 0x52b   :  { %v2565_v54 = vpop.f32.mrf.mxu3  ;;  %v2908_v52 = vpop.f32.mrf.mxu0 }
 0x52c   :  { %v2617_v20 = vpop.f32.mrf.mxu2  ;;  %v5688_v54 = vld [vmem:[%s8774_s5 + $0x188] sm:$0xf0] }
 0x52d   :  { %v2593_v53 = vpop.f32.mrf.mxu1 }
 0x52e   :  { %5168 = vmatmul.msk.bf16.vlgmr.msra.gmra.mxu0 %vm775_vm3, %v7872_v28  ;;  %v5306_v53 = vld [vmem:[%s8774_s5 + $0x288] sm:$0xf] }
 0x530   :  { %5005 = vmatmul.msk.bf16.vlgmr.msrb.gmra.mxu3 %vm775_vm3, %v7454_v63  ;;  %5010 = vmatmul.msk.bf16.vlgmr.msrb.gmra.mxu1 %vm775_vm3, %v7454_v63  ;;  %v3188_v63 = vshrl.u32 %v7449_v61, 16 }
 0x531   :  { %5079 = vmatmul.msk.bf16.vlgmr.msrb.gmra.mxu2 %vm775_vm3, %v7410_v62 }
 0x532   :  { %v3190_v25 = vor.u32 %v3188_v63, %v3186_v7  ;;  %v5112_v7 = vld [vmem:[%s8774_s5 + $0x180] sm:$0xf]  ;;  %v5294_v63 = vld [vmem:[%s8774_s5 + $0x270] sm:$0xf] }
 0x533   :  { %v2567_v30 = vpop.f32.mrf.mxu3  ;;  %v2909_v33 = vpop.f32.mrf.mxu0  ;;  %v5113_v20 = vor.u32 %v5688_v54, %v5112_v7  ;;  %v5053_v7 = vld [vmem:[%s8774_s5 + $0x140] sm:$0xf] }
 0x534   :  { %v2619_v45 = vpop.f32.mrf.mxu2  ;;  %v7891_v5 = vsel %vm2433_vm5, %v3190_v25, %v3193_v56  ;;  %v5721_v30 = vld [vmem:[%s8774_s5 + $0x290] sm:$0xf0]  ;;  %v5718_v56 = vld [vmem:[%s8774_s5 + $0x278] sm:$0xf0] }
 0x535   :  { %v2594_v38 = vpop.f32.mrf.mxu1  ;;  %v5307_v33 = vor.u32 %v5721_v30, %v5306_v53  ;;  %3297 = vmatpush.bf16.msra.mxu1 %v5113_v20  ;;  %v5077_v45 = vld [vmem:[%s8774_s5 + $0x170] sm:$0xf]  ;;  %v5680_v20 = vld [vmem:[%s8774_s5 + $0x148] sm:$0xf0]  ;;  %v5690_v53 = vld [vmem:[%s8774_s5 + $0x19c] sm:$0xf] }
 0x536   :  { %v5686_v38 = vld [vmem:[%s8774_s5 + $0x178] sm:$0xf0]  ;;  %v5126_v30 = vld [vmem:[%s8774_s5 + $0x1a4] sm:$0xf0] }
 0x537   :  { %v5078_v35 = vor.u32 %v5686_v38, %v5077_v45  ;;  %3661 = vmatpush.bf16.msrb.mxu0 %v5307_v33  ;;  %v5054_v33 = vor.u32 %v5680_v20, %v5053_v7  ;;  %v5129_v45 = vor.u32 %v5690_v53, %v5126_v30  ;;  %v3202_v38 = vshrl.u32 %v7672_v31, 16 }
 0x539   :  { %3133 = vmatpush.bf16.msra.mxu3 %v5078_v35  ;;  %v5270_v35 = vld [vmem:[%s8774_s5 + $0x240] sm:$0xf] }
 0x53a   :  { %v5271_v12 = vor.u32 %v5712_v21, %v5270_v35 }
 0x53b   :  { %v2568_v9 = vpop.f32.mrf.mxu3  ;;  %v2911_v46 = vpop.f32.mrf.mxu0 }
 0x53c   :  { %v2620_v51 = vpop.f32.mrf.mxu2  ;;  %v5295_v9 = vor.u32 %v5718_v56, %v5294_v63 }
 0x53d   :  { %v2596_v6 = vpop.f32.mrf.mxu1  ;;  %v5065_v51 = vld [vmem:[%s8774_s5 + $0x158] sm:$0xf] }
 0x53e   :  { %5169 = vmatmul.msk.bf16.gmra.mxu0 %vm775_vm3, %v7891_v5  ;;  %v5683_v6 = vld [vmem:[%s8774_s5 + $0x160] sm:$0xf0] }
 0x53f   :  { %3662 = vmatpush.bf16.msrb.mxu0 %v5295_v9  ;;  %v3204_v9 = vor.u32 %v3202_v38, %v3200_v49 }
 0x540   :  { %5006 = vmatmul.msk.bf16.gmra.mxu3 %vm775_vm3, %v7499_v41  ;;  %5011 = vmatmul.msk.bf16.gmra.mxu1 %vm775_vm3, %v7499_v41 }
 0x541   :  { %5080 = vmatmul.msk.bf16.gmra.mxu2 %vm775_vm3, %v7449_v61 }
 0x543   :  { %v2570_v27 = vpop.f32.mrf.mxu3  ;;  %v2912_v58 = vpop.f32.mrf.mxu0 }
 0x544   :  { %v2622_v60 = vpop.f32.mrf.mxu2  ;;  %v5693_v27 = vld [vmem:[%s8774_s5 + $0x1b4] sm:$0xf] }
 0x545   :  { %v2597_v19 = vpop.f32.mrf.mxu1  ;;  %v3205_v60 = vshll.u32 %v7852_v59, 16 }
 0x546   :  { %v5066_v19 = vor.u32 %v5683_v6, %v5065_v51  ;;  %v5677_v51 = vld [vmem:[%s8774_s5 + $0x130] sm:$0xf0]  ;;  %v5687_v6 = vld [vmem:[%s8774_s5 + $0x184] sm:$0xf] }
 0x547   :  { %v3207_v37 = vrot.slane %v3205_v60, 1 }
 0x548   :  { %3134 = vmatpush.bf16.msra.mxu3 %v5066_v19  ;;  %v5114_v19 = vld [vmem:[%s8774_s5 + $0x18c] sm:$0xf0] }
 0x54b   :  { %v2571_v22 = vpop.f32.mrf.mxu3  ;;  %v7903_v55 = vpop.f32.mrf.mxu0 }
 0x54c   :  { %v2623_v18 = vpop.f32.mrf.mxu2  ;;  %v5141_v22 = vor.u32 %v5693_v27, %v5138_v40  ;;  %3135 = vmatpush.bf16.msra.mxu3 %v5054_v33  ;;  %v8007_v40 = vsel %vm2433_vm5, %v3204_v9, %v3207_v37 }
 0x54d   :  { %v7911_v52 = vpop.f32.mrf.mxu1  ;;  %v5715_v18 = vld [vmem:[%s8774_s5 + $0x260] sm:$0xf0] }
 0x54e   :  { %5170 = vmatmul.msk.bf16.gmra.mxu0 %vm775_vm3, %v7914_v34  ;;  %v5283_v54 = vor.u32 %v5715_v18, %v5282_v44  ;;  %3321 = vmatpush.bf16.msra.mxu2 %v5141_v22  ;;  %v5708_v22 = vld [vmem:[%s8774_s5 + $0x22c] sm:$0xf]  ;;  %v5229_v44 = vld [vmem:[%s8774_s5 + $0x234] sm:$0xf0] }
 0x54f   :  { %v5232_v18 = vor.u32 %v5708_v22, %v5229_v44  ;;  %v5702_v44 = vld [vmem:[%s8774_s5 + $0x1fc] sm:$0xf] }
 0x550   :  { %5007 = vmatmul.msk.bf16.gmra.mxu3 %vm775_vm3, %v7556_v42  ;;  %5012 = vmatmul.msk.bf16.gmra.mxu1 %vm775_vm3, %v7556_v42 }
 0x551   :  { %5081 = vmatmul.msk.bf16.gmra.mxu2 %vm775_vm3, %v7544_v10  ;;  %3663 = vmatpush.bf16.msrb.mxu0 %v5283_v54 }
 0x552   :  { %3322 = vmatpush.bf16.msra.mxu2 %v5129_v45  ;;  %3514 = vmatpush.bf16.msrb.mxu1 %v5232_v18  ;;  %v8028_v45 = vshrl.u32 %v7852_v59, 16  ;;  %v5205_v18 = vld [vmem:[%s8774_s5 + $0x204] sm:$0xf0] }
 0x553   :  { %v7948_v46 = vpop.f32.mrf.mxu3  ;;  %v2916_v25 = vpop.f32.mrf.mxu0 }
 0x554   :  { %v7959_v58 = vpop.f32.mrf.mxu2  ;;  %v5041_v25 = vld [vmem:[%s8774_s5 + $0x128] sm:$0xf] }
 0x555   :  { %v2601_v14 = vpop.f32.mrf.mxu1  ;;  %v5042_v60 = vor.u32 %v5677_v51, %v5041_v25  ;;  %3664 = vmatpush.bf16.msrb.mxu0 %v5271_v12  ;;  %v5705_v12 = vld [vmem:[%s8774_s5 + $0x214] sm:$0xf] }
 0x556   :  { %v5117_v14 = vor.u32 %v5687_v6, %v5114_v19 }
 0x557   :  { %3136 = vmatpush.bf16.msra.mxu3 %v5042_v60 }
 0x558   :  { %3323 = vmatpush.bf16.msra.mxu2 %v5117_v14 }
 0x55b   :  { %v2575_v63 = vpop.f32.mrf.mxu3  ;;  %v7990_v56 = vpop.f32.mrf.mxu0 }
 0x55c   :  { %v2627_v27 = vpop.f32.mrf.mxu2  ;;  %v5217_v63 = vld [vmem:[%s8774_s5 + $0x21c] sm:$0xf0] }
 0x55d   :  { %v8004_v49 = vpop.f32.mrf.mxu1  ;;  %v5220_v25 = vor.u32 %v5705_v12, %v5217_v63  ;;  %v2089_v63 = vpop.permute.xlu0 %2088 }
 0x55e   :  { %5171 = vmatmul.msk.bf16.gmra.mxu0 %vm775_vm3, %v8007_v40  ;;  %v2739_v48 = vadd.f32 %v8004_v49, %v7830_v39 }
 0x55f   :  { %3515 = vmatpush.bf16.msrb.mxu1 %v5220_v25 }
 0x560   :  { %5008 = vmatmul.msk.bf16.gmra.mxu3 %vm775_vm3, %v7683_v13  ;;  %5013 = vmatmul.msk.bf16.gmra.mxu1 %vm775_vm3, %v7683_v13 }
 0x561   :  { %5082 = vmatmul.msk.bf16.gmra.mxu2 %vm775_vm3, %v7672_v31 }
 0x563   :  { %v8023_v7 = vpop.f32.mrf.mxu3  ;;  %v3114_v54 = vpop.f32.mrf.mxu0 }
 0x564   :  { %v8025_v20 = vpop.f32.mrf.mxu2  ;;  %v5208_v54 = vor.u32 %v5702_v44, %v5205_v18  ;;  %v5235_v44 = vld [vmem:[%s8774_s5 + $0x230] sm:$0xf] }
 0x565   :  { %v2740_v53 = vpop.f32.mrf.mxu1 }
 0x566   :  { %3516 = vmatpush.bf16.msrb.mxu1 %v5208_v54  ;;  %v5710_v54 = vld [vmem:[%s8774_s5 + $0x238] sm:$0xf0] }
 0x56b   :  { %v2714_v13 = vpop.f32.mrf.mxu3  ;;  %v3116_v30 = vpop.f32.mrf.mxu0 }
 0x56c   :  { %v2766_v33 = vpop.f32.mrf.mxu2 }
 0x56d   :  { %v2742_v38 = vpop.f32.mrf.mxu1 }
 0x56e   :  { %5172 = vmatmul.msk.bf16.gmra.mxu0 %vm775_vm3, %v8028_v45 }
 0x570   :  { %5009 = vmatmul.msk.bf16.gmra.mxu3 %vm775_vm3, %v7677_v16  ;;  %5014 = vmatmul.msk.bf16.gmra.mxu1 %vm775_vm3, %v7677_v16 }
 0x571   :  { %5083 = vmatmul.msk.bf16.gmra.mxu2 %vm775_vm3, %v7852_v59 }
 0x573   :  { %v2716_v37 = vpop.f32.mrf.mxu3  ;;  %v3117_v35 = vpop.f32.mrf.mxu0 }
 0x574   :  { %v2768_v21 = vpop.f32.mrf.mxu2  ;;  %v1990_v35 = vpop.permute.xlu2 %1989 }
 0x575   :  { %v2743_v9 = vpop.f32.mrf.mxu1  ;;  %v2012_v12 = vadd.f32 %v1990_v35, %v7181_v2  ;;  %v5732_v2 = vld [vmem:[%s8774_s5 + $0x2ec] sm:$0xf] }
 0x57b   :  { %v2717_v51 = vpop.f32.mrf.mxu3  ;;  %v3119_v6 = vpop.f32.mrf.mxu0 }
 0x57c   :  { %v2769_v16 = vpop.f32.mrf.mxu2  ;;  %v2066_v51 = vadd.f32 %v2043_v11, %v2012_v12  ;;  %v5223_v12 = vld [vmem:[%s8774_s5 + $0x218] sm:$0xf] }
 0x57d   :  { %v2745_v27 = vpop.f32.mrf.mxu1  ;;  %v5699_v16 = vld [vmem:[%s8774_s5 + $0x1e4] sm:$0xf] }
 0x57e   :  { %5316 = vmatmul.msk.bf16.vlgmr.msrb.gmra.mxu0 %vm775_vm3, %v7434_v24  ;;  %v2111_v11 = vadd.f32 %v2089_v63, %v2066_v51 }
 0x580   :  { %5089 = vmatmul.msk.bf16.vlgmr.msra.gmra.mxu3 %vm775_vm3, %v7410_v62  ;;  %5158 = vmatmul.msk.bf16.vlgmr.msra.gmra.mxu1 %vm775_vm3, %v7872_v28 }
 0x581   :  { %5163 = vmatmul.msk.bf16.vlgmr.msra.gmra.mxu2 %vm775_vm3, %v7872_v28 }
 0x583   :  { %v2719_v60 = vpop.f32.mrf.mxu3  ;;  %v3120_v19 = vpop.f32.mrf.mxu0 }
 0x584   :  { %v2771_v14 = vpop.f32.mrf.mxu2  ;;  %v5390_v19 = vor.u32 %v5732_v2, %v5387_v23  ;;  %v5703_v23 = vld [vmem:[%s8774_s5 + $0x200] sm:$0xf0] }
 0x585   :  { %v2746_v22 = vpop.f32.mrf.mxu1  ;;  %v5227_v14 = vld [vmem:[%s8774_s5 + $0x228] sm:$0xf] }
 0x586   :  { %v5709_v22 = vld [vmem:[%s8774_s5 + $0x230] sm:$0xf0]  ;;  %3874 = vmatpush.bf16.msra.mxu0 %v5390_v19  ;;  %v5704_v19 = vld [vmem:[%s8774_s5 + $0x208] sm:$0xf0] }
 0x587   :  { %v5228_v18 = vor.u32 %v5709_v22, %v5227_v14 }
 0x589   :  { %3488 = vmatpush.bf16.msrb.mxu3 %v5228_v18  ;;  %v5723_v18 = vld [vmem:[%s8774_s5 + $0x2a4] sm:$0xf] }
 0x58b   :  { %v2720_v53 = vpop.f32.mrf.mxu3  ;;  %v3122_v13 = vpop.f32.mrf.mxu0 }
 0x58c   :  { %v2772_v30 = vpop.f32.mrf.mxu2  ;;  %v2208_v53 = vpop.permute.xlu1 %2207  ;;  %v5236_v13 = vor.u32 %v5710_v54, %v5235_v44  ;;  %v5351_v54 = vld [vmem:[%s8774_s5 + $0x2ac] sm:$0xf0] }
 0x58d   :  { %v2748_v33 = vpop.f32.mrf.mxu1  ;;  %v5729_v30 = vld [vmem:[%s8774_s5 + $0x2d4] sm:$0xf] }
 0x58e   :  { %5317 = vmatmul.msk.bf16.gmra.mxu0 %vm775_vm3, %v7477_v50  ;;  %v5375_v33 = vld [vmem:[%s8774_s5 + $0x2dc] sm:$0xf0]  ;;  %3540 = vmatpush.bf16.msrb.mxu2 %v5236_v13  ;;  %v5354_v13 = vor.u32 %v5723_v18, %v5351_v54  ;;  %v5302_v54 = vld [vmem:[%s8774_s5 + $0x278] sm:$0xf] }
 0x590   :  { %5090 = vmatmul.msk.bf16.gmra.mxu3 %vm775_vm3, %v7449_v61  ;;  %5159 = vmatmul.msk.bf16.gmra.mxu1 %vm775_vm3, %v7891_v5 }
 0x591   :  { %5164 = vmatmul.msk.bf16.gmra.mxu2 %vm775_vm3, %v7891_v5  ;;  %v5193_v5 = vld [vmem:[%s8774_s5 + $0x1ec] sm:$0xf0] }
 0x592   :  { %v5196_v60 = vor.u32 %v5699_v16, %v5193_v5  ;;  %v5726_v16 = vld [vmem:[%s8774_s5 + $0x2bc] sm:$0xf]  ;;  %v5363_v5 = vld [vmem:[%s8774_s5 + $0x2c4] sm:$0xf0] }
 0x593   :  { %v2722_v28 = vpop.f32.mrf.mxu3  ;;  %v3123_v38 = vpop.f32.mrf.mxu0  ;;  %v5366_v2 = vor.u32 %v5726_v16, %v5363_v5 }
 0x594   :  { %v2774_v37 = vpop.f32.mrf.mxu2  ;;  %3517 = vmatpush.bf16.msrb.mxu1 %v5196_v60  ;;  %v2165_v28 = vadd.f32 %v2142_v47, %v2111_v11  ;;  %v5378_v38 = vor.u32 %v5729_v30, %v5375_v33  ;;  %v5203_v60 = vld [vmem:[%s8774_s5 + $0x1f8] sm:$0xf]  ;;  %v5211_v11 = vld [vmem:[%s8774_s5 + $0x200] sm:$0xf] }
 0x595   :  { %v2749_v21 = vpop.f32.mrf.mxu1  ;;  %v5204_v14 = vor.u32 %v5703_v23, %v5203_v60  ;;  %v5212_v22 = vor.u32 %v5704_v19, %v5211_v11 }
 0x596   :  { %v5706_v21 = vld [vmem:[%s8774_s5 + $0x218] sm:$0xf0]  ;;  %v2230_v17 = vadd.f32 %v2208_v53, %v2165_v28  ;;  %3875 = vmatpush.bf16.msra.mxu0 %v5378_v38  ;;  %v2295_v53 = vpop.permute.xlu2 %2294  ;;  %v5700_v28 = vld [vmem:[%s8774_s5 + $0x1e8] sm:$0xf0]  ;;  %v5199_v38 = vld [vmem:[%s8774_s5 + $0x1e8] sm:$0xf] }
 0x598   :  { %v2241_v44 = vadd.f32 %v2230_v17, %v7220_v4  ;;  %v5191_v4 = vld [vmem:[%s8774_s5 + $0x1e0] sm:$0xf]  ;;  %v5701_v17 = vld [vmem:[%s8774_s5 + $0x1f0] sm:$0xf0] }
 0x59a   :  { %3876 = vmatpush.bf16.msra.mxu0 %v5366_v2 }
 0x59b   :  { %v2723_v9 = vpop.f32.mrf.mxu3  ;;  %v8067_v25 = vpop.f32.mrf.mxu0 }
 0x59c   :  { %v2775_v6 = vpop.f32.mrf.mxu2  ;;  %v5707_v9 = vld [vmem:[%s8774_s5 + $0x220] sm:$0xf0] }
 0x59d   :  { %v8077_v27 = vpop.f32.mrf.mxu1  ;;  %v5224_v6 = vor.u32 %v5707_v9, %v5223_v12  ;;  %v5192_v12 = vor.u32 %v5700_v28, %v5191_v4  ;;  %v5200_v9 = vor.u32 %v5701_v17, %v5199_v38  ;;  %v3397_v38 = vrot.slane %v7449_v61, 1  ;;  %v5290_v61 = vld [vmem:[%s8774_s5 + $0x260] sm:$0xf] }
 0x59e   :  { %5318 = vmatmul.msk.bf16.gmra.mxu0 %vm775_vm3, %v7542_v26 }
 0x59f   :  { %3541 = vmatpush.bf16.msrb.mxu2 %v5224_v6  ;;  %3877 = vmatpush.bf16.msra.mxu0 %v5354_v13  ;;  %v2713_v6 = vadd.f32 %v8023_v7, %v7846_v1  ;;  %v5722_v1 = vld [vmem:[%s8774_s5 + $0x298] sm:$0xf0] }
 0x5a0   :  { %5091 = vmatmul.msk.bf16.gmra.mxu3 %vm775_vm3, %v7544_v10  ;;  %5160 = vmatmul.msk.bf16.gmra.mxu1 %vm775_vm3, %v7914_v34 }
 0x5a1   :  { %5165 = vmatmul.msk.bf16.gmra.mxu2 %vm775_vm3, %v7914_v34  ;;  %v5215_v34 = vld [vmem:[%s8774_s5 + $0x210] sm:$0xf]  ;;  %v2970_v16 = vadd.f32 %v7816_v32, %v2713_v6 }
 0x5a2   :  { %v5216_v63 = vor.u32 %v5706_v21, %v5215_v34  ;;  %v2765_v34 = vadd.f32 %v8025_v20, %v7848_v29  ;;  %v5314_v20 = vld [vmem:[%s8774_s5 + $0x290] sm:$0xf] }
 0x5a3   :  { %v8113_v37 = vpop.f32.mrf.mxu3  ;;  %v3127_v35 = vpop.f32.mrf.mxu0  ;;  %3542 = vmatpush.bf16.msrb.mxu2 %v5212_v22 }
 0x5a4   :  { %v8124_v47 = vpop.f32.mrf.mxu2  ;;  %3489 = vmatpush.bf16.msrb.mxu3 %v5216_v63  ;;  %v2317_v35 = vadd.f32 %v2295_v53, %v2241_v44  ;;  %v5719_v53 = vld [vmem:[%s8774_s5 + $0x280] sm:$0xf0] }
 0x5a5   :  { %v2753_v51 = vpop.f32.mrf.mxu1 }
 0x5a6   :  { %v2371_v29 = vadd.f32 %v2348_v15, %v2317_v35  ;;  %v5315_v15 = vor.u32 %v5722_v1, %v5314_v20  ;;  %v3399_v1 = vrot.slane %v7544_v10, 1 }
 0x5a7   :  { %3543 = vmatpush.bf16.msrb.mxu2 %v5200_v9 }
 0x5a8   :  { %3490 = vmatpush.bf16.msrb.mxu3 %v5204_v14  ;;  %v2383_v60 = vadd.f32 %v7337_v43, %v2371_v29  ;;  %3713 = vmatpush.bf16.msra.mxu1 %v5315_v15 }
 0x5aa   :  { %v2394_v19 = vmax.f32 %v2383_v60, 0.0 }
 0x5ab   :  { %v2727_v30 = vpop.f32.mrf.mxu3  ;;  %v8154_v33 = vpop.f32.mrf.mxu0 }
 0x5ac   :  { %v2779_v21 = vpop.f32.mrf.mxu2  ;;  %3491 = vmatpush.bf16.msrb.mxu3 %v5192_v12  ;;  %v8198_v44 = vpack.c.bf16 %v2394_v19, %v2394_v19  ;;  %v5303_v30 = vor.u32 %v5719_v53, %v5302_v54 }
 0x5ad   :  { %v2953_v63 = vpop.f32.mrf.mxu1 }
 0x5ae   :  { %v8170_v51 = vadd.f32 %v2953_v63, %v2765_v34  ;;  %5319 = vmatmul.msk.bf16.gmra.mxu0 %vm775_vm3, %v7706_v3  ;;  %3714 = vmatpush.bf16.msra.mxu1 %v5303_v30  ;;  %v3396_v34 = vrot.slane %v7410_v62, 1  ;;  %v5716_v62 = vld [vmem:[%s8774_s5 + $0x268] sm:$0xf0] }
 0x5af   :  { %v5291_v6 = vor.u32 %v5716_v62, %v5290_v61  ;;  %v5717_v62 = vld [vmem:[%s8774_s5 + $0x274] sm:$0xf] }
 0x5b0   :  { %5092 = vmatmul.msk.bf16.gmra.mxu3 %vm775_vm3, %v7672_v31  ;;  %5161 = vmatmul.msk.bf16.gmra.mxu1 %vm775_vm3, %v8007_v40  ;;  %v3398_v21 = vsel %vm399_vm2, %v3396_v34, %v3397_v38  ;;  %v5460_v34 = vld [vmem:[%s8774_s5 + $0x338] sm:$0xf] }
 0x5b1   :  { %5166 = vmatmul.msk.bf16.gmra.mxu2 %vm775_vm3, %v8007_v40 }
 0x5b2   :  { %3715 = vmatpush.bf16.msra.mxu1 %v5291_v6  ;;  %v5296_v6 = vld [vmem:[%s8774_s5 + $0x27c] sm:$0xf0] }
 0x5b3   :  { %v2927_v7 = vpop.f32.mrf.mxu3  ;;  %v3353_v5 = vpop.f32.mrf.mxu0 }
 0x5b4   :  { %v8194_v2 = vadd.f32 %v2927_v7, %v2739_v48  ;;  %v3086_v40 = vpop.f32.mrf.mxu2  ;;  %v3400_v7 = vsel %vm399_vm2, %v3397_v38, %v3399_v1  ;;  %v5308_v38 = vld [vmem:[%s8774_s5 + $0x294] sm:$0xf0] }
 0x5b5   :  { %v8196_v23 = vadd.f32 %v3086_v40, %v2970_v16  ;;  %v2955_v11 = vpop.f32.mrf.mxu1 }
 0x5b6   :  { %v3758_v11 = vshll.u32 %v7706_v3, 16 }
 0x5b8   :  { %v8236_v10 = vrot.slane %v3758_v11, 1  ;;  %v5284_v11 = vld [vmem:[%s8774_s5 + $0x264] sm:$0xf0] }
 0x5ba   :  { %v8252_v54 = vsel %vm2433_vm5, %v7686_v57, %v8236_v10 }
 0x5bb   :  { %v2929_v14 = vpop.f32.mrf.mxu3  ;;  %v3355_v22 = vpop.f32.mrf.mxu0 }
 0x5bc   :  { %v3088_v39 = vpop.f32.mrf.mxu2  ;;  %v3401_v22 = vrot.slane %v7672_v31, 1  ;;  %v3156_v31 = vadd.f32 %v7990_v56, %v8194_v2 }
 0x5bd   :  { %v2957_v49 = vpop.f32.mrf.mxu1  ;;  %v2778_v39 = vadd.f32 %v8124_v47, %v7959_v58  ;;  %v5472_v58 = vld [vmem:[%s8774_s5 + $0x350] sm:$0xf]  ;;  %v5746_v47 = vld [vmem:[%s8774_s5 + $0x358] sm:$0xf0] }
 0x5be   :  { %5320 = vmatmul.msk.bf16.gmra.mxu0 %vm775_vm3, %v8198_v44  ;;  %v5473_v30 = vor.u32 %v5746_v47, %v5472_v58  ;;  %v3402_v57 = vsel %vm399_vm2, %v3399_v1, %v3401_v22  ;;  %v5730_v1 = vld [vmem:[%s8774_s5 + $0x2d8] sm:$0xf0]  ;;  %v5737_v58 = vld [vmem:[%s8774_s5 + $0x310] sm:$0xf0]  ;;  %v3403_v47 = vrot.slane %v7852_v59, 1 }
 0x5c0   :  { %5093 = vmatmul.msk.bf16.gmra.mxu3 %vm775_vm3, %v7852_v59  ;;  %5162 = vmatmul.msk.bf16.gmra.mxu1 %vm775_vm3, %v8028_v45  ;;  %v5349_v59 = vld [vmem:[%s8774_s5 + $0x2a0] sm:$0xf] }
 0x5c1   :  { %5167 = vmatmul.msk.bf16.gmra.mxu2 %vm775_vm3, %v8028_v45  ;;  %4080 = vmatpush.bf16.msrb.mxu0 %v5473_v30 }
 0x5c3   :  { %v2931_v43 = vpop.f32.mrf.mxu3  ;;  %v3356_v32 = vpop.f32.mrf.mxu0 }
 0x5c4   :  { %v3090_v18 = vpop.f32.mrf.mxu2  ;;  %v5278_v43 = vld [vmem:[%s8774_s5 + $0x248] sm:$0xf]  ;;  %v5713_v32 = vld [vmem:[%s8774_s5 + $0x250] sm:$0xf0] }
 0x5c5   :  { %v2958_v13 = vpop.f32.mrf.mxu1  ;;  %v5279_v53 = vor.u32 %v5713_v32, %v5278_v43  ;;  %v3762_v32 = vshrl.u32 %v7706_v3, 16 }
 0x5c7   :  { %3716 = vmatpush.bf16.msra.mxu1 %v5279_v53  ;;  %v5436_v53 = vld [vmem:[%s8774_s5 + $0x308] sm:$0xf] }
 0x5c8   :  { %v5437_v30 = vor.u32 %v5737_v58, %v5436_v53  ;;  %v5440_v58 = vld [vmem:[%s8774_s5 + $0x318] sm:$0xf] }
 0x5cb   :  { %v2932_v4 = vpop.f32.mrf.mxu3  ;;  %v3358_v28 = vpop.f32.mrf.mxu0 }
 0x5cc   :  { %v3091_v35 = vpop.f32.mrf.mxu2  ;;  %v2726_v4 = vadd.f32 %v8113_v37, %v7948_v46  ;;  %v5720_v28 = vld [vmem:[%s8774_s5 + $0x28c] sm:$0xf]  ;;  %v5733_v37 = vld [vmem:[%s8774_s5 + $0x2f0] sm:$0xf0] }
 0x5cd   :  { %v2960_v45 = vpop.f32.mrf.mxu1  ;;  %v5385_v35 = vld [vmem:[%s8774_s5 + $0x2e8] sm:$0xf]  ;;  %v5311_v46 = vor.u32 %v5720_v28, %v5308_v38  ;;  %v3764_v28 = vor.u32 %v3762_v32, %v8236_v10  ;;  %v5711_v38 = vld [vmem:[%s8774_s5 + $0x244] sm:$0xf] }
 0x5ce   :  { %5400 = vmatmul.msk.bf16.vlgmr.msra.gmra.mxu0 %vm775_vm3, %v7510_v36  ;;  %v5386_v45 = vor.u32 %v5733_v37, %v5385_v35  ;;  %v5272_v35 = vld [vmem:[%s8774_s5 + $0x24c] sm:$0xf0] }
 0x5cf   :  { %3687 = vmatpush.bf16.msra.mxu3 %v5311_v46  ;;  %v5275_v37 = vor.u32 %v5711_v38, %v5272_v35 }
 0x5d0   :  { %5237 = vmatmul.msk.bf16.vlgmr.msrb.gmra.mxu3 %vm775_vm3, %v3398_v21  ;;  %5242 = vmatmul.msk.bf16.vlgmr.msrb.gmra.mxu1 %vm775_vm3, %v3398_v21 }
 0x5d1   :  { %5247 = vmatmul.msk.bf16.vlgmr.msrb.gmra.mxu2 %vm775_vm3, %v3398_v21  ;;  %v5743_v21 = vld [vmem:[%s8774_s5 + $0x340] sm:$0xf0] }
 0x5d2   :  { %3848 = vmatpush.bf16.msra.mxu2 %v5386_v45  ;;  %v5724_v45 = vld [vmem:[%s8774_s5 + $0x2a8] sm:$0xf0] }
 0x5d3   :  { %v2934_v12 = vpop.f32.mrf.mxu3  ;;  %v3359_v17 = vpop.f32.mrf.mxu0 }
 0x5d4   :  { %v3093_v63 = vpop.f32.mrf.mxu2  ;;  %v2752_v12 = vadd.f32 %v8077_v27, %v7911_v52  ;;  %v5461_v17 = vor.u32 %v5743_v21, %v5460_v34  ;;  %v5350_v21 = vor.u32 %v5724_v45, %v5349_v59  ;;  %v3947_v45 = vrot.slane %v7706_v3, 1 }
 0x5d5   :  { %v2961_v9 = vpop.f32.mrf.mxu1 }
 0x5d6   :  { %v2973_v9 = vadd.f32 %v7903_v55, %v2726_v4  ;;  %v5299_v55 = vor.u32 %v5717_v62, %v5296_v6  ;;  %4081 = vmatpush.bf16.msrb.mxu0 %v5461_v17  ;;  %v3404_v17 = vsel %vm399_vm2, %v3401_v22, %v3403_v47 }
 0x5d8   :  { %3688 = vmatpush.bf16.msra.mxu3 %v5299_v55 }
 0x5db   :  { %v2935_v29 = vpop.f32.mrf.mxu3  ;;  %v3361_v20 = vpop.f32.mrf.mxu0 }
 0x5dc   :  { %v3094_v48 = vpop.f32.mrf.mxu2  ;;  %v5373_v29 = vld [vmem:[%s8774_s5 + $0x2d0] sm:$0xf]  ;;  %v3765_v20 = vshll.u32 %v8198_v44, 16 }
 0x5dd   :  { %v2963_v15 = vpop.f32.mrf.mxu1 }
 0x5de   :  { %5401 = vmatmul.msk.bf16.gmra.mxu0 %vm775_vm3, %v7578_v0 }
 0x5e0   :  { %5238 = vmatmul.msk.bf16.gmra.mxu3 %vm775_vm3, %v3400_v7  ;;  %5243 = vmatmul.msk.bf16.gmra.mxu1 %vm775_vm3, %v3400_v7 }
 0x5e1   :  { %5248 = vmatmul.msk.bf16.gmra.mxu2 %vm775_vm3, %v3400_v7  ;;  %v5374_v7 = vor.u32 %v5730_v1, %v5373_v29 }
 0x5e3   :  { %v2937_v16 = vpop.f32.mrf.mxu3  ;;  %v3362_v5 = vpop.f32.mrf.mxu0  ;;  %3849 = vmatpush.bf16.msra.mxu2 %v5374_v7 }
 0x5e4   :  { %v3096_v60 = vpop.f32.mrf.mxu2  ;;  %v5448_v16 = vld [vmem:[%s8774_s5 + $0x320] sm:$0xf]  ;;  %v5740_v5 = vld [vmem:[%s8774_s5 + $0x328] sm:$0xf0] }
 0x5e5   :  { %v2964_v40 = vpop.f32.mrf.mxu1  ;;  %v5714_v60 = vld [vmem:[%s8774_s5 + $0x25c] sm:$0xf] }
 0x5e6   :  { %v5449_v40 = vor.u32 %v5740_v5, %v5448_v16  ;;  %v5452_v16 = vld [vmem:[%s8774_s5 + $0x330] sm:$0xf]  ;;  %v5742_v5 = vld [vmem:[%s8774_s5 + $0x338] sm:$0xf0] }
 0x5e8   :  { %4082 = vmatpush.bf16.msrb.mxu0 %v5449_v40  ;;  %v5453_v40 = vor.u32 %v5742_v5, %v5452_v16 }
 0x5eb   :  { %v2938_v19 = vpop.f32.mrf.mxu3  ;;  %v8238_v14 = vpop.f32.mrf.mxu0 }
 0x5ec   :  { %v3097_v49 = vpop.f32.mrf.mxu2  ;;  %v5361_v19 = vld [vmem:[%s8774_s5 + $0x2b8] sm:$0xf]  ;;  %4083 = vmatpush.bf16.msrb.mxu0 %v5437_v30 }
 0x5ed   :  { %v2966_v18 = vpop.f32.mrf.mxu1  ;;  %v5287_v49 = vor.u32 %v5714_v60, %v5284_v11 }
 0x5ee   :  { %v8260_v13 = vadd.f32 %v2966_v18, %v2778_v39  ;;  %5402 = vmatmul.msk.bf16.gmra.mxu0 %vm775_vm3, %v8252_v54  ;;  %v5727_v39 = vld [vmem:[%s8774_s5 + $0x2c0] sm:$0xf0]  ;;  %v3767_v18 = vrot.slane %v3765_v20, 1 }
 0x5ef   :  { %v5362_v43 = vor.u32 %v5727_v39, %v5361_v19  ;;  %3689 = vmatpush.bf16.msra.mxu3 %v5287_v49 }
 0x5f0   :  { %5239 = vmatmul.msk.bf16.gmra.mxu3 %vm775_vm3, %v3402_v57  ;;  %5244 = vmatmul.msk.bf16.gmra.mxu1 %vm775_vm3, %v3402_v57  ;;  %v8352_v34 = vsel %vm2433_vm5, %v3764_v28, %v3767_v18 }
 0x5f1   :  { %5249 = vmatmul.msk.bf16.gmra.mxu2 %vm775_vm3, %v3402_v57 }
 0x5f2   :  { %3850 = vmatpush.bf16.msra.mxu2 %v5362_v43 }
 0x5f3   :  { %v2940_v63 = vpop.f32.mrf.mxu3  ;;  %v3366_v61 = vpop.f32.mrf.mxu0  ;;  %3690 = vmatpush.bf16.msra.mxu3 %v5275_v37 }
 0x5f4   :  { %v8302_v52 = vadd.f32 %v2940_v63, %v2752_v12  ;;  %v3099_v27 = vpop.f32.mrf.mxu2  ;;  %v5745_v63 = vld [vmem:[%s8774_s5 + $0x350] sm:$0xf0] }
 0x5f5   :  { %v8308_v48 = vadd.f32 %v3099_v27, %v2973_v9  ;;  %v2968_v15 = vpop.f32.mrf.mxu1 }
 0x5f6   :  { %3851 = vmatpush.bf16.msra.mxu2 %v5350_v21  ;;  %v8379_v15 = vshrl.u32 %v8198_v44, 16 }
 0x5fb   :  { %v2942_v4 = vpop.f32.mrf.mxu3  ;;  %v8336_v57 = vpop.f32.mrf.mxu0 }
 0x5fc   :  { %v3101_v46 = vpop.f32.mrf.mxu2 }
 0x5fd   :  { %v3299_v10 = vpop.f32.mrf.mxu1 }
 0x5fe   :  { %v8355_v12 = vadd.f32 %v3299_v10, %v8196_v23  ;;  %5403 = vmatmul.msk.bf16.gmra.mxu0 %vm775_vm3, %v8352_v34  ;;  %v5464_v23 = vld [vmem:[%s8774_s5 + $0x348] sm:$0xf] }
 0x5ff   :  { %v5465_v9 = vor.u32 %v5745_v63, %v5464_v23  ;;  %v5428_v23 = vld [vmem:[%s8774_s5 + $0x300] sm:$0xf] }
 0x600   :  { %5240 = vmatmul.msk.bf16.gmra.mxu3 %vm775_vm3, %v3404_v17  ;;  %5245 = vmatmul.msk.bf16.gmra.mxu1 %vm775_vm3, %v3404_v17 }
 0x601   :  { %5250 = vmatmul.msk.bf16.gmra.mxu2 %vm775_vm3, %v3404_v17  ;;  %4028 = vmatpush.bf16.msrb.mxu1 %v5465_v9  ;;  %v8425_v9 = vsel %vm399_vm2, %v7550_v8, %v3947_v45  ;;  %v5744_v8 = vld [vmem:[%s8774_s5 + $0x34c] sm:$0xf] }
 0x603   :  { %v3138_v61 = vpop.f32.mrf.mxu3  ;;  %v3668_v22 = vpop.f32.mrf.mxu0 }
 0x604   :  { %v8374_v62 = vadd.f32 %v3138_v61, %v8170_v51  ;;  %v3325_v6 = vpop.f32.mrf.mxu2  ;;  %v5393_v22 = vld [vmem:[%s8774_s5 + $0x2f0] sm:$0xf] }
 0x605   :  { %v8376_v29 = vadd.f32 %v3325_v6, %v3156_v31  ;;  %v3301_v27 = vpop.f32.mrf.mxu1  ;;  %4029 = vmatpush.bf16.msrb.mxu1 %v5453_v40  ;;  %v5734_v6 = vld [vmem:[%s8774_s5 + $0x2f8] sm:$0xf0] }
 0x606   :  { %v5466_v27 = vld [vmem:[%s8774_s5 + $0x354] sm:$0xf0] }
 0x60b   :  { %v3140_v20 = vpop.f32.mrf.mxu3  ;;  %v3670_v55 = vpop.f32.mrf.mxu0 }
 0x60c   :  { %v3327_v1 = vpop.f32.mrf.mxu2  ;;  %v5469_v20 = vor.u32 %v5744_v8, %v5466_v27 }
 0x60d   :  { %v3303_v7 = vpop.f32.mrf.mxu1  ;;  %v3159_v1 = vadd.f32 %v8067_v25, %v8302_v52  ;;  %v5454_v25 = vld [vmem:[%s8774_s5 + $0x33c] sm:$0xf0] }
 0x60e   :  { %5404 = vmatmul.msk.bf16.gmra.mxu0 %vm775_vm3, %v8379_v15  ;;  %4054 = vmatpush.bf16.msrb.mxu2 %v5469_v20 }
 0x610   :  { %5241 = vmatmul.msk.bf16.gmra.mxu3 %vm775_vm3, %v3403_v47  ;;  %5246 = vmatmul.msk.bf16.gmra.mxu1 %vm775_vm3, %v3403_v47 }
 0x611   :  { %5251 = vmatmul.msk.bf16.gmra.mxu2 %vm775_vm3, %v3403_v47  ;;  %v5739_v47 = vld [vmem:[%s8774_s5 + $0x320] sm:$0xf0] }
 0x612   :  { %v5441_v30 = vor.u32 %v5739_v47, %v5440_v58  ;;  %v5357_v58 = vld [vmem:[%s8774_s5 + $0x2a8] sm:$0xf]  ;;  %v5725_v47 = vld [vmem:[%s8774_s5 + $0x2b0] sm:$0xf0] }
 0x613   :  { %v3142_v56 = vpop.f32.mrf.mxu3  ;;  %v3671_v51 = vpop.f32.mrf.mxu0 }
 0x614   :  { %v3329_v2 = vpop.f32.mrf.mxu2  ;;  %4030 = vmatpush.bf16.msrb.mxu1 %v5441_v30  ;;  %v5731_v56 = vld [vmem:[%s8774_s5 + $0x2e0] sm:$0xf0]  ;;  %v5741_v51 = vld [vmem:[%s8774_s5 + $0x334] sm:$0xf] }
 0x615   :  { %v3304_v60 = vpop.f32.mrf.mxu1  ;;  %v5457_v40 = vor.u32 %v5741_v51, %v5454_v25  ;;  %v5735_v30 = vld [vmem:[%s8774_s5 + $0x304] sm:$0xf] }
 0x617   :  { %4055 = vmatpush.bf16.msrb.mxu2 %v5457_v40 }
 0x61b   :  { %v3143_v11 = vpop.f32.mrf.mxu3  ;;  %v3673_v19 = vpop.f32.mrf.mxu0 }
 0x61c   :  { %v3330_v39 = vpop.f32.mrf.mxu2  ;;  %v5369_v11 = vld [vmem:[%s8774_s5 + $0x2c0] sm:$0xf]  ;;  %v5728_v19 = vld [vmem:[%s8774_s5 + $0x2c8] sm:$0xf0] }
 0x61d   :  { %v3306_v49 = vpop.f32.mrf.mxu1  ;;  %v5370_v39 = vor.u32 %v5728_v19, %v5369_v11 }
 0x61e   :  { %5484 = vmatmul.msk.bf16.vlgmr.msrb.gmra.mxu0 %vm775_vm3, %v7499_v41  ;;  %v5442_v49 = vld [vmem:[%s8774_s5 + $0x324] sm:$0xf0] }
 0x620   :  { %5321 = vmatmul.msk.bf16.vlgmr.msra.gmra.mxu3 %vm775_vm3, %v7434_v24  ;;  %5326 = vmatmul.msk.bf16.vlgmr.msra.gmra.mxu1 %vm775_vm3, %v7434_v24 }
 0x621   :  { %5395 = vmatmul.msk.bf16.vlgmr.msra.gmra.mxu2 %vm775_vm3, %v7510_v36 }
 0x623   :  { %v3145_v43 = vpop.f32.mrf.mxu3  ;;  %v3674_v32 = vpop.f32.mrf.mxu0 }
 0x624   :  { %v3332_v18 = vpop.f32.mrf.mxu2  ;;  %v8482_v32 = vrot.slane %v8198_v44, 1 }
 0x625   :  { %v3307_v53 = vpop.f32.mrf.mxu1 }
 0x62b   :  { %v3146_v4 = vpop.f32.mrf.mxu3  ;;  %v3676_v28 = vpop.f32.mrf.mxu0 }
 0x62c   :  { %v3333_v24 = vpop.f32.mrf.mxu2  ;;  %v5358_v28 = vor.u32 %v5725_v47, %v5357_v58 }
 0x62d   :  { %v3309_v38 = vpop.f32.mrf.mxu1  ;;  %v5430_v24 = vld [vmem:[%s8774_s5 + $0x30c] sm:$0xf0] }
 0x62e   :  { %5485 = vmatmul.msk.bf16.gmra.mxu0 %vm775_vm3, %v7556_v42 }
 0x630   :  { %5322 = vmatmul.msk.bf16.gmra.mxu3 %vm775_vm3, %v7477_v50  ;;  %5327 = vmatmul.msk.bf16.gmra.mxu1 %vm775_vm3, %v7477_v50  ;;  %v5736_v50 = vld [vmem:[%s8774_s5 + $0x308] sm:$0xf0] }
 0x631   :  { %5396 = vmatmul.msk.bf16.gmra.mxu2 %vm775_vm3, %v7578_v0  ;;  %v5429_v61 = vor.u32 %v5736_v50, %v5428_v23 }
 0x633   :  { %v3148_v35 = vpop.f32.mrf.mxu3  ;;  %v3677_v59 = vpop.f32.mrf.mxu0  ;;  %4031 = vmatpush.bf16.msrb.mxu1 %v5429_v61 }
 0x634   :  { %v3335_v46 = vpop.f32.mrf.mxu2  ;;  %v8500_v35 = vsel %vm399_vm2, %v3947_v45, %v8482_v32  ;;  %v5433_v59 = vor.u32 %v5735_v30, %v5430_v24  ;;  %v3370_v45 = vadd.f32 %v8154_v33, %v8374_v62 }
 0x635   :  { %v3310_v37 = vpop.f32.mrf.mxu1 }
 0x63b   :  { %v3149_v10 = vpop.f32.mrf.mxu3  ;;  %v8415_v21 = vpop.f32.mrf.mxu0 }
 0x63c   :  { %v3336_v17 = vpop.f32.mrf.mxu2 }
 0x63d   :  { %v3312_v63 = vpop.f32.mrf.mxu1 }
 0x63e   :  { %v8428_v31 = vadd.f32 %v3312_v63, %v8308_v48  ;;  %5486 = vmatmul.msk.bf16.gmra.mxu0 %vm775_vm3, %v8425_v9  ;;  %v5394_v48 = vor.u32 %v5734_v6, %v5393_v22 }
 0x640   :  { %5323 = vmatmul.msk.bf16.gmra.mxu3 %vm775_vm3, %v7542_v26  ;;  %5328 = vmatmul.msk.bf16.gmra.mxu1 %vm775_vm3, %v7542_v26  ;;  %v5381_v26 = vld [vmem:[%s8774_s5 + $0x2d8] sm:$0xf] }
 0x641   :  { %5397 = vmatmul.msk.bf16.gmra.mxu2 %vm775_vm3, %v8252_v54  ;;  %3900 = vmatpush.bf16.msrb.mxu3 %v5394_v48  ;;  %v5382_v5 = vor.u32 %v5731_v56, %v5381_v26 }
 0x643   :  { %v3151_v55 = vpop.f32.mrf.mxu3  ;;  %v3681_v7 = vpop.f32.mrf.mxu0 }
 0x644   :  { %v8462_v2 = vadd.f32 %v3151_v55, %v8260_v13  ;;  %v3338_v16 = vpop.f32.mrf.mxu2  ;;  %v5738_v13 = vld [vmem:[%s8774_s5 + $0x31c] sm:$0xf] }
 0x645   :  { %v8467_v52 = vadd.f32 %v3338_v16, %v3159_v1  ;;  %v3314_v60 = vpop.f32.mrf.mxu1  ;;  %3901 = vmatpush.bf16.msrb.mxu3 %v5382_v5  ;;  %v5445_v43 = vor.u32 %v5738_v13, %v5442_v49 }
 0x647   :  { %4056 = vmatpush.bf16.msrb.mxu2 %v5445_v43 }
 0x649   :  { %3902 = vmatpush.bf16.msrb.mxu3 %v5370_v39 }
 0x64b   :  { %v3153_v18 = vpop.f32.mrf.mxu3  ;;  %v8484_v53 = vpop.f32.mrf.mxu0  ;;  %4057 = vmatpush.bf16.msrb.mxu2 %v5433_v59 }
 0x64c   :  { %v3340_v4 = vpop.f32.mrf.mxu2 }
 0x64d   :  { %v3519_v38 = vpop.f32.mrf.mxu1  ;;  %3903 = vmatpush.bf16.msrb.mxu3 %v5358_v28 }
 0x64e   :  { %v8503_v46 = vadd.f32 %v3519_v38, %v8376_v29  ;;  %5487 = vmatmul.msk.bf16.gmra.mxu0 %vm775_vm3, %v8500_v35 }
 0x650   :  { %5324 = vmatmul.msk.bf16.gmra.mxu3 %vm775_vm3, %v7706_v3  ;;  %5329 = vmatmul.msk.bf16.gmra.mxu1 %vm775_vm3, %v7706_v3 }
 0x651   :  { %5398 = vmatmul.msk.bf16.gmra.mxu2 %vm775_vm3, %v8352_v34 }
 0x653   :  { %v3493_v37 = vpop.f32.mrf.mxu3  ;;  %v3881_v29 = vpop.f32.mrf.mxu0 }
 0x654   :  { %v3562_v10 = vadd.f32 %v3493_v37, %v8355_v12  ;;  %v3545_v17 = vpop.f32.mrf.mxu2 }
 0x655   :  { %v3564_v23 = vadd.f32 %v3545_v17, %v3370_v45  ;;  %v3521_v50 = vpop.f32.mrf.mxu1 }
 0x65b   :  { %v3495_v63 = vpop.f32.mrf.mxu3  ;;  %v3883_v61 = vpop.f32.mrf.mxu0 }
 0x65c   :  { %v3547_v22 = vpop.f32.mrf.mxu2 }
 0x65d   :  { %v3523_v6 = vpop.f32.mrf.mxu1 }
 0x65e   :  { %5488 = vmatmul.msk.bf16.gmra.mxu0 %vm775_vm3, %v8482_v32 }
 0x660   :  { %5325 = vmatmul.msk.bf16.gmra.mxu3 %vm775_vm3, %v8198_v44  ;;  %5330 = vmatmul.msk.bf16.gmra.mxu1 %vm775_vm3, %v8198_v44 }
 0x661   :  { %5399 = vmatmul.msk.bf16.gmra.mxu2 %vm775_vm3, %v8379_v15 }
 0x663   :  { %v3497_v3 = vpop.f32.mrf.mxu3  ;;  %v3884_v33 = vpop.f32.mrf.mxu0 }
 0x664   :  { %v3549_v12 = vpop.f32.mrf.mxu2 }
 0x665   :  { %v3524_v62 = vpop.f32.mrf.mxu1 }
 0x66b   :  { %v3498_v8 = vpop.f32.mrf.mxu3  ;;  %v3886_v48 = vpop.f32.mrf.mxu0 }
 0x66c   :  { %v3550_v27 = vpop.f32.mrf.mxu2 }
 0x66d   :  { %v3526_v20 = vpop.f32.mrf.mxu1 }
 0x670   :  { %5405 = vmatmul.msk.bf16.vlgmr.msrb.gmra.mxu3 %vm775_vm3, %v7510_v36  ;;  %5474 = vmatmul.msk.bf16.vlgmr.msrb.gmra.mxu1 %vm775_vm3, %v7499_v41 }
 0x671   :  { %5479 = vmatmul.msk.bf16.vlgmr.msrb.gmra.mxu2 %vm775_vm3, %v7499_v41 }
 0x673   :  { %v3500_v44 = vpop.f32.mrf.mxu3  ;;  %v3887_v55 = vpop.f32.mrf.mxu0 }
 0x674   :  { %v3552_v1 = vpop.f32.mrf.mxu2 }
 0x675   :  { %v3527_v7 = vpop.f32.mrf.mxu1 }
 0x67b   :  { %v3501_v26 = vpop.f32.mrf.mxu3  ;;  %v3889_v56 = vpop.f32.mrf.mxu0 }
 0x67c   :  { %v3553_v51 = vpop.f32.mrf.mxu2  ;;  %v5507_v56 = vld [vmem:[%s8775_s6 + $0x50] sm:$0xf] }
 0x67d   :  { %v3529_v16 = vpop.f32.mrf.mxu1  ;;  %v5759_v51 = vld [vmem:[%s8775_s6 + $0x60] sm:$0xf0] }
 0x680   :  { %5406 = vmatmul.msk.bf16.gmra.mxu3 %vm775_vm3, %v7578_v0  ;;  %5475 = vmatmul.msk.bf16.gmra.mxu1 %vm775_vm3, %v7556_v42  ;;  %v3373_v0 = vadd.f32 %v8238_v14, %v8462_v2 }
 0x681   :  { %5480 = vmatmul.msk.bf16.gmra.mxu2 %vm775_vm3, %v7556_v42 }
 0x683   :  { %v3503_v36 = vpop.f32.mrf.mxu3  ;;  %v3890_v5 = vpop.f32.mrf.mxu0 }
 0x684   :  { %v3555_v41 = vpop.f32.mrf.mxu2  ;;  %v5508_v36 = vor.u32 %v5759_v51, %v5507_v56  ;;  %v8636_v51 = vld [vmem:[%s8771_s7] sm:$0xff] }
 0x685   :  { %v3530_v25 = vpop.f32.mrf.mxu1 }
 0x68b   :  { %v3504_v60 = vpop.f32.mrf.mxu3  ;;  %v8536_v40 = vpop.f32.mrf.mxu0 }
 0x68c   :  { %v3556_v11 = vpop.f32.mrf.mxu2 }
 0x68d   :  { %v3532_v19 = vpop.f32.mrf.mxu1 }
 0x68e   :  { %v8539_v13 = vadd.f32 %v3532_v19, %v8467_v52 }
 0x690   :  { %5407 = vmatmul.msk.bf16.gmra.mxu3 %vm775_vm3, %v8252_v54  ;;  %5476 = vmatmul.msk.bf16.gmra.mxu1 %vm775_vm3, %v8425_v9 }
 0x691   :  { %5481 = vmatmul.msk.bf16.gmra.mxu2 %vm775_vm3, %v8425_v9  ;;  %v3735_v9 = vadd.f32 %v8336_v57, %v3562_v10 }
 0x693   :  { %v3506_v42 = vpop.f32.mrf.mxu3  ;;  %v3894_v39 = vpop.f32.mrf.mxu0 }
 0x694   :  { %v3565_v49 = vadd.f32 %v3506_v42, %v8428_v31  ;;  %v3558_v43 = vpop.f32.mrf.mxu2 }
 0x695   :  { %v3567_v18 = vadd.f32 %v3558_v43, %v3373_v0  ;;  %v3534_v52 = vpop.f32.mrf.mxu1 }
 0x696   :  { %v3738_v41 = vadd.f32 %v8415_v21, %v3565_v49  ;;  %v5754_v52 = vld [vmem:[%s8775_s6 + $0x38] sm:$0xf0] }
 0x69b   :  { %v3508_v58 = vpop.f32.mrf.mxu3  ;;  %v8550_v47 = vpop.f32.mrf.mxu0 }
 0x69c   :  { %v3560_v54 = vpop.f32.mrf.mxu2 }
 0x69d   :  { %v3718_v30 = vpop.f32.mrf.mxu1 }
 0x69e   :  { %v8552_v4 = vadd.f32 %v3718_v30, %v3564_v23 }
 0x6a0   :  { %5408 = vmatmul.msk.bf16.gmra.mxu3 %vm775_vm3, %v8352_v34  ;;  %5477 = vmatmul.msk.bf16.gmra.mxu1 %vm775_vm3, %v8500_v35 }
 0x6a1   :  { %5482 = vmatmul.msk.bf16.gmra.mxu2 %vm775_vm3, %v8500_v35 }
 0x6a3   :  { %v3692_v14 = vpop.f32.mrf.mxu3  ;;  %v4087_v31 = vpop.f32.mrf.mxu0 }
 0x6a4   :  { %v3736_v2 = vadd.f32 %v3692_v14, %v8503_v46  ;;  %v3853_v28 = vpop.f32.mrf.mxu2 }
 0x6a5   :  { %v3922_v24 = vadd.f32 %v3853_v28, %v3735_v9  ;;  %v3720_v38 = vpop.f32.mrf.mxu1 }
 0x6ab   :  { %v3694_v59 = vpop.f32.mrf.mxu3  ;;  %v4089_v37 = vpop.f32.mrf.mxu0 }
 0x6ac   :  { %v3855_v45 = vpop.f32.mrf.mxu2 }
 0x6ad   :  { %v3722_v29 = vpop.f32.mrf.mxu1 }
 0x6ae   :  { %v5517_v29 = vld [vmem:[%s8775_s6 + $0x8c] sm:$0xf0] }
 0x6b0   :  { %5409 = vmatmul.msk.bf16.gmra.mxu3 %vm775_vm3, %v8379_v15  ;;  %5478 = vmatmul.msk.bf16.gmra.mxu1 %vm775_vm3, %v8482_v32  ;;  %v5515_v15 = vld [vmem:[%s8775_s6 + $0x78] sm:$0xf] }
 0x6b1   :  { %5483 = vmatmul.msk.bf16.gmra.mxu2 %vm775_vm3, %v8482_v32  ;;  %v5764_v32 = vld [vmem:[%s8775_s6 + $0x88] sm:$0xf0] }
 0x6b2   :  { %v5516_v3 = vor.u32 %v5764_v32, %v5515_v15  ;;  %v5747_v15 = vld [vmem:[%s8775_s6 + $0x4] sm:$0xf]  ;;  %v5493_v32 = vld [vmem:[%s8775_s6 + $0x14] sm:$0xf0] }
 0x6b3   :  { %v3696_v57 = vpop.f32.mrf.mxu3  ;;  %v4090_v34 = vpop.f32.mrf.mxu0 }
 0x6b4   :  { %v3857_v35 = vpop.f32.mrf.mxu2  ;;  %4203 = vmatpush.bf16.msra.mxu3 %v5516_v3 }
 0x6b5   :  { %v3723_v46 = vpop.f32.mrf.mxu1 }
 0x6b6   :  { %v5757_v46 = vld [vmem:[%s8775_s6 + $0x54] sm:$0xf] }
 0x6b8   :  { %4204 = vmatpush.bf16.msra.mxu3 %v5508_v36  ;;  %v4145_v36 = vperm.slane %v8636_v51, 4 }
 0x6bb   :  { %v3697_v10 = vpop.f32.mrf.mxu3  ;;  %v4092_v17 = vpop.f32.mrf.mxu0 }
 0x6bc   :  { %v3858_v23 = vpop.f32.mrf.mxu2  ;;  %v5509_v10 = vld [vmem:[%s8775_s6 + $0x64] sm:$0xf0] }
 0x6bd   :  { %v3725_v50 = vpop.f32.mrf.mxu1  ;;  %v5512_v23 = vor.u32 %v5757_v46, %v5509_v10  ;;  %v5551_v46 = vld [vmem:[%s8775_s6 + $0x94] sm:$0xf0] }
 0x6be   :  { %v5752_v50 = vld [vmem:[%s8775_s6 + $0x2c] sm:$0xf] }
 0x6c3   :  { %v3699_v63 = vpop.f32.mrf.mxu3  ;;  %v4093_v61 = vpop.f32.mrf.mxu0 }
 0x6c4   :  { %v3860_v22 = vpop.f32.mrf.mxu2  ;;  %v5501_v63 = vld [vmem:[%s8775_s6 + $0x3c] sm:$0xf0] }
 0x6c5   :  { %v3726_v6 = vpop.f32.mrf.mxu1  ;;  %v5504_v61 = vor.u32 %v5752_v50, %v5501_v63  ;;  %v5533_v50 = vld [vmem:[%s8775_s6 + $0x30] sm:$0xf]  ;;  %v5755_v63 = vld [vmem:[%s8775_s6 + $0x40] sm:$0xf0] }
 0x6cb   :  { %v3700_v33 = vpop.f32.mrf.mxu3  ;;  %v4095_v12 = vpop.f32.mrf.mxu0 }
 0x6cc   :  { %v3861_v62 = vpop.f32.mrf.mxu2  ;;  %v5496_v33 = vor.u32 %v5747_v15, %v5493_v32  ;;  %v5525_v32 = vld [vmem:[%s8775_s6 + $0x8] sm:$0xf] }
 0x6cd   :  { %v3728_v8 = vpop.f32.mrf.mxu1 }
 0x6ce   :  { %v4149_v8 = vld [vmem:[%s8776_s1] sm:$0xf] }
 0x6cf   :  { %4191 = vst [vmem:[#allocation1] ss:$4 sm:$0xff] %v4149_v8  ;;  %v5753_v8 = vld [vmem:[%s8775_s6 + $0x34] sm:$0xf] }
 0x6d3   :  { %v3702_v48 = vpop.f32.mrf.mxu3  ;;  %v4096_v27 = vpop.f32.mrf.mxu0 }
 0x6d4   :  { %v3863_v20 = vpop.f32.mrf.mxu2 }
 0x6d5   :  { %v3729_v44 = vpop.f32.mrf.mxu1 }
 0x6db   :  { %v3703_v55 = vpop.f32.mrf.mxu3  ;;  %v8574_v1 = vpop.f32.mrf.mxu0 }
 0x6dc   :  { %v3864_v7 = vpop.f32.mrf.mxu2 }
 0x6dd   :  { %v3731_v26 = vpop.f32.mrf.mxu1 }
 0x6de   :  { %v8582_v16 = vadd.f32 %v3731_v26, %v3567_v18  ;;  %v5499_v18 = vld [vmem:[%s8775_s6 + $0x28] sm:$0xf] }
 0x6df   :  { %v5500_v21 = vor.u32 %v5754_v52, %v5499_v18 }
 0x6e1   :  { %4205 = vmatpush.bf16.msra.mxu3 %v5500_v21 }
 0x6e3   :  { %v3705_v5 = vpop.f32.mrf.mxu3  ;;  %v4100_v25 = vpop.f32.mrf.mxu0 }
 0x6e4   :  { %v8586_v60 = vadd.f32 %v3705_v5, %v8539_v13  ;;  %v3866_v11 = vpop.f32.mrf.mxu2  ;;  %v3923_v13 = vadd.f32 %v8484_v53, %v3736_v2  ;;  %v5749_v53 = vld [vmem:[%s8775_s6 + $0x10] sm:$0xf0] }
 0x6e5   :  { %v3925_v19 = vadd.f32 %v3866_v11, %v3738_v41  ;;  %v3733_v42 = vpop.f32.mrf.mxu1 }
 0x6e6   :  { %v3926_v42 = vadd.f32 %v8536_v40, %v8586_v60 }
 0x6eb   :  { %v3707_v0 = vpop.f32.mrf.mxu3 }
 0x6ec   :  { %v3868_v39 = vpop.f32.mrf.mxu2 }
 0x6ed   :  { %v4033_v43 = vpop.f32.mrf.mxu1 }
 0x6ee   :  { %v4102_v58 = vadd.f32 %v4033_v43, %v3922_v24  ;;  %v5491_v24 = vld [vmem:[%s8775_s6] sm:$0xf] }
 0x6ef   :  { %v5492_v2 = vor.u32 %v5749_v53, %v5491_v24 }
 0x6f1   :  { %4206 = vmatpush.bf16.msra.mxu3 %v5492_v2  ;;  %v5760_v2 = vld [vmem:[%s8775_s6 + $0x68] sm:$0xf0] }
 0x6f3   :  { %v3905_v49 = vpop.f32.mrf.mxu3 }
 0x6f4   :  { %v8596_v54 = vadd.f32 %v3905_v49, %v8552_v4  ;;  %v4059_v30 = vpop.f32.mrf.mxu2  ;;  %v5762_v4 = vld [vmem:[%s8775_s6 + $0x7c] sm:$0xf] }
 0x6f5   :  { %v8598_v14 = vadd.f32 %v4059_v30, %v3923_v13  ;;  %v4035_v9 = vpop.f32.mrf.mxu1  ;;  %v5520_v57 = vor.u32 %v5762_v4, %v5517_v29  ;;  %v5541_v4 = vld [vmem:[%s8775_s6 + $0x58] sm:$0xf]  ;;  %v5571_v29 = vld [vmem:[%s8775_s6 + $0x88] sm:$0xf] }
 0x6f6   :  { %v4104_v13 = vadd.f32 %v8550_v47, %v8596_v54  ;;  %v4192_v47 = vld.sshfl [vmem:[#allocation1] sm:$0xff pattern:$0x73625140] }
 0x6f7   :  { %4216 = vmatpush.bf16.msra.mxu1 %v5520_v57  ;;  %v5542_v57 = vor.u32 %v5760_v2, %v5541_v4 }
 0x6fb   :  { %v3907_v31 = vpop.f32.mrf.mxu3  ;;  %4217 = vmatpush.bf16.msra.mxu1 %v5512_v23 }
 0x6fc   :  { %v4061_v28 = vpop.f32.mrf.mxu2 }
 0x6fd   :  { %v4037_v38 = vpop.f32.mrf.mxu1 }
 0x6ff   :  { %4218 = vmatpush.bf16.msra.mxu1 %v5504_v61  ;;  %v5758_v61 = vld [vmem:[%s8775_s6 + $0x5c] sm:$0xf] }
 0x703   :  { %v3909_v59 = vpop.f32.mrf.mxu3  ;;  %4219 = vmatpush.bf16.msra.mxu1 %v5496_v33  ;;  %v5567_v33 = vld [vmem:[%s8775_s6 + $0x60] sm:$0xf] }
 0x704   :  { %v4063_v37 = vpop.f32.mrf.mxu2  ;;  %v5765_v59 = vld [vmem:[%s8775_s6 + $0x90] sm:$0xf0] }
 0x705   :  { %v4038_v45 = vpop.f32.mrf.mxu1 }
 0x70b   :  { %v3910_v34 = vpop.f32.mrf.mxu3 }
 0x70c   :  { %v4064_v35 = vpop.f32.mrf.mxu2  ;;  %v5766_v34 = vld [vmem:[%s8775_s6 + $0x98] sm:$0xf0] }
 0x70d   :  { %v4040_v17 = vpop.f32.mrf.mxu1  ;;  %v5763_v35 = vld [vmem:[%s8775_s6 + $0x84] sm:$0xf] }
 0x70e   :  { %v5572_v17 = vor.u32 %v5766_v34, %v5571_v29  ;;  %v5554_v23 = vor.u32 %v5763_v35, %v5551_v46  ;;  %v4388_v34 = vperm.slane %v8636_v51, 7 }
 0x710   :  { %4301 = vmatpush.bf16.msrb.mxu3 %v5554_v23 }
 0x713   :  { %v3912_v22 = vpop.f32.mrf.mxu3 }
 0x714   :  { %v4066_v6 = vpop.f32.mrf.mxu2  ;;  %v5543_v22 = vld [vmem:[%s8775_s6 + $0x6c] sm:$0xf0] }
 0x715   :  { %v4041_v3 = vpop.f32.mrf.mxu1  ;;  %v5534_v6 = vor.u32 %v5755_v63, %v5533_v50 }
 0x716   :  { %v5750_v3 = vld [vmem:[%s8775_s6 + $0x18] sm:$0xf0] }
 0x71b   :  { %v3913_v12 = vpop.f32.mrf.mxu3 }
 0x71c   :  { %v4067_v62 = vpop.f32.mrf.mxu2  ;;  %v5761_v12 = vld [vmem:[%s8775_s6 + $0x70] sm:$0xf0] }
 0x71d   :  { %v4043_v48 = vpop.f32.mrf.mxu1 }
 0x71e   :  { %v5535_v48 = vld [vmem:[%s8775_s6 + $0x44] sm:$0xf0] }
 0x723   :  { %v3915_v27 = vpop.f32.mrf.mxu3 }
 0x724   :  { %v4069_v20 = vpop.f32.mrf.mxu2  ;;  %v5546_v27 = vor.u32 %v5758_v61, %v5543_v22 }
 0x725   :  { %v4044_v44 = vpop.f32.mrf.mxu1  ;;  %v5526_v20 = vor.u32 %v5750_v3, %v5525_v32 }
 0x726   :  { %v5568_v44 = vor.u32 %v5761_v12, %v5567_v33  ;;  %4302 = vmatpush.bf16.msrb.mxu3 %v5546_v27 }
 0x72b   :  { %v3916_v55 = vpop.f32.mrf.mxu3 }
 0x72c   :  { %v4070_v7 = vpop.f32.mrf.mxu2  ;;  %v5538_v55 = vor.u32 %v5753_v8, %v5535_v48 }
 0x72d   :  { %v4046_v26 = vpop.f32.mrf.mxu1  ;;  %v5748_v7 = vld [vmem:[%s8775_s6 + $0xc] sm:$0xf] }
 0x72e   :  { %v4105_v56 = vadd.f32 %v4046_v26, %v3925_v19  ;;  %v5527_v26 = vld [vmem:[%s8775_s6 + $0x1c] sm:$0xf0]  ;;  %4303 = vmatpush.bf16.msrb.mxu3 %v5538_v55 }
 0x730   :  { %v4111_v5 = vrot.slane %v4105_v56, 7  ;;  %v5530_v56 = vor.u32 %v5748_v7, %v5527_v26 }
 0x732   :  { %v4118_v41 = vsel %vm4117_vm6, %v4102_v58, %v4111_v5  ;;  %v5756_v5 = vld [vmem:[%s8775_s6 + $0x48] sm:$0xf0]  ;;  %4304 = vmatpush.bf16.msrb.mxu3 %v5530_v56 }
 0x733   :  { %v4146_v25 = vadd.f32 %v4145_v36, %v4118_v41  ;;  %v3918_v11 = vpop.f32.mrf.mxu3  ;;  %v5563_v36 = vld [vmem:[%s8775_s6 + $0x38] sm:$0xf] }
 0x734   :  { %v3927_v0 = vadd.f32 %v3918_v11, %v8582_v16  ;;  %v4072_v39 = vpop.f32.mrf.mxu2 }
 0x735   :  { %v4147_v19 = vmax.f32 %v4146_v25, 0.0  ;;  %v4106_v43 = vadd.f32 %v4072_v39, %v3926_v42  ;;  %v4048_v18 = vpop.f32.mrf.mxu1  ;;  %v4193_v25 = vld.sshfl [vmem:[#allocation1 + $0x8] sm:$0xff pattern:$0x73625140]  ;;  %v5559_v42 = vld [vmem:[%s8775_s6 + $0x10] sm:$0xf] }
 0x736   :  { %v4107_v52 = vadd.f32 %v8574_v1, %v3927_v0  ;;  %v4230_v1 = vperm.slane %v8636_v51, 5  ;;  %v5751_v0 = vld [vmem:[%s8775_s6 + $0x20] sm:$0xf0] }
 0x737   :  { %v4148_v21 = vpack.c.bf16 %v4147_v19, %v4147_v19  ;;  %v4112_v49 = vrot.slane %v4106_v43, 7  ;;  %v5560_v39 = vor.u32 %v5751_v0, %v5559_v42 }
 0x738   :  { %v4113_v30 = vrot.slane %v4107_v52, 7  ;;  %4232 = vrot.lane.b32.xlu1 %v4230_v1, %s5771_s0 }
 0x739   :  { %5521 = vmatmul.msk.bf16.vlgmr.msra.gmra.mxu3 %vm775_vm3, %v4148_v21  ;;  %5522 = vmatmul.msk.bf16.vlgmr.msra.gmra.mxu1 %vm775_vm3, %v4148_v21  ;;  %v8650_v40 = vsel %vm4117_vm6, %v8598_v14, %v4112_v49  ;;  %v5549_v14 = vld [vmem:[%s8775_s6 + $0x80] sm:$0xf] }
 0x73a   :  { %v8653_v16 = vsel %vm4117_vm6, %v4104_v13, %v4113_v30  ;;  %v5550_v37 = vor.u32 %v5765_v59, %v5549_v14 }
 0x73b   :  { %v3920_v60 = vpop.f32.mrf.mxu3 }
 0x73c   :  { %v4074_v58 = vpop.f32.mrf.mxu2  ;;  %4288 = vmatpush.bf16.msra.mxu2 %v5550_v37 }
 0x740   :  { %4289 = vmatpush.bf16.msra.mxu2 %v5542_v57  ;;  %4350 = vrot.lane.b32.xlu1 %v5572_v17, %s5771_s0 }
 0x744   :  { %4290 = vmatpush.bf16.msra.mxu2 %v5534_v6 }
 0x748   :  { %4291 = vmatpush.bf16.msra.mxu2 %v5526_v20  ;;  %4340 = vrot.lane.b32.xlu1 %v5538_v55, %s5771_s0 }
 0x750   :  { %4338 = vrot.lane.b32.xlu1 %v5560_v39, %s5771_s0 }
 0x758   :  { %4390 = vrot.lane.b32.xlu1 %v4388_v34, %s5771_s0 }
 0x7aa   :  { %v4233_v24 = vpop.permute.xlu1 %4232 }
 0x7b2   :  { %v4351_v18 = vpop.permute.xlu1 %4350 }
 0x7b3   :  { %4410 = vmatpush.bf16.msrb.mxu1 %v4351_v18 }
 0x7b6   :  { %v8657_v9 = vpop.f32.mrf.mxu1 }
 0x7b7   :  { %v4222_v11 = vadd.f32 %v8657_v9, %v4193_v25 }
 0x7ba   :  { %v4341_v13 = vpop.permute.xlu1 %4340 }
 0x7bc   :  { %v4208_v54 = vpop.f32.mrf.mxu3 }
 0x7bd   :  { %v4209_v31 = vadd.f32 %v4208_v54, %v4192_v47 }
 0x7be   :  { %v4223_v28 = vpop.f32.mrf.mxu1 }
 0x7bf   :  { %4226 = vrot.lane.b32.xlu0 %v4209_v31, %s5771_s0 }
 0x7c2   :  { %v4339_v9 = vpop.permute.xlu1 %4338 }
 0x7c4   :  { %v4210_v38 = vpop.f32.mrf.mxu3 }
 0x7c5   :  { %v4312_v38 = vperm.slane %v8636_v51, 6  ;;  %v5768_v51 = vld [vmem:[%s8771_s7 + $0x8] ss:$0 sm:$0xff] }
 0x7c7   :  { %4348 = vrot.lane.b32.xlu0 %v5554_v23, %s5771_s0 }
 0x7ca   :  { %v4391_v17 = vpop.permute.xlu1 %4390 }
 0x7cf   :  { %4346 = vrot.lane.b32.xlu0 %v5568_v44, %s5771_s0 }
 0x7d7   :  { %4336 = vrot.lane.b32.xlu0 %v5530_v56, %s5771_s0 }
 0x831   :  { %v8666_v45 = vpop.permute.xlu0 %4226 }
 0x832   :  { %v4229_v53 = vadd.f32 %v8666_v45, %v4118_v41  ;;  %v5564_v41 = vor.u32 %v5756_v5, %v5563_v36  ;;  %v4310_v31 = vadd.f32 %v8666_v45, %v8650_v40 }
 0x834   :  { %v4235_v10 = vadd.f32 %v4233_v24, %v4229_v53 }
 0x836   :  { %v4236_v15 = vmax.f32 %v4235_v10, 0.0 }
 0x838   :  { %v4237_v62 = vpack.c.bf16 %v4236_v15, %v4236_v15 }
 0x839   :  { %v4349_v52 = vpop.permute.xlu0 %4348 }
 0x83a   :  { %4239 = vrot.lane.b32.xlu2 %v4237_v62, %s5771_s0  ;;  %v4356_v21 = vsel %vm775_vm3, %v4349_v52, %v4351_v18 }
 0x83b   :  { %4368 = vmatpush.bf16.msra.mxu0 %v4356_v21 }
 0x841   :  { %v4347_v49 = vpop.permute.xlu0 %4346 }
 0x842   :  { %4344 = vrot.lane.b32.xlu2 %v5546_v27, %s5771_s0  ;;  %4411 = vmatpush.bf16.msrb.mxu1 %v4347_v49 }
 0x849   :  { %v4337_v1 = vpop.permute.xlu0 %4336 }
 0x84a   :  { %4342 = vrot.lane.b32.xlu2 %v5564_v41, %s5771_s0  ;;  %v4353_v47 = vsel %vm775_vm3, %v4337_v1, %v4339_v9 }
 0x852   :  { %4378 = vrot.lane.b32.xlu2 %v4222_v11, %s5771_s0 }
 0x894   :  { %v4240_v19 = vpop.permute.xlu2 %4239 }
 0x895   :  { %5555 = vmatmul.msk.bf16.vlgmr.msra.gmra.mxu2 %vm775_vm3, %v4240_v19  ;;  %5556 = vmatmul.msk.bf16.vlgmr.msrb.gmra.mxu3 %vm775_vm3, %v4240_v19 }
 0x89c   :  { %v4345_v43 = vpop.permute.xlu2 %4344 }
 0x89d   :  { %v4355_v30 = vsel %vm775_vm3, %v4345_v43, %v4347_v49 }
 0x89e   :  { %4369 = vmatpush.bf16.msra.mxu0 %v4355_v30 }
 0x8a4   :  { %v4343_v60 = vpop.permute.xlu2 %4342 }
 0x8a5   :  { %v4354_v58 = vsel %vm775_vm3, %v4341_v13, %v4343_v60  ;;  %4412 = vmatpush.bf16.msrb.mxu1 %v4343_v60 }
 0x8a6   :  { %4370 = vmatpush.bf16.msra.mxu0 %v4354_v58 }
 0x8a9   :  { %4413 = vmatpush.bf16.msrb.mxu1 %v4339_v9 }
 0x8aa   :  { %4371 = vmatpush.bf16.msra.mxu0 %v4353_v47 }
 0x8ac   :  { %v4379_v54 = vpop.permute.xlu2 %4378 }
 0x8ad   :  { %v4419_v28 = vadd.f32 %v4379_v54, %v8653_v16  ;;  %v4381_v35 = vadd.f32 %v4379_v54, %v8650_v40 }
 0x918   :  { %v4293_v14 = vpop.f32.mrf.mxu2  ;;  %v4306_v59 = vpop.f32.mrf.mxu3 }
 0x919   :  { %v4311_v37 = vadd.f32 %v4310_v31, %v4293_v14  ;;  %v4420_v24 = vadd.f32 %v4419_v28, %v4306_v59  ;;  %v4382_v46 = vadd.f32 %v4381_v35, %v4293_v14 }
 0x91b   :  { %v4313_v53 = vadd.f32 %v4312_v38, %v4311_v37 }
 0x91d   :  { %v4314_v4 = vmax.f32 %v4313_v53, 0.0 }
 0x91f   :  { %v4315_v2 = vpack.c.bf16 %v4314_v4, %v4314_v4 }
 0x920   :  { %v4295_v29 = vpop.f32.mrf.mxu2  ;;  %v4308_v57 = vpop.f32.mrf.mxu3 }
 0x921   :  { %5573 = vmatmul.msk.bf16.vlgmr.msra.gmra.mxu0 %vm775_vm3, %v4315_v2 }
 0x99e   :  { %v4373_v45 = vpop.f32.mrf.mxu0 }
 0x99f   :  { %4384 = vrot.lane.b32.xlu0 %v4373_v45, %s5771_s0 }
 0x9a6   :  { %v4375_v16 = vpop.f32.mrf.mxu0 }
 0xa11   :  { %v4385_v10 = vpop.permute.xlu0 %4384 }
 0xa12   :  { %v4387_v23 = vadd.f32 %v4385_v10, %v4382_v46  ;;  %v4421_v50 = vadd.f32 %v4420_v24, %v4385_v10 }
 0xa14   :  { %v4393_v63 = vadd.f32 %v4391_v17, %v4387_v23 }
 0xa16   :  { %v4394_v61 = vmax.f32 %v4393_v63, 0.0 }
 0xa18   :  { %v4395_v22 = vpack.c.bf16 %v4394_v61, %v4394_v61 }
 0xa1a   :  { %4397 = vrot.lane.b32.xlu2 %v4395_v22, %s5771_s0 }
 0xa74   :  { %v4398_v6 = vpop.permute.xlu2 %4397 }
 0xa75   :  { %5574 = vmatmul.msk.bf16.vlgmr.msrb.gmra.mxu1 %vm775_vm3, %v4398_v6 }
 0xaf2   :  { %v4415_v15 = vpop.f32.mrf.mxu1 }
 0xaf3   :  { %v4422_v32 = vadd.f32 %v4421_v50, %v4415_v15 }
 0xaf5   :  { %v4424_v40 = vadd.f32 %v5768_v51, %v4422_v32 }
 0xaf7   :  { %4426 = vst.msk [vmem:[%s8777_s8] sm:$0x3] %vm4425_vm7, %v4424_v40 }
 0xafa   :  { %v4417_v3 = vpop.f32.mrf.mxu1 }

</bundles_post_ra>
